<compile_context>
chip_gen: v7x
topology: tpu7x:2x2x1
jax: 0.10.0
libtpu: 0.0.40
codegen_flags: <defaults>
</compile_context>

<pallas_src>
import functools
import math

import jax
import jax.numpy as jnp
from jax.experimental import pallas as pl
from jax.experimental.pallas import tpu as pltpu


def _layernorm(x, gamma, beta, eps=1e-5):
    mu = jnp.mean(x, axis=-1, keepdims=True)
    var = jnp.mean((x - mu) ** 2, axis=-1, keepdims=True)
    return (x - mu) * jax.lax.rsqrt(var + eps) * gamma + beta


# ----------------------------------------------------------------------------- kernel

def vit_encoder_kernel(patch_ref, wp_ref, bp_ref, cls_ref, pos_ref,
                       wqkv_ref, wo_ref, w1_ref, w2_ref,
                       bqkv_ref, bo_ref, b1_ref, b2_ref,
                       g1_ref, be1_ref, g2_ref, be2_ref,
                       o_ref, *, num_heads, seq_real):
    """Grid step = (batch block b, layer l).

    layer == 0: patch-embed (conv-as-matmul) + cls + pos, written as one aligned store
    into o_ref (padded rows zeroed).  Every layer then reads o_ref (the VMEM-resident
    carry), runs one post-LN TransformerEncoderLayer, and writes o_ref back.
    """
    layer = pl.program_id(1)
    Bt, N, K = patch_ref.shape
    _, Sp, D = o_ref.shape
    F = w1_ref.shape[2]
    H = num_heads
    Dh = D // H
    M = Bt * Sp

    @pl.when(layer == 0)
    def _embed():
        pe = jnp.dot(patch_ref[...].reshape(Bt * N, K), wp_ref[...],
                     preferred_element_type=jnp.float32) + bp_ref[...]
        pe = pe.reshape(Bt, N, D)
        cls_row = jnp.broadcast_to(cls_ref[...].reshape(1, 1, D), (Bt, 1, D))
        parts = [cls_row, pe]
        n_pad = Sp - 1 - N            # static
        if n_pad > 0:
            parts.append(jnp.zeros((Bt, n_pad, D), jnp.float32))
        # one aligned full-tile store (pos_ref is pre-padded to Sp rows)
        o_ref[...] = jnp.concatenate(parts, axis=1) + pos_ref[...]

    x = o_ref[...]                                   # (Bt, Sp, D) f32 carry
    xf = x.reshape(M, D)                             # f32 residual path
    xb = xf.astype(jnp.bfloat16)                     # bf16 MXU operand

    # fused QKV projection: one (M, D) x (D, 3D) matmul, scale folded into q columns
    qkv = jnp.dot(xb, wqkv_ref[0],
                  preferred_element_type=jnp.float32) + bqkv_ref[0]   # (M, 3D) f32

    def split_heads(t):                              # (M, D) f32 -> (H*Bt, Sp, Dh) bf16
        t = t.astype(jnp.bfloat16).reshape(M, H, Dh)
        t = pltpu.einshape("mhd->hmd", t)            # (H, M, Dh)
        return t.reshape(H * Bt, Sp, Dh)             # Sp % 8 == 0 -> tile-aligned split

    q = split_heads(qkv[:, 0:D])
    k = split_heads(qkv[:, D:2 * D])
    v = split_heads(qkv[:, 2 * D:3 * D])

    # batched attention over the collapsed (head, batch-row) axis
    s = jnp.einsum("gqd,gkd->gqk", q, k,
                   preferred_element_type=jnp.float32)                # (H*Bt, Sp, Sp)
    if Sp > seq_real:                                # mask padded keys (static check)
        kidx = jax.lax.broadcasted_iota(jnp.int32, (1, 1, Sp), 2)
        s = jnp.where(kidx < seq_real, s, -1e30)
    s = s - jnp.max(s, axis=-1, keepdims=True)
    p = jnp.exp(s)
    p = p * pl.reciprocal(jnp.sum(p, axis=-1, keepdims=True), approx=True)

    ctx = jnp.einsum("gqk,gkd->gqd", p.astype(jnp.bfloat16), v,
                     preferred_element_type=jnp.float32)              # (H*Bt, Sp, Dh)
    ctx = ctx.astype(jnp.bfloat16).reshape(H, M, Dh)
    ctx = pltpu.einshape("hmd->mhd", ctx).reshape(M, D)               # (M, D) bf16

    attn = jnp.dot(ctx, wo_ref[0], preferred_element_type=jnp.float32) + bo_ref[0]

    # residual + post-LayerNorm (f32 statistics)
    x1 = _layernorm(xf + attn, g1_ref[0], be1_ref[0])

    # feed-forward (relu), bf16 operands, f32 accumulation
    h1 = jnp.maximum(
        jnp.dot(x1.astype(jnp.bfloat16), w1_ref[0],
                preferred_element_type=jnp.float32) + b1_ref[0], 0.0)
    ff = jnp.dot(h1.astype(jnp.bfloat16), w2_ref[0],
                 preferred_element_type=jnp.float32) + b2_ref[0]
    y = _layernorm(x1 + ff, g2_ref[0], be2_ref[0])

    o_ref[...] = y.reshape(Bt, Sp, D)                # carry; flushed after last layer


# ----------------------------------------------------------------------------- params

def init_params(key, *, image_size, patch_size, in_channels, embed_dim, mlp_dim, num_layers):
    """PyTorch-layout parameters (Conv2d weight, in_proj_weight.T, etc.), all f32."""
    P, D, F = patch_size, embed_dim, mlp_dim
    N = (image_size // P) ** 2
    K = in_channels * P * P
    keys = jax.random.split(key, 4 + num_layers)

    def nrm(k, shape, s=0.02):
        return jax.random.normal(k, shape, jnp.float32) * s

    w_conv = nrm(keys[0], (D, in_channels, P, P))          # PyTorch Conv2d weight layout
    params = {
        "w_patch": w_conv.reshape(D, K).T,                 # (K, D)
        "b_patch": nrm(keys[1], (1, D)),
        "cls": nrm(keys[2], (1, D)),
        "pos": nrm(keys[3], (N + 1, D)),
        "layers": [],
    }
    for l in range(num_layers):
        lk = jax.random.split(keys[4 + l], 8)
        params["layers"].append({
            "wqkv": nrm(lk[0], (D, 3 * D)),   # = in_proj_weight.T
            "bqkv": nrm(lk[1], (1, 3 * D)),
            "wo":   nrm(lk[2], (D, D)),       # = out_proj.weight.T
            "bo":   nrm(lk[3], (1, D)),
            "g1": jnp.ones((1, D), jnp.float32),  "be1": jnp.zeros((1, D), jnp.float32),
            "w1":   nrm(lk[4], (D, F)),
            "b1":   nrm(lk[5], (1, F)),
            "w2":   nrm(lk[6], (F, D)),
            "b2":   nrm(lk[7], (1, D)),
            "g2": jnp.ones((1, D), jnp.float32),  "be2": jnp.zeros((1, D), jnp.float32),
        })
    return params


def pack_params(params, *, num_heads):
    """One-time transform: keep qkv fused (one (D,3D) weight, scale folded into the q
    columns), stack all per-layer weights on a leading layer axis (layer-grid
    pipelining), cast matmul weights to bf16.  LN params and biases stay f32."""
    D = params["w_patch"].shape[1]
    Dh = D // num_heads
    scale = 1.0 / math.sqrt(Dh)
    layers = params["layers"]
    bf, f32 = jnp.bfloat16, jnp.float32
    qkv_scale = jnp.concatenate(
        [jnp.full((D,), scale, f32), jnp.ones((2 * D,), f32)])

    def stack(fn, dtype):
        return jnp.stack([fn(lp) for lp in layers]).astype(dtype)

    return {
        "w_patch": params["w_patch"].astype(bf),
        "b_patch": params["b_patch"].astype(f32),
        "cls": params["cls"].astype(f32),
        "pos": params["pos"].astype(f32),
        "wqkv": stack(lambda lp: lp["wqkv"] * qkv_scale[None, :], bf),   # (L, D, 3D)
        "bqkv": stack(lambda lp: lp["bqkv"] * qkv_scale[None, :], f32),  # (L, 1, 3D)
        "wo": stack(lambda lp: lp["wo"], bf),                            # (L, D, D)
        "w1": stack(lambda lp: lp["w1"], bf),                            # (L, D, F)
        "w2": stack(lambda lp: lp["w2"], bf),                            # (L, F, D)
        "bo": stack(lambda lp: lp["bo"], f32),
        "b1": stack(lambda lp: lp["b1"], f32),
        "b2": stack(lambda lp: lp["b2"], f32),
        "g1": stack(lambda lp: lp["g1"], f32),
        "be1": stack(lambda lp: lp["be1"], f32),
        "g2": stack(lambda lp: lp["g2"], f32),
        "be2": stack(lambda lp: lp["be2"], f32),
    }


# ----------------------------------------------------------------------------- wrapper

def _vmem_bytes_estimate(bt, N, K, Sp, D, F, H):
    """Rough per-step VMEM footprint: double-buffered streams + live intermediates."""
    M = bt * Sp
    bf, f32 = 2, 4
    streamed = 2 * (bt * N * K * bf                            # patch block
                    + (3 * D * D + D * D + 2 * D * F) * bf     # layer matmul weights
                    + (3 * D + 6 * D + F) * f32)               # biases / LN params
    resident = 2 * (K * D * bf + (2 + Sp) * D * f32)           # patch weight + cls/pos
    out_blk = 2 * bt * Sp * D * f32
    live = (M * 3 * D * (f32 + bf)                             # qkv + head-split copies
            + H * bt * Sp * Sp * (f32 + bf)                    # scores + probs
            + M * D * (3 * f32 + bf)                           # x, x1, attn/ctx
            + M * F * (f32 + bf))                              # h1
    return streamed + resident + out_blk + live


def _pick_block_b(B, max_b, est_fn, budget):
    for bt in range(min(B, max_b), 0, -1):
        if B % bt == 0 and est_fn(bt) <= budget:
            return bt
    return 1


def vit_backbone(x, packed, *, patch_size, num_heads, max_block_b=16):
    B, C, Himg, Wimg = x.shape
    P = patch_size
    Hp, Wp = Himg // P, Wimg // P
    N = Hp * Wp
    K = C * P * P
    D = packed["w_patch"].shape[1]
    F = packed["w1"].shape[2]
    L = packed["wqkv"].shape[0]
    H = num_heads
    S = N + 1
    Sp = ((S + 7) // 8) * 8                      # pad seq length to a sublane multiple

    # glue: patchify NCHW -> (B, N, C*P*P); per-patch ordering is (c, ph, pw),
    # matching Conv2d(stride=patch) followed by flatten(2).transpose(1, 2).
    patches = (x.reshape(B, C, Hp, P, Wp, P)
                 .transpose(0, 2, 4, 1, 3, 5)
                 .reshape(B, N, K)
                 .astype(jnp.bfloat16))
    pos_pad = jnp.pad(packed["pos"], ((0, Sp - S), (0, 0)))    # (Sp, D)

    est = lambda bt: _vmem_bytes_estimate(bt, N, K, Sp, D, F, H)
    Bt = _pick_block_b(B, max_block_b, est, 48 * 2**20)        # v7x-safe budget
    vmem_limit = int(min(max(2 * est(Bt), 32 * 2**20), 64 * 2**20))

    xmap = lambda b, l: (b, 0, 0)     # activations / patches: fixed per batch block
    wmap = lambda b, l: (l, 0, 0)     # per-layer weights: streamed / prefetched
    fix2 = lambda b, l: (0, 0)        # shared small params

    out = pl.pallas_call(
        functools.partial(vit_encoder_kernel, num_heads=H, seq_real=S),
        out_shape=jax.ShapeDtypeStruct((B, Sp, D), jnp.float32),
        grid=(B // Bt, L),
        in_specs=[
            pl.BlockSpec((Bt, N, K), xmap),       # patches (fetched once per batch blk)
            pl.BlockSpec((K, D), fix2),           # w_patch
            pl.BlockSpec((1, D), fix2),           # b_patch
            pl.BlockSpec((1, D), fix2),           # cls
            pl.BlockSpec((Sp, D), fix2),          # pos (padded)
            pl.BlockSpec((1, D, 3 * D), wmap),    # wqkv
            pl.BlockSpec((1, D, D), wmap),        # wo
            pl.BlockSpec((1, D, F), wmap),        # w1
            pl.BlockSpec((1, F, D), wmap),        # w2
            pl.BlockSpec((1, 1, 3 * D), wmap),    # bqkv
            pl.BlockSpec((1, 1, D), wmap),        # bo
            pl.BlockSpec((1, 1, F), wmap),        # b1
            pl.BlockSpec((1, 1, D), wmap),        # b2
            pl.BlockSpec((1, 1, D), wmap),        # g1
            pl.BlockSpec((1, 1, D), wmap),        # be1
            pl.BlockSpec((1, 1, D), wmap),        # g2
            pl.BlockSpec((1, 1, D), wmap),        # be2
        ],
        out_specs=pl.BlockSpec((Bt, Sp, D), xmap),   # resident carry across layer axis
        compiler_params=pltpu.CompilerParams(
            dimension_semantics=("parallel", "arbitrary"),
            vmem_limit_bytes=vmem_limit),
    )(patches, packed["w_patch"], packed["b_patch"], packed["cls"], pos_pad,
      packed["wqkv"], packed["wo"], packed["w1"], packed["w2"],
      packed["bqkv"], packed["bo"], packed["b1"], packed["b2"],
      packed["g1"], packed["be1"], packed["g2"], packed["be2"])
    return out[:, :S, :]


# ----------------------------------------------------------------------------- reference (pure JAX, f32)

def _ref_layer(x, lp, Hn):
    B, S, D = x.shape
    Dh = D // Hn
    qkv = x @ lp["wqkv"] + lp["bqkv"]
    q, k, v = jnp.split(qkv, 3, axis=-1)
    sh = lambda t: t.reshape(B, S, Hn, Dh).transpose(0, 2, 1, 3)
    q, k, v = sh(q), sh(k), sh(v)
    s = jnp.einsum("bhqd,bhkd->bhqk", q, k) / math.sqrt(Dh)
    p = jax.nn.softmax(s, axis=-1)
    a = jnp.einsum("bhqk,bhkd->bhqd", p, v).transpose(0, 2, 1, 3).reshape(B, S, D)
    a = a @ lp["wo"] + lp["bo"]
    x = _layernorm(x + a, lp["g1"], lp["be1"])
    ff = jnp.maximum(x @ lp["w1"] + lp["b1"], 0.0) @ lp["w2"] + lp["b2"]
    return _layernorm(x + ff, lp["g2"], lp["be2"])


def reference_forward(x, params, *, patch_size, num_heads):
    B, C, H, W = x.shape
    P = patch_size
    Hp, Wp = H // P, W // P
    N = Hp * Wp
    K = C * P * P
    D = params["w_patch"].shape[1]
    patches = x.reshape(B, C, Hp, P, Wp, P).transpose(0, 2, 4, 1, 3, 5).reshape(B, N, K)
    pe = patches @ params["w_patch"] + params["b_patch"]
    cls = jnp.broadcast_to(params["cls"][None], (B, 1, D))
    seq = jnp.concatenate([cls, pe], axis=1) + params["pos"][None]
    for lp in params["layers"]:
        seq = _ref_layer(seq, lp, num_heads)
    return seq


# ----------------------------------------------------------------------------- main

if __name__ == "__main__":
    # small, ViT-consistent shapes
    image_size, patch_size, in_channels = 16, 4, 3
    embed_dim, num_heads, num_layers, mlp_dim = 32, 4, 2, 64
    batch = 2

    key = jax.random.PRNGKey(0)
    kx, kp = jax.random.split(key)
    x = jax.random.normal(kx, (batch, in_channels, image_size, image_size), jnp.float32)
    params = init_params(kp, image_size=image_size, patch_size=patch_size,
                         in_channels=in_channels, embed_dim=embed_dim,
                         mlp_dim=mlp_dim, num_layers=num_layers)
    packed = pack_params(params, num_heads=num_heads)

    out = vit_backbone(x, packed, patch_size=patch_size, num_heads=num_heads)
    out = jax.block_until_ready(out)

    ref = reference_forward(x, params, patch_size=patch_size, num_heads=num_heads)
    num_patches = (image_size // patch_size) ** 2
    assert out.shape == (batch, num_patches + 1, embed_dim), out.shape
    # bf16 MXU operands (f32 accumulation/statistics) -> slightly looser tolerance than pure f32.
    assert jnp.allclose(out, ref, atol=2e-2, rtol=2e-2), float(jnp.max(jnp.abs(out - ref)))

    # TODO(synk): dropout layers are identity (inference/eval semantics); no RNG dropout in-kernel.
    print("KERNEL_OK")
</pallas_src>

<mosaic_0001>
module attributes {stable_mosaic.version = 11 : i64} {
  func.func @vit_encoder_kernel(%arg0: i32, %arg1: i32, %arg2: memref<2x16x48xbf16, #tpu.memory_space<vmem>>, %arg3: memref<48x32xbf16, #tpu.memory_space<vmem>>, %arg4: memref<1x32xf32, #tpu.memory_space<vmem>>, %arg5: memref<1x32xf32, #tpu.memory_space<vmem>>, %arg6: memref<24x32xf32, #tpu.memory_space<vmem>>, %arg7: memref<1x32x96xbf16, #tpu.memory_space<vmem>>, %arg8: memref<1x32x32xbf16, #tpu.memory_space<vmem>>, %arg9: memref<1x32x64xbf16, #tpu.memory_space<vmem>>, %arg10: memref<1x64x32xbf16, #tpu.memory_space<vmem>>, %arg11: memref<1x1x96xf32, #tpu.memory_space<vmem>>, %arg12: memref<1x1x32xf32, #tpu.memory_space<vmem>>, %arg13: memref<1x1x64xf32, #tpu.memory_space<vmem>>, %arg14: memref<1x1x32xf32, #tpu.memory_space<vmem>>, %arg15: memref<1x1x32xf32, #tpu.memory_space<vmem>>, %arg16: memref<1x1x32xf32, #tpu.memory_space<vmem>>, %arg17: memref<1x1x32xf32, #tpu.memory_space<vmem>>, %arg18: memref<1x1x32xf32, #tpu.memory_space<vmem>>, %arg19: memref<2x24x32xf32, #tpu.memory_space<vmem>>) attributes {dimension_semantics = [#tpu.dimension_semantics<parallel>, #tpu.dimension_semantics<arbitrary>], iteration_bounds = array<i64: 1, 2>, scalar_prefetch = 0 : i64, scratch_operands = 0 : i64, tpu.core_type = #tpu.core_type<tc>, window_params = [{transform_indices = @transform_0, window_bounds = array<i64: 2, 16, 48>}, {pipeline_mode = #tpu.pipeline_mode<synchronous>, transform_indices = @transform_1, window_bounds = array<i64: 48, 32>}, {pipeline_mode = #tpu.pipeline_mode<synchronous>, transform_indices = @transform_2, window_bounds = array<i64: 1, 32>}, {pipeline_mode = #tpu.pipeline_mode<synchronous>, transform_indices = @transform_3, window_bounds = array<i64: 1, 32>}, {pipeline_mode = #tpu.pipeline_mode<synchronous>, transform_indices = @transform_4, window_bounds = array<i64: 24, 32>}, {transform_indices = @transform_5, window_bounds = array<i64: 1, 32, 96>}, {transform_indices = @transform_6, window_bounds = array<i64: 1, 32, 32>}, {transform_indices = @transform_7, window_bounds = array<i64: 1, 32, 64>}, {transform_indices = @transform_8, window_bounds = array<i64: 1, 64, 32>}, {transform_indices = @transform_9, window_bounds = array<i64: 1, 1, 96>}, {transform_indices = @transform_10, window_bounds = array<i64: 1, 1, 32>}, {transform_indices = @transform_11, window_bounds = array<i64: 1, 1, 64>}, {transform_indices = @transform_12, window_bounds = array<i64: 1, 1, 32>}, {transform_indices = @transform_13, window_bounds = array<i64: 1, 1, 32>}, {transform_indices = @transform_14, window_bounds = array<i64: 1, 1, 32>}, {transform_indices = @transform_15, window_bounds = array<i64: 1, 1, 32>}, {transform_indices = @transform_16, window_bounds = array<i64: 1, 1, 32>}, {transform_indices = @transform_17, window_bounds = array<i64: 2, 24, 32>}]} {
    %c0_i32 = arith.constant 0 : i32
    %0 = arith.cmpi eq, %arg1, %c0_i32 : i32
    %1 = arith.extui %0 : i1 to i32
    %c0_i32_0 = arith.constant 0 : i32
    %2 = arith.cmpi ne, %1, %c0_i32_0 : i32
    scf.if %2 {
      %c0_61 = arith.constant 0 : index
      %c0_62 = arith.constant 0 : index
      %c0_63 = arith.constant 0 : index
      %133 = vector.load %arg2[%c0_61, %c0_62, %c0_63] : memref<2x16x48xbf16, #tpu.memory_space<vmem>>, vector<2x16x48xbf16>
      %134 = vector.shape_cast %133 : vector<2x16x48xbf16> to vector<32x48xbf16>
      %c0_64 = arith.constant 0 : index
      %c0_65 = arith.constant 0 : index
      %135 = vector.load %arg3[%c0_64, %c0_65] : memref<48x32xbf16, #tpu.memory_space<vmem>>, vector<48x32xbf16>
      %cst_66 = arith.constant dense<0.000000e+00> : vector<32x32xf32>
      %136 = tpu.matmul %134, %135, %cst_66 {dimension_numbers = #tpu.dot_dimension_numbers<[1], [0], [0], [1], [0, 0, 1, 1], [], []>} : vector<32x48xbf16>, vector<48x32xbf16>, vector<32x32xf32> -> vector<32x32xf32>
      %c0_67 = arith.constant 0 : index
      %c0_68 = arith.constant 0 : index
      %137 = vector.load %arg4[%c0_67, %c0_68] : memref<1x32xf32, #tpu.memory_space<vmem>>, vector<1x32xf32>
      %138 = vector.broadcast %137 : vector<1x32xf32> to vector<32x32xf32>
      %139 = arith.addf %136, %138 : vector<32x32xf32>
      %140 = vector.shape_cast %139 : vector<32x32xf32> to vector<2x16x32xf32>
      %c0_69 = arith.constant 0 : index
      %c0_70 = arith.constant 0 : index
      %141 = vector.load %arg5[%c0_69, %c0_70] : memref<1x32xf32, #tpu.memory_space<vmem>>, vector<1x32xf32>
      %142 = vector.shape_cast %141 : vector<1x32xf32> to vector<1x1x32xf32>
      %143 = vector.shape_cast %142 : vector<1x1x32xf32> to vector<1x1x32xf32>
      %144 = vector.broadcast %143 : vector<1x1x32xf32> to vector<2x1x32xf32>
      %cst_71 = arith.constant 0.000000e+00 : f32
      %145 = vector.broadcast %cst_71 : f32 to vector<2x7x32xf32>
      %146 = tpu.concatenate %144, %140, %145 in 1 : vector<2x1x32xf32>, vector<2x16x32xf32>, vector<2x7x32xf32> -> vector<2x24x32xf32>
      %c0_72 = arith.constant 0 : index
      %c0_73 = arith.constant 0 : index
      %147 = vector.load %arg6[%c0_72, %c0_73] : memref<24x32xf32, #tpu.memory_space<vmem>>, vector<24x32xf32>
      %148 = vector.shape_cast %147 : vector<24x32xf32> to vector<1x24x32xf32>
      %149 = vector.broadcast %148 : vector<1x24x32xf32> to vector<2x24x32xf32>
      %150 = arith.addf %146, %149 : vector<2x24x32xf32>
      %c0_74 = arith.constant 0 : index
      %c0_75 = arith.constant 0 : index
      %c0_76 = arith.constant 0 : index
      %151 = vector.load %arg19[%c0_74, %c0_75, %c0_76] : memref<2x24x32xf32, #tpu.memory_space<vmem>>, vector<2x24x32xf32>
      tpu.vector_store %arg19[%c0_74, %c0_75, %c0_76], %150 {strides = array<i32>} : memref<2x24x32xf32, #tpu.memory_space<vmem>>, vector<2x24x32xf32>,
    } else {
    }
    %c0 = arith.constant 0 : index
    %c0_1 = arith.constant 0 : index
    %c0_2 = arith.constant 0 : index
    %3 = vector.load %arg19[%c0, %c0_1, %c0_2] : memref<2x24x32xf32, #tpu.memory_space<vmem>>, vector<2x24x32xf32>
    %4 = vector.shape_cast %3 : vector<2x24x32xf32> to vector<48x32xf32>
    %5 = arith.truncf %4 : vector<48x32xf32> to vector<48x32xbf16>
    %c0_3 = arith.constant 0 : index
    %c0_4 = arith.constant 0 : index
    %c0_5 = arith.constant 0 : index
    %6 = vector.load %arg7[%c0_3, %c0_4, %c0_5] : memref<1x32x96xbf16, #tpu.memory_space<vmem>>, vector<1x32x96xbf16>
    %7 = vector.shape_cast %6 : vector<1x32x96xbf16> to vector<32x96xbf16>
    %cst = arith.constant dense<0.000000e+00> : vector<48x96xf32>
    %8 = tpu.matmul %5, %7, %cst {dimension_numbers = #tpu.dot_dimension_numbers<[1], [0], [0], [1], [0, 0, 1, 1], [], []>} : vector<48x32xbf16>, vector<32x96xbf16>, vector<48x96xf32> -> vector<48x96xf32>
    %c0_6 = arith.constant 0 : index
    %c0_7 = arith.constant 0 : index
    %c0_8 = arith.constant 0 : index
    %9 = vector.load %arg11[%c0_6, %c0_7, %c0_8] : memref<1x1x96xf32, #tpu.memory_space<vmem>>, vector<1x1x96xf32>
    %10 = vector.shape_cast %9 : vector<1x1x96xf32> to vector<1x96xf32>
    %11 = vector.broadcast %10 : vector<1x96xf32> to vector<48x96xf32>
    %12 = arith.addf %8, %11 : vector<48x96xf32>
    %13 = vector.extract_strided_slice %12 {offsets = [0, 0], sizes = [48, 32], strides = [1, 1]} : vector<48x96xf32> to vector<48x32xf32>
    %14 = arith.truncf %13 : vector<48x32xf32> to vector<48x32xbf16>
    %15 = vector.shape_cast %14 : vector<48x32xbf16> to vector<48x4x8xbf16>
    %16 = tpu.transpose %15, [1, 0, 2] : vector<48x4x8xbf16> -> vector<4x48x8xbf16>
    %17 = vector.shape_cast %16 : vector<4x48x8xbf16> to vector<8x24x8xbf16>
    %18 = vector.extract_strided_slice %12 {offsets = [0, 32], sizes = [48, 32], strides = [1, 1]} : vector<48x96xf32> to vector<48x32xf32>
    %19 = arith.truncf %18 : vector<48x32xf32> to vector<48x32xbf16>
    %20 = vector.shape_cast %19 : vector<48x32xbf16> to vector<48x4x8xbf16>
    %21 = tpu.transpose %20, [1, 0, 2] : vector<48x4x8xbf16> -> vector<4x48x8xbf16>
    %22 = vector.shape_cast %21 : vector<4x48x8xbf16> to vector<8x24x8xbf16>
    %23 = vector.extract_strided_slice %12 {offsets = [0, 64], sizes = [48, 32], strides = [1, 1]} : vector<48x96xf32> to vector<48x32xf32>
    %24 = arith.truncf %23 : vector<48x32xf32> to vector<48x32xbf16>
    %25 = vector.shape_cast %24 : vector<48x32xbf16> to vector<48x4x8xbf16>
    %26 = tpu.transpose %25, [1, 0, 2] : vector<48x4x8xbf16> -> vector<4x48x8xbf16>
    %27 = vector.shape_cast %26 : vector<4x48x8xbf16> to vector<8x24x8xbf16>
    "tpu.trace_start"() <{level = 10 : i32, message = "gqd,gkd->gqk"}> : () -> ()
    %cst_9 = arith.constant dense<0.000000e+00> : vector<8x24x24xf32>
    %28 = tpu.matmul %17, %22, %cst_9 {dimension_numbers = #tpu.dot_dimension_numbers<[2], [2], [1], [1], [0, 0, 0, 1, 1, 1], [0], [0]>} : vector<8x24x8xbf16>, vector<8x24x8xbf16>, vector<8x24x24xf32> -> vector<8x24x24xf32>
    "tpu.trace_stop"() : () -> ()
    %29 = tpu.iota {dimensions = array<i32: 2>} : vector<1x1x24xi32>
    %c17_i32 = arith.constant 17 : i32
    %30 = vector.broadcast %c17_i32 : i32 to vector<1x1x24xi32>
    %31 = arith.cmpi slt, %29, %30 : vector<1x1x24xi32>
    %cst_10 = arith.constant -1.000000e+30 : f32
    %32 = vector.shape_cast %31 : vector<1x1x24xi1> to vector<1x1x24xi1>
    %33 = vector.broadcast %32 : vector<1x1x24xi1> to vector<8x24x24xi1>
    %34 = vector.broadcast %cst_10 : f32 to vector<8x24x24xf32>
    %35 = arith.select %33, %28, %34 : vector<8x24x24xi1>, vector<8x24x24xf32>
    %cst_11 = arith.constant dense<0xFF800000> : vector<8x24xf32>
    %36 = vector.multi_reduction <maximumf>, %35, %cst_11 [2] : vector<8x24x24xf32> to vector<8x24xf32>
    %37 = vector.shape_cast %36 : vector<8x24xf32> to vector<8x24x1xf32>
    %38 = vector.broadcast %37 : vector<8x24x1xf32> to vector<8x24x24xf32>
    %39 = arith.subf %35, %38 : vector<8x24x24xf32>
    %40 = math.exp %39 : vector<8x24x24xf32>
    %cst_12 = arith.constant dense<0.000000e+00> : vector<8x24xf32>
    %41 = vector.multi_reduction <add>, %40, %cst_12 [2] : vector<8x24x24xf32> to vector<8x24xf32>
    %42 = vector.shape_cast %41 : vector<8x24xf32> to vector<8x24x1xf32>
    %43 = tpu.reciprocal %42 {approx = true} : vector<8x24x1xf32> -> vector<8x24x1xf32>
    %44 = vector.broadcast %43 : vector<8x24x1xf32> to vector<8x24x24xf32>
    %45 = arith.mulf %40, %44 : vector<8x24x24xf32>
    %46 = arith.truncf %45 : vector<8x24x24xf32> to vector<8x24x24xbf16>
    "tpu.trace_start"() <{level = 10 : i32, message = "gqk,gkd->gqd"}> : () -> ()
    %cst_13 = arith.constant dense<0.000000e+00> : vector<8x24x8xf32>
    %47 = tpu.matmul %46, %27, %cst_13 {dimension_numbers = #tpu.dot_dimension_numbers<[2], [1], [1], [2], [0, 0, 0, 1, 1, 2], [0], [0]>} : vector<8x24x24xbf16>, vector<8x24x8xbf16>, vector<8x24x8xf32> -> vector<8x24x8xf32>
    "tpu.trace_stop"() : () -> ()
    %48 = arith.truncf %47 : vector<8x24x8xf32> to vector<8x24x8xbf16>
    %49 = vector.shape_cast %48 : vector<8x24x8xbf16> to vector<4x48x8xbf16>
    %50 = tpu.transpose %49, [1, 0, 2] : vector<4x48x8xbf16> -> vector<48x4x8xbf16>
    %51 = vector.shape_cast %50 : vector<48x4x8xbf16> to vector<48x32xbf16>
    %c0_14 = arith.constant 0 : index
    %c0_15 = arith.constant 0 : index
    %c0_16 = arith.constant 0 : index
    %52 = vector.load %arg8[%c0_14, %c0_15, %c0_16] : memref<1x32x32xbf16, #tpu.memory_space<vmem>>, vector<1x32x32xbf16>
    %53 = vector.shape_cast %52 : vector<1x32x32xbf16> to vector<32x32xbf16>
    %cst_17 = arith.constant dense<0.000000e+00> : vector<48x32xf32>
    %54 = tpu.matmul %51, %53, %cst_17 {dimension_numbers = #tpu.dot_dimension_numbers<[1], [0], [0], [1], [0, 0, 1, 1], [], []>} : vector<48x32xbf16>, vector<32x32xbf16>, vector<48x32xf32> -> vector<48x32xf32>
    %c0_18 = arith.constant 0 : index
    %c0_19 = arith.constant 0 : index
    %c0_20 = arith.constant 0 : index
    %55 = vector.load %arg12[%c0_18, %c0_19, %c0_20] : memref<1x1x32xf32, #tpu.memory_space<vmem>>, vector<1x1x32xf32>
    %56 = vector.shape_cast %55 : vector<1x1x32xf32> to vector<1x32xf32>
    %57 = vector.broadcast %56 : vector<1x32xf32> to vector<48x32xf32>
    %58 = arith.addf %54, %57 : vector<48x32xf32>
    %59 = arith.addf %4, %58 : vector<48x32xf32>
    %c0_21 = arith.constant 0 : index
    %c0_22 = arith.constant 0 : index
    %c0_23 = arith.constant 0 : index
    %60 = vector.load %arg15[%c0_21, %c0_22, %c0_23] : memref<1x1x32xf32, #tpu.memory_space<vmem>>, vector<1x1x32xf32>
    %61 = vector.shape_cast %60 : vector<1x1x32xf32> to vector<1x32xf32>
    %c0_24 = arith.constant 0 : index
    %c0_25 = arith.constant 0 : index
    %c0_26 = arith.constant 0 : index
    %62 = vector.load %arg16[%c0_24, %c0_25, %c0_26] : memref<1x1x32xf32, #tpu.memory_space<vmem>>, vector<1x1x32xf32>
    %63 = vector.shape_cast %62 : vector<1x1x32xf32> to vector<1x32xf32>
    %cst_27 = arith.constant dense<0.000000e+00> : vector<48xf32>
    %64 = vector.multi_reduction <add>, %59, %cst_27 [1] : vector<48x32xf32> to vector<48xf32>
    %65 = vector.shape_cast %64 : vector<48xf32> to vector<48x1xf32>
    %cst_28 = arith.constant 3.200000e+01 : f32
    %66 = vector.broadcast %cst_28 : f32 to vector<48x1xf32>
    %67 = arith.divf %65, %66 : vector<48x1xf32>
    %68 = vector.broadcast %67 : vector<48x1xf32> to vector<48x32xf32>
    %69 = arith.subf %59, %68 : vector<48x32xf32>
    %70 = arith.mulf %69, %69 : vector<48x32xf32>
    %cst_29 = arith.constant dense<0.000000e+00> : vector<48xf32>
    %71 = vector.multi_reduction <add>, %70, %cst_29 [1] : vector<48x32xf32> to vector<48xf32>
    %72 = vector.shape_cast %71 : vector<48xf32> to vector<48x1xf32>
    %cst_30 = arith.constant 3.200000e+01 : f32
    %73 = vector.broadcast %cst_30 : f32 to vector<48x1xf32>
    %74 = arith.divf %72, %73 : vector<48x1xf32>
    %75 = vector.broadcast %67 : vector<48x1xf32> to vector<48x32xf32>
    %76 = arith.subf %59, %75 : vector<48x32xf32>
    %cst_31 = arith.constant 9.99999974E-6 : f32
    %77 = vector.broadcast %cst_31 : f32 to vector<48x1xf32>
    %78 = arith.addf %74, %77 : vector<48x1xf32>
    %79 = math.rsqrt %78 : vector<48x1xf32>
    %80 = vector.broadcast %79 : vector<48x1xf32> to vector<48x32xf32>
    %81 = arith.mulf %76, %80 : vector<48x32xf32>
    %82 = vector.broadcast %61 : vector<1x32xf32> to vector<48x32xf32>
    %83 = arith.mulf %81, %82 : vector<48x32xf32>
    %84 = vector.broadcast %63 : vector<1x32xf32> to vector<48x32xf32>
    %85 = arith.addf %83, %84 : vector<48x32xf32>
    %86 = arith.truncf %85 : vector<48x32xf32> to vector<48x32xbf16>
    %c0_32 = arith.constant 0 : index
    %c0_33 = arith.constant 0 : index
    %c0_34 = arith.constant 0 : index
    %87 = vector.load %arg9[%c0_32, %c0_33, %c0_34] : memref<1x32x64xbf16, #tpu.memory_space<vmem>>, vector<1x32x64xbf16>
    %88 = vector.shape_cast %87 : vector<1x32x64xbf16> to vector<32x64xbf16>
    %cst_35 = arith.constant dense<0.000000e+00> : vector<48x64xf32>
    %89 = tpu.matmul %86, %88, %cst_35 {dimension_numbers = #tpu.dot_dimension_numbers<[1], [0], [0], [1], [0, 0, 1, 1], [], []>} : vector<48x32xbf16>, vector<32x64xbf16>, vector<48x64xf32> -> vector<48x64xf32>
    %c0_36 = arith.constant 0 : index
    %c0_37 = arith.constant 0 : index
    %c0_38 = arith.constant 0 : index
    %90 = vector.load %arg13[%c0_36, %c0_37, %c0_38] : memref<1x1x64xf32, #tpu.memory_space<vmem>>, vector<1x1x64xf32>
    %91 = vector.shape_cast %90 : vector<1x1x64xf32> to vector<1x64xf32>
    %92 = vector.broadcast %91 : vector<1x64xf32> to vector<48x64xf32>
    %93 = arith.addf %89, %92 : vector<48x64xf32>
    %cst_39 = arith.constant 0.000000e+00 : f32
    %94 = vector.broadcast %cst_39 : f32 to vector<48x64xf32>
    %95 = arith.maximumf %93, %94 : vector<48x64xf32>
    %96 = arith.truncf %95 : vector<48x64xf32> to vector<48x64xbf16>
    %c0_40 = arith.constant 0 : index
    %c0_41 = arith.constant 0 : index
    %c0_42 = arith.constant 0 : index
    %97 = vector.load %arg10[%c0_40, %c0_41, %c0_42] : memref<1x64x32xbf16, #tpu.memory_space<vmem>>, vector<1x64x32xbf16>
    %98 = vector.shape_cast %97 : vector<1x64x32xbf16> to vector<64x32xbf16>
    %cst_43 = arith.constant dense<0.000000e+00> : vector<48x32xf32>
    %99 = tpu.matmul %96, %98, %cst_43 {dimension_numbers = #tpu.dot_dimension_numbers<[1], [0], [0], [1], [0, 0, 1, 1], [], []>} : vector<48x64xbf16>, vector<64x32xbf16>, vector<48x32xf32> -> vector<48x32xf32>
    %c0_44 = arith.constant 0 : index
    %c0_45 = arith.constant 0 : index
    %c0_46 = arith.constant 0 : index
    %100 = vector.load %arg14[%c0_44, %c0_45, %c0_46] : memref<1x1x32xf32, #tpu.memory_space<vmem>>, vector<1x1x32xf32>
    %101 = vector.shape_cast %100 : vector<1x1x32xf32> to vector<1x32xf32>
    %102 = vector.broadcast %101 : vector<1x32xf32> to vector<48x32xf32>
    %103 = arith.addf %99, %102 : vector<48x32xf32>
    %104 = arith.addf %85, %103 : vector<48x32xf32>
    %c0_47 = arith.constant 0 : index
    %c0_48 = arith.constant 0 : index
    %c0_49 = arith.constant 0 : index
    %105 = vector.load %arg17[%c0_47, %c0_48, %c0_49] : memref<1x1x32xf32, #tpu.memory_space<vmem>>, vector<1x1x32xf32>
    %106 = vector.shape_cast %105 : vector<1x1x32xf32> to vector<1x32xf32>
    %c0_50 = arith.constant 0 : index
    %c0_51 = arith.constant 0 : index
    %c0_52 = arith.constant 0 : index
    %107 = vector.load %arg18[%c0_50, %c0_51, %c0_52] : memref<1x1x32xf32, #tpu.memory_space<vmem>>, vector<1x1x32xf32>
    %108 = vector.shape_cast %107 : vector<1x1x32xf32> to vector<1x32xf32>
    %cst_53 = arith.constant dense<0.000000e+00> : vector<48xf32>
    %109 = vector.multi_reduction <add>, %104, %cst_53 [1] : vector<48x32xf32> to vector<48xf32>
    %110 = vector.shape_cast %109 : vector<48xf32> to vector<48x1xf32>
    %cst_54 = arith.constant 3.200000e+01 : f32
    %111 = vector.broadcast %cst_54 : f32 to vector<48x1xf32>
    %112 = arith.divf %110, %111 : vector<48x1xf32>
    %113 = vector.broadcast %112 : vector<48x1xf32> to vector<48x32xf32>
    %114 = arith.subf %104, %113 : vector<48x32xf32>
    %115 = arith.mulf %114, %114 : vector<48x32xf32>
    %cst_55 = arith.constant dense<0.000000e+00> : vector<48xf32>
    %116 = vector.multi_reduction <add>, %115, %cst_55 [1] : vector<48x32xf32> to vector<48xf32>
    %117 = vector.shape_cast %116 : vector<48xf32> to vector<48x1xf32>
    %cst_56 = arith.constant 3.200000e+01 : f32
    %118 = vector.broadcast %cst_56 : f32 to vector<48x1xf32>
    %119 = arith.divf %117, %118 : vector<48x1xf32>
    %120 = vector.broadcast %112 : vector<48x1xf32> to vector<48x32xf32>
    %121 = arith.subf %104, %120 : vector<48x32xf32>
    %cst_57 = arith.constant 9.99999974E-6 : f32
    %122 = vector.broadcast %cst_57 : f32 to vector<48x1xf32>
    %123 = arith.addf %119, %122 : vector<48x1xf32>
    %124 = math.rsqrt %123 : vector<48x1xf32>
    %125 = vector.broadcast %124 : vector<48x1xf32> to vector<48x32xf32>
    %126 = arith.mulf %121, %125 : vector<48x32xf32>
    %127 = vector.broadcast %106 : vector<1x32xf32> to vector<48x32xf32>
    %128 = arith.mulf %126, %127 : vector<48x32xf32>
    %129 = vector.broadcast %108 : vector<1x32xf32> to vector<48x32xf32>
    %130 = arith.addf %128, %129 : vector<48x32xf32>
    %131 = vector.shape_cast %130 : vector<48x32xf32> to vector<2x24x32xf32>
    %c0_58 = arith.constant 0 : index
    %c0_59 = arith.constant 0 : index
    %c0_60 = arith.constant 0 : index
    %132 = vector.load %arg19[%c0_58, %c0_59, %c0_60] : memref<2x24x32xf32, #tpu.memory_space<vmem>>, vector<2x24x32xf32>
    tpu.vector_store %arg19[%c0_58, %c0_59, %c0_60], %131 {strides = array<i32>} : memref<2x24x32xf32, #tpu.memory_space<vmem>>, vector<2x24x32xf32>,
    return
  }
  func.func @transform_0(%arg0: i32, %arg1: i32) -> (i32, i32, i32) {
    %c0_i32 = arith.constant 0 : i32
    %c0_i32_0 = arith.constant 0 : i32
    %c0_i32_1 = arith.constant 0 : i32
    return %arg0, %c0_i32, %c0_i32_0 : i32, i32, i32
  }
  func.func @transform_1(%arg0: i32, %arg1: i32) -> (i32, i32) {
    %c0_i32 = arith.constant 0 : i32
    %c0_i32_0 = arith.constant 0 : i32
    %c0_i32_1 = arith.constant 0 : i32
    return %c0_i32, %c0_i32_0 : i32, i32
  }
  func.func @transform_2(%arg0: i32, %arg1: i32) -> (i32, i32) {
    %c0_i32 = arith.constant 0 : i32
    %c0_i32_0 = arith.constant 0 : i32
    %c0_i32_1 = arith.constant 0 : i32
    return %c0_i32, %c0_i32_0 : i32, i32
  }
  func.func @transform_3(%arg0: i32, %arg1: i32) -> (i32, i32) {
    %c0_i32 = arith.constant 0 : i32
    %c0_i32_0 = arith.constant 0 : i32
    %c0_i32_1 = arith.constant 0 : i32
    return %c0_i32, %c0_i32_0 : i32, i32
  }
  func.func @transform_4(%arg0: i32, %arg1: i32) -> (i32, i32) {
    %c0_i32 = arith.constant 0 : i32
    %c0_i32_0 = arith.constant 0 : i32
    %c0_i32_1 = arith.constant 0 : i32
    return %c0_i32, %c0_i32_0 : i32, i32
  }
  func.func @transform_5(%arg0: i32, %arg1: i32) -> (i32, i32, i32) {
    %c0_i32 = arith.constant 0 : i32
    %c0_i32_0 = arith.constant 0 : i32
    %c0_i32_1 = arith.constant 0 : i32
    return %arg1, %c0_i32, %c0_i32_0 : i32, i32, i32
  }
  func.func @transform_6(%arg0: i32, %arg1: i32) -> (i32, i32, i32) {
    %c0_i32 = arith.constant 0 : i32
    %c0_i32_0 = arith.constant 0 : i32
    %c0_i32_1 = arith.constant 0 : i32
    return %arg1, %c0_i32, %c0_i32_0 : i32, i32, i32
  }
  func.func @transform_7(%arg0: i32, %arg1: i32) -> (i32, i32, i32) {
    %c0_i32 = arith.constant 0 : i32
    %c0_i32_0 = arith.constant 0 : i32
    %c0_i32_1 = arith.constant 0 : i32
    return %arg1, %c0_i32, %c0_i32_0 : i32, i32, i32
  }
  func.func @transform_8(%arg0: i32, %arg1: i32) -> (i32, i32, i32) {
    %c0_i32 = arith.constant 0 : i32
    %c0_i32_0 = arith.constant 0 : i32
    %c0_i32_1 = arith.constant 0 : i32
    return %arg1, %c0_i32, %c0_i32_0 : i32, i32, i32
  }
  func.func @transform_9(%arg0: i32, %arg1: i32) -> (i32, i32, i32) {
    %c0_i32 = arith.constant 0 : i32
    %c0_i32_0 = arith.constant 0 : i32
    %c0_i32_1 = arith.constant 0 : i32
    return %arg1, %c0_i32, %c0_i32_0 : i32, i32, i32
  }
  func.func @transform_10(%arg0: i32, %arg1: i32) -> (i32, i32, i32) {
    %c0_i32 = arith.constant 0 : i32
    %c0_i32_0 = arith.constant 0 : i32
    %c0_i32_1 = arith.constant 0 : i32
    return %arg1, %c0_i32, %c0_i32_0 : i32, i32, i32
  }
  func.func @transform_11(%arg0: i32, %arg1: i32) -> (i32, i32, i32) {
    %c0_i32 = arith.constant 0 : i32
    %c0_i32_0 = arith.constant 0 : i32
    %c0_i32_1 = arith.constant 0 : i32
    return %arg1, %c0_i32, %c0_i32_0 : i32, i32, i32
  }
  func.func @transform_12(%arg0: i32, %arg1: i32) -> (i32, i32, i32) {
    %c0_i32 = arith.constant 0 : i32
    %c0_i32_0 = arith.constant 0 : i32
    %c0_i32_1 = arith.constant 0 : i32
    return %arg1, %c0_i32, %c0_i32_0 : i32, i32, i32
  }
  func.func @transform_13(%arg0: i32, %arg1: i32) -> (i32, i32, i32) {
    %c0_i32 = arith.constant 0 : i32
    %c0_i32_0 = arith.constant 0 : i32
    %c0_i32_1 = arith.constant 0 : i32
    return %arg1, %c0_i32, %c0_i32_0 : i32, i32, i32
  }
  func.func @transform_14(%arg0: i32, %arg1: i32) -> (i32, i32, i32) {
    %c0_i32 = arith.constant 0 : i32
    %c0_i32_0 = arith.constant 0 : i32
    %c0_i32_1 = arith.constant 0 : i32
    return %arg1, %c0_i32, %c0_i32_0 : i32, i32, i32
  }
  func.func @transform_15(%arg0: i32, %arg1: i32) -> (i32, i32, i32) {
    %c0_i32 = arith.constant 0 : i32
    %c0_i32_0 = arith.constant 0 : i32
    %c0_i32_1 = arith.constant 0 : i32
    return %arg1, %c0_i32, %c0_i32_0 : i32, i32, i32
  }
  func.func @transform_16(%arg0: i32, %arg1: i32) -> (i32, i32, i32) {
    %c0_i32 = arith.constant 0 : i32
    %c0_i32_0 = arith.constant 0 : i32
    %c0_i32_1 = arith.constant 0 : i32
    return %arg1, %c0_i32, %c0_i32_0 : i32, i32, i32
  }
  func.func @transform_17(%arg0: i32, %arg1: i32) -> (i32, i32, i32) {
    %c0_i32 = arith.constant 0 : i32
    %c0_i32_0 = arith.constant 0 : i32
    %c0_i32_1 = arith.constant 0 : i32
    return %arg0, %c0_i32, %c0_i32_0 : i32, i32, i32
  }
}

</mosaic_0001>

<bundles_post_ra>
// kernel: tpu_custom_call.1
= control target key start
LH: loop header
LB: loop body
LE: loop exit
PB: predicated region body
PF: predicated region fallthrough
CT: control target
= control target key end

     0   :  { %s9484_s0 = inlined_call_operand.hbm [shape: bf16[2,16,48], index: 0, kind: input, shape index: {}]   ;;  %s9485_s1 = inlined_call_operand.vmem [shape: bf16[48,32], index: 1, kind: input, shape index: {}]   ;;  %s9486_s2 = inlined_call_operand.hbm [shape: f32[1,32], index: 2, kind: input, shape index: {}]   ;;  %s9487_s3 = inlined_call_operand.hbm [shape: f32[1,32], index: 3, kind: input, shape index: {}]   ;;  %s9488_s4 = inlined_call_operand.vmem [shape: f32[24,32], index: 4, kind: input, shape index: {}]   ;;  %s9489_s5 = inlined_call_operand.vmem [shape: bf16[2,32,96], index: 5, kind: input, shape index: {}]   ;;  %s9490_s6 = inlined_call_operand.vmem [shape: bf16[2,32,32], index: 6, kind: input, shape index: {}]   ;;  %s9491_s7 = inlined_call_operand.vmem [shape: bf16[2,32,64], index: 7, kind: input, shape index: {}]   ;;  %s9492_s8 = inlined_call_operand.vmem [shape: bf16[2,64,32], index: 8, kind: input, shape index: {}]   ;;  %s9493_s9 = inlined_call_operand.vmem [shape: f32[2,1,96], index: 9, kind: input, shape index: {}]   ;;  %s9494_s10 = inlined_call_operand.vmem [shape: f32[2,1,32], index: 10, kind: input, shape index: {}]   ;;  %s9495_s11 = inlined_call_operand.vmem [shape: f32[2,1,64], index: 11, kind: input, shape index: {}]   ;;  %s9496_s12 = inlined_call_operand.vmem [shape: f32[2,1,32], index: 12, kind: input, shape index: {}]   ;;  %s9497_s13 = inlined_call_operand.vmem [shape: f32[2,1,32], index: 13, kind: input, shape index: {}]   ;;  %s9498_s14 = inlined_call_operand.vmem [shape: f32[2,1,32], index: 14, kind: input, shape index: {}]   ;;  %s9499_s15 = inlined_call_operand.vmem [shape: f32[2,1,32], index: 15, kind: input, shape index: {}]   ;;  %s9500_s16 = inlined_call_operand.vmem [shape: f32[2,1,32], index: 16, kind: input, shape index: {}]   ;;  %s9501_s17 = inlined_call_operand.hbm [shape: f32[2,24,32], index: 17, kind: output, shape index: {}]  }
   0x1   :  { %9523 = sst [smem:[#allocation21_spill]] %s9484_s0 }
   0x2   :  { %9524 = sst [smem:[#allocation22_spill]] %s9485_s1 }
   0x3   :  { %9525 = sst [smem:[#allocation23_spill]] %s9486_s2 }
   0x4   :  { %9526 = sst [smem:[#allocation24_spill]] %s9487_s3 }
   0x5   :  { %9527 = sst [smem:[#allocation25_spill]] %s9488_s4 }
   0x6   :  { %9528 = sst [smem:[#allocation26_spill]] %s9489_s5 }
   0x7   :  { %9529 = sst [smem:[#allocation27_spill]] %s9490_s6 }
   0x8   :  { %9530 = sst [smem:[#allocation28_spill]] %s9491_s7 }
   0x9   :  { %9531 = sst [smem:[#allocation29_spill]] %s9492_s8 }
   0xa   :  { %9532 = sst [smem:[#allocation30_spill]] %s9499_s15 }
   0xb   :  { %9533 = sst [smem:[#allocation31_spill]] %s9500_s16 }
   0xc   :  { %9534 = sst [smem:[#allocation32_spill]] %s9501_s17 }
   0xd   :  { %22 = vsyncpa [#allocation3], 0 }
   0xe   :  { %23 = vsyncpa [#allocation6], 0 }
   0xf   :  { %24 = vsyncpa [#allocation4], 0  ;;  %s7569_s24 = smov 0   ;;  %s7571_s25 = smov 0  }
  0x10   :  { %s7573_s26 = smov 0  }
  0x11 LB: > { %9535 = sst [smem:[#allocation12_spill]] %s7453_s25  ;;  %s7459_s27 = smov [#allocation5]   ;;  %s7457_s26 = sphi %s7573_s26, %s30_s26   ;;  %s7453_s25 = sphi %s7571_s25, %s9596_s25   ;;  %s7449_s24 = sphi %s7569_s24, %s9595_s24  }
  0x12   : > { %9536 = sst [smem:[#allocation13_spill]] %s7457_s26  ;;  %s528_s28 = sshll.u32 %s7459_s27, 4  ;;  %s529_s28 = int_to_ptr.vmem [resolvable:$true] %s528_s28 }
  0x13   : > { %s9504_s29 = sadd.s32 4294967295, %s7457_s26   ;;  %p6545_p0 = scmp.ge.s32.totalorder %s7457_s26, 1 }
  0x14   : > { %p495_p1 = scmp.lt.s32.totalorder %s7457_s26, 3  ;;  %p7589_p2 = scmp.eq.s32.totalorder %s9504_s29, 0 }
  0x15   : > { %s39_s18 = sadd.s32 1, %s7453_s25  ;;  %s7460_s20 = smov [#allocation2]  }
  0x16   : > { %s9537_s0 = scalar_select %p7589_p2, 1, 0 }
  0x17   : > { %p7593_p3 = pnand %p6545_p0, %p495_p1  ;;  %p7606_p6 = scmp.ge.s32.totalorder %s39_s18, 2 }
  0x18   : > { %s511_s21 = sshll.u32 %s7460_s20, 4  ;;  %s9541_s2 = sld [smem:[#allocation23_spill]]  ;;  %s7610_s21 = int_to_ptr.vmem [resolvable:$true] %s511_s21 }
  0x19   : > { %s9538_s30 = scalar_select %p7593_p3, 1, 0 }
  0x1a   : > { %p7110_p4 = pneg %p7593_p3 }
  0x1b   : > { %s9540_s1 = scalar_select %p7606_p6, 1, 0 }
  0x1c   : > { %p7602_p5 = pnand %p7589_p2, %p7110_p4 }
  0x1e   : > { %s7313_s27 = scalar_lea.hbm %s9541_s2, 16  ;;  %p7620_p8 = pneg %p7602_p5 }
  0x1f   : > { %p7314_p7 = scmp.ne.s32.totalorder %s9541_s2, %s7313_s27  ;;  %p7320_p11 = scmp.lt.u32.totalorder %s7313_s27, %s9541_s2 }
  0x21   : > { %p7316_p9 = pnand %p7620_p8, %p7314_p7 }
  0x23   : > { %p7317_p10 = pneg %p7316_p9 }
  0x25   : > { %p7322_p12 = pnand %p7320_p11, %p7317_p10 }
  0x27   : > { %7325 = shalt.err (!%p7322_p12)
}
  0x28   : > { %s7326_s22 = scalar_lea.vmem %s529_s28, 16  ;;  %s7333_s25 = scalar_lea.vmem %s529_s28, 32 }
  0x29   : > { %p7327_p13 = scmp.ne.s32.totalorder %s529_s28, %s7326_s22  ;;  %p7334_p4 = scmp.lt.s32.totalorder %s529_s28, %s529_s28 }
  0x2a   : > { %p7335_p2 = scmp.lt.s32.totalorder %s7333_s25, %s7326_s22 }
  0x2b   : > { %p7329_p0 = pnand %p7327_p13, %p7620_p8 }
  0x2c   : > { %p7336_p3 = por %p7335_p2, %p7334_p4 }
  0x2d   : > { %p7330_p1 = pneg %p7329_p0 }
  0x2f   : > { %p7337_p6 = pnand %p7336_p3, %p7330_p1 }
  0x31   : > { %7340 = shalt.err (!%p7337_p6)
}
  0x32   : > { %7116 = dma.hbm_to_vmem [thread:$0]  (!%p7602_p5), %s9541_s2, 16, %s529_s28, [#allocation6]  }
  0x33   : > { %p9543_p7 = scmp.ne.s32.totalorder %s9540_s1, 0  ;;  %s9545_s20 = sld [smem:[#allocation21_spill]] }
  0x35   : > { %s9598_s18 = smov (%p9543_p7, %s39_s18), 0 }
  0x36   : > { %9544 = sst [smem:[#allocation14_spill]] %s9598_s18 }
  0x39   : > { %s7341_s4 = scalar_lea.hbm %s9545_s20, 256 }
  0x3a   : > { %p7342_p2 = scmp.ne.s32.totalorder %s9545_s20, %s7341_s4  ;;  %p7348_p9 = scmp.lt.u32.totalorder %s7341_s4, %s9545_s20 }
  0x3c   : > { %p7344_p3 = pnand %p7342_p2, %p7620_p8 }
  0x3e   : > { %p7345_p6 = pneg %p7344_p3 }
  0x40   : > { %p7350_p10 = pnand %p7348_p9, %p7345_p6 }
  0x42   : > { %7353 = shalt.err (!%p7350_p10)
}
  0x43   : > { %s7354_s28 = scalar_lea.vmem %s7610_s21, 256  ;;  %p7362_p0 = scmp.lt.s32.totalorder %s7610_s21, %s7610_s21 }
  0x44   : > { %p7355_p11 = scmp.ne.s32.totalorder %s7610_s21, %s7354_s28  ;;  %p7363_p1 = scmp.lt.s32.totalorder %s7354_s28, %s7354_s28 }
  0x46   : > { %p7357_p12 = pnand %p7355_p11, %p7620_p8  ;;  %p7364_p4 = por %p7363_p1, %p7362_p0 }
  0x48   : > { %p7358_p13 = pneg %p7357_p12 }
  0x4a   : > { %p7365_p7 = pnand %p7364_p4, %p7358_p13 }
  0x4c   : > { %7368 = shalt.err (!%p7365_p7)
}
  0x4d   : > { %s7461_s16 = smov 64   ;;  %s7462_s4 = smov 4  }
  0x4e   : > { %7113 = dma.hbm_to_vmem [thread:$0]  (!%p7602_p5), %s9545_s20, 256, %s7610_s21, [#allocation3], %s7461_s16, %s7461_s16, %s7462_s4  }
  0x4f   : > { %s7463_s29 = smov [#allocation7]   ;;  %s9546_s3 = sld [smem:[#allocation24_spill]] }
  0x50   : > { %s539_s23 = sshll.u32 %s7463_s29, 4  ;;  %s540_s23 = int_to_ptr.vmem [resolvable:$true] %s539_s23 }
  0x55   : > { %s7369_s22 = scalar_lea.hbm %s9546_s3, 16 }
  0x56   : > { %p7370_p2 = scmp.ne.s32.totalorder %s9546_s3, %s7369_s22  ;;  %p7376_p9 = scmp.lt.u32.totalorder %s7369_s22, %s9546_s3 }
  0x58   : > { %p7372_p3 = pnand %p7370_p2, %p7620_p8 }
  0x5a   : > { %p7373_p6 = pneg %p7372_p3 }
  0x5c   : > { %p7378_p10 = pnand %p7376_p9, %p7373_p6 }
  0x5e   : > { %7381 = shalt.err (!%p7378_p10)
}
  0x5f   : > { %s7382_s21 = scalar_lea.vmem %s540_s23, 16  ;;  %s7389_s16 = scalar_lea.vmem %s540_s23, 32 }
  0x60   : > { %p7383_p11 = scmp.ne.s32.totalorder %s540_s23, %s7382_s21  ;;  %p7390_p0 = scmp.lt.s32.totalorder %s540_s23, %s540_s23 }
  0x61   : > { %p7391_p1 = scmp.lt.s32.totalorder %s7389_s16, %s7382_s21 }
  0x62   : > { %p7385_p12 = pnand %p7383_p11, %p7620_p8 }
  0x63   : > { %p7392_p4 = por %p7391_p1, %p7390_p0 }
  0x64   : > { %p7386_p13 = pneg %p7385_p12 }
  0x66   : > { %p7393_p7 = pnand %p7392_p4, %p7386_p13 }
  0x68   : > { %7396 = shalt.err (!%p7393_p7)
}
  0x69   : > { %7119 = dma.hbm_to_vmem [thread:$0]  (!%p7602_p5), %s9546_s3, 16, %s540_s23, [#allocation6]  }
  0x6a   : > { %p9547_p2 = scmp.ne.s32.totalorder %s9538_s30, 0 }
  0x6c   : > { %635 = sbr.rel (%p9547_p2) target bundleno = 3199 (0xc7f), region = 88 }
  0x73   : > { %p9548_p3 = scmp.ne.s32.totalorder %s9537_s0, 0 }
  0x75   : > { %7436 = dma.done.wait (%p9548_p3), [#allocation3], 256  }
  0x76   : > { %7438 = vsyncadd (%p9548_p3), [#allocation3], 4294967040 }
  0x77   : > { %7440 = dma.done.wait (%p9548_p3), [#allocation6], 32  }
  0x78   : > { %7442 = vsyncadd (%p9548_p3), [#allocation6], 4294967264  ;;  %p730_p8 = scmp.lt.s32.totalorder %s7449_s24, 1  ;;  %s9549_s5 = sld [smem:[#allocation26_spill]] }
  0x79   : > { %s9550_s6 = sld [smem:[#allocation27_spill]]  ;;  %s9551_s7 = sld [smem:[#allocation28_spill]] }
  0x7a   : > { %s7693_s2 = scalar_select %p730_p8, %s7449_s24, 1 }
  0x7b   : > { %s9552_s8 = sld [smem:[#allocation29_spill]]  ;;  %s9553_s18 = sld [smem:[#allocation30_spill]] }
  0x7c   : > { %s6745_s17 = sshll.u32 %s7693_s2, 4  ;;  %s6748_s30 = sshll.u32 %s7693_s2, 5 }
  0x7d   : > { %s767_s16 = scalar_lea.vmem %s9498_s14, %s7693_s2  ;;  %s9554_s3 = sld [smem:[#allocation31_spill]] }
  0x7e   : > { %s7700_s19 = scalar_lea.vmem %s9549_s5, %s6745_s17  ;;  %s758_s5 = scalar_lea.vmem %s9495_s11, %s7693_s2 }
  0x7f   : > { %s7705_s23 = scalar_lea.vmem %s9550_s6, %s6745_s17  ;;  %s7710_s22 = scalar_lea.vmem %s9551_s7, %s6745_s17 }
  0x80   : > { %p6562_p5 = scmp.ne.s32.totalorder %s7449_s24, 0 }
  0x81   : > { %s7715_s21 = scalar_lea.vmem %s9552_s8, %s6748_s30  ;;  %s764_s30 = scalar_lea.vmem %s9497_s13, %s7693_s2  ;;  %vm825_vm0 = vcmask (!%p6562_p5), 392192   ;;  %v7175_v2 = vld [vmem:[#allocation2] sm:$0xff] (!%p6562_p5)   ;;  %v7176_v4 = vld [vmem:[#allocation2 + $0x8] sm:$0xff] (!%p6562_p5)   ;;  %v6563_v5 = vld [vmem:[#allocation5] ss:$0 sm:$0xff] (!%p6562_p5)  ;;  %vm886_vm1 = vcmask (!%p6562_p5), 1040384  }
  0x82   : > { %s770_s0 = scalar_lea.vmem %s9553_s18, %s7693_s2  ;;  %779 = sbr.rel (%p6562_p5) target bundleno = 373 (0x175), region = 104  ;;  %6870 = vmatprep.mubr.msk.bf16.mxu0 (!%p6562_p5), %vm825_vm0, %v7175_v2  ;;  %v881_v9 = vld [vmem:[#allocation7] sm:$0x1] (!%p6562_p5)  ;;  %vm912_vm2 = vcmask (!%p6562_p5), 261120  }
  0x83   : > { %s773_s29 = scalar_lea.vmem %s9554_s3, %s7693_s2  ;;  %s9555_s27 = sld [smem:[#allocation22_spill]] (!%p6562_p5) }
  0x84   : > { %s9556_s1 = sld [smem:[#allocation25_spill]] (!%p6562_p5) }
  0x89   : > { %v7172_v0 = vld [vmem:[%s9555_s27] sm:$0xff]   ;;  %v7173_v1 = vld [vmem:[%s9555_s27 + $0x8] sm:$0xff]   ;;  %v7174_v3 = vld [vmem:[%s9555_s27 + $0x10] sm:$0xff]  }
  0x8a   : > { %6864 = vmatprep.subr.bf16.mxu0 %v7172_v0  ;;  %v903_v13 = vld [vmem:[%s9556_s1] sm:$0xff]  ;;  %v904_v20 = vld [vmem:[%s9556_s1 + $0x8] sm:$0xff]  ;;  %v905_v21 = vld [vmem:[%s9556_s1 + $0x10] sm:$0xff] }
  0x8b   : > { %6865 = vmatpush3.bf16.msra.mxu0 %v7172_v0 }
  0x8c   : > { %6866 = vmatprep.subr.bf16.mxu0 %v7173_v1 }
  0x8f   : > { %6867 = vmatpush3.bf16.msra.mxu0 %v7173_v1 }
  0x90   : > { %6868 = vmatprep.subr.bf16.mxu0 %v7174_v3 }
  0x93   : > { %6869 = vmatpush3.bf16.msra.mxu0 %v7174_v3 }
  0x96   : > { %6871 = vmatmul.mubr.msk.bf16.vlgmr.msra.gmra.mrb[0].mxu0 %vm825_vm0, %v7176_v4 }
 0x169   : > { %v6872_v6 = vpop.f32.mrb[0].mxu0 }
 0x16a   : > { %v875_v7 = vadd.f32 %v6872_v6, %v6563_v5  ;;  %v866_v8 = vpop.f32.mrb[1].mxu0 }
 0x16b   : > { %v867_v10 = vadd.f32 %v6563_v5, %v866_v8  ;;  %v6873_v11 = vpop.f32.mrb[2].mxu0 }
 0x16c   : > { %v890_v12 = vrot.slane %v875_v7, 7  ;;  %v878_v14 = vadd.f32 %v6873_v11, %v6563_v5  ;;  %v869_v15 = vpop.f32.mrb[3].mxu0 }
 0x16d   : > { %v887_v16 = vrot.slane %v867_v10, 7  ;;  %v870_v17 = vadd.f32 %v6563_v5, %v869_v15 }
 0x16e   : > { %v900_v18 = vsel %vm886_vm1, %v881_v9, %v890_v12  ;;  %v891_v19 = vrot.slane %v878_v14, 7 }
 0x16f   : > { %v909_v22 = vadd.f32 %v903_v13, %v900_v18  ;;  %v899_v23 = vsel %vm886_vm1, %v881_v9, %v887_v16  ;;  %v888_v24 = vrot.slane %v870_v17, 7 }
 0x170   : > { %v906_v25 = vadd.f32 %v903_v13, %v899_v23  ;;  %v892_v26 = vsel %vm886_vm1, %v890_v12, %v891_v19  ;;  %v902_v27 = vsel %vm886_vm1, %v891_v19, 0.0 }
 0x171   : > { %916 = vst.msk [vmem:[#allocation8 + $0x18] sm:$0xff] %vm912_vm2, %v909_v22  ;;  %v910_v28 = vadd.f32 %v904_v20, %v892_v26  ;;  %v911_v29 = vadd.f32 %v905_v21, %v902_v27  ;;  %v889_v30 = vsel %vm886_vm1, %v887_v16, %v888_v24  ;;  %v901_v31 = vsel %vm886_vm1, %v888_v24, 0.0 }
 0x172   : > { %913 = vst.msk [vmem:[#allocation8] sm:$0xff] %vm912_vm2, %v906_v25  ;;  %v907_v32 = vadd.f32 %v904_v20, %v889_v30  ;;  %v908_v33 = vadd.f32 %v905_v21, %v901_v31 }
 0x173   : > { %917 = vst.msk [vmem:[#allocation8 + $0x20] sm:$0xff] %vm912_vm2, %v910_v28  ;;  %918 = vst.msk [vmem:[#allocation8 + $0x28] sm:$0xff] %vm912_vm2, %v911_v29 }
 0x174   : > { %914 = vst.msk [vmem:[#allocation8 + $0x8] sm:$0xff] %vm912_vm2, %v907_v32  ;;  %915 = vst.msk [vmem:[#allocation8 + $0x10] sm:$0xff] %vm912_vm2, %v908_v33 }
 0x175 PF: > { %v7177_v34 = vld [vmem:[%s7700_s19] sm:$0xff]   ;;  %v9514_v35 = vmov 0.0   ;;  %v7178_v36 = vld [vmem:[%s7700_s19 + $0x8] sm:$0xff]   ;;  %vm7465_vm3 = vmmov 0   ;;  %vm951_vm4 = vcmask 261120   ;;  %s9557_s17 = scalar_lea.vmem %s9493_s9, %s7693_s2  ;;  %s7466_s6 = smov 104   ;;  %v9516_v6 = vlaneseq }
 0x176   : > { %6874 = vmatprep.subr.bf16.mxu1 %v9514_v35  ;;  %6878 = vmatprep.mubr.msk.bf16.mxu1 %vm7465_vm3, %v9514_v35  ;;  %v6571_v46 = vld [vmem:[%s9557_s17] ss:$0 sm:$0xff]  ;;  %s7467_s25 = smov 120   ;;  %s7468_s7 = smov 112   ;;  %v7470_v4 = vmov 1983009808  }
 0x177   : > { %6875 = vmatpush3.bf16.msra.mxu1 %v7177_v34  ;;  %s7469_s15 = smov 96   ;;  %v1098_v5 = vunpack.c.l.s4 %v7470_v4  ;;  %v1101_v8 = vshrl.u32 %v9516_v6, 7  ;;  %v7471_v9 = vmov 1934713408   ;;  %v9512_v11 = vmov 0   ;;  %s7473_s8 = smov 64  }
 0x178   : > { %6876 = vmatprep.subr.bf16.mxu1 %v9514_v35  ;;  %v922_v41 = vld [vmem:[#allocation8 + $0x18] sm:$0xff]  ;;  %v1129_v10 = vunpack.c.l.s4 %v7471_v9  ;;  %v7822_v12 = vpack.i.b16 %v9512_v11, %v9512_v11  ;;  %vm3512_vm5 = vcmask 64512   ;;  %vm4340_vm6 = vcmask 1043456   ;;  %s7475_s24 = smov 16   ;;  %s7476_s28 = smov 24  }
 0x179   : > { %v919_v37 = vld [vmem:[#allocation8] sm:$0xff]  ;;  %v1099_v7 = vunpack.c.0.s8 %v1098_v5  ;;  %vm4050_vm8 = vcmask 195584   ;;  %vm5807_vm9 = vcmask 130048   ;;  %s9585_s3 = scalar_lea.vmem %s9494_s10, %s7693_s2  ;;  %vm6157_vm10 = vcmask 523264  }
 0x17a   : > { %v923_v43 = vld [vmem:[#allocation8 + $0x20] sm:$0xff]  ;;  %v924_v44 = vld [vmem:[#allocation8 + $0x28] sm:$0xff]  ;;  %9558 = vst [vmem:[#allocation15_spill] sm:$0xff] %v7822_v12  ;;  %v1130_v20 = vunpack.c.0.s8 %v1129_v10 }
 0x17b   : > { %v920_v38 = vld [vmem:[#allocation8 + $0x8] sm:$0xff]  ;;  %6877 = vmatpush3.bf16.msra.mxu1 %v7178_v36  ;;  %v921_v40 = vld [vmem:[#allocation8 + $0x10] sm:$0xff]  ;;  %v927_v45 = vpack.c.bf16 %v924_v44, %v923_v43  ;;  %v7834_v18 = vsub.s32 %v1099_v7, %v1101_v8 }
 0x17c   : > { %v925_v39 = vpack.c.bf16 %v920_v38, %v919_v37  ;;  %v926_v42 = vpack.c.bf16 %v922_v41, %v921_v40  ;;  %v7849_v28 = vsub.s32 %v1130_v20, %v1101_v8 }
 0x17e   : > { %6879 = vmatmul.mubr.msk.bf16.vlgmr.msra.gmra.mrb[0].mxu1 %vm951_vm4, %v925_v39 }
 0x17f   : > { %6882 = vmatprep.mubr.msk.bf16.mxu1 %vm7465_vm3, %v9514_v35 }
 0x186   : > { %6883 = vmatmul.mubr.msk.bf16.gmra.mrb[4].mxu1 %vm951_vm4, %v926_v42 }
 0x187   : > { %6886 = vmatprep.mubr.msk.bf16.mxu1 %vm7465_vm3, %v9514_v35 }
 0x18e   : > { %6887 = vmatmul.mubr.msk.bf16.gmra.mrb[8].mxu1 %vm951_vm4, %v927_v45 }
 0x251   : > { %v995_v47 = vpop.f32.mrb[0].mxu1 }
 0x252   : > { %v6880_v48 = vpop.f32.mrb[1].mxu1  ;;  %v996_v50 = vadd.f32 %v6571_v46, %v995_v47 }
 0x253   : > { %v998_v49 = vpop.f32.mrb[2].mxu1 }
 0x254   : > { %v999_v51 = vadd.f32 %v6571_v46, %v998_v49  ;;  %v6881_v52 = vpop.f32.mrb[3].mxu1 }
 0x256   : > { %v7798_v53 = vpack.c.bf16 %v999_v51, %v996_v50 }
 0x258   : > { %1036 = vrot.lane.b32.xlu1 %v7798_v53, %s7466_s6  ;;  %1024 = vrot.lane.b32.xlu0 %v7798_v53, %s7467_s25  ;;  %v1046_v15 = vshrl.u32 %v7798_v53, 16 }
 0x259   : > { %v1003_v54 = vpop.f32.mrb[4].mxu1 }
 0x25a   : > { %v6884_v55 = vpop.f32.mrb[5].mxu1  ;;  %v1004_v57 = vadd.f32 %v6571_v46, %v1003_v54 }
 0x25b   : > { %v1006_v56 = vpop.f32.mrb[6].mxu1 }
 0x25c   : > { %v1007_v58 = vadd.f32 %v6571_v46, %v1006_v56  ;;  %1030 = vrot.lane.b32.xlu0 %v7798_v53, %s7468_s7  ;;  %v6885_v59 = vpop.f32.mrb[7].mxu1 }
 0x25e   : > { %v7803_v60 = vpack.c.bf16 %v1007_v58, %v1004_v57 }
 0x260   : > { %1026 = vrot.lane.b32.xlu1 %v7803_v60, %s7467_s25  ;;  %v1068_v36 = vshrl.u32 %v7803_v60, 16 }
 0x261   : > { %v1011_v61 = vpop.f32.mrb[8].mxu1 }
 0x262   : > { %v6888_v62 = vpop.f32.mrb[9].mxu1  ;;  %v1012_v0 = vadd.f32 %v6571_v46, %v1011_v61 }
 0x263   : > { %v1014_v63 = vpop.f32.mrb[10].mxu1 }
 0x264   : > { %v1015_v1 = vadd.f32 %v6571_v46, %v1014_v63  ;;  %1032 = vrot.lane.b32.xlu1 %v7803_v60, %s7468_s7  ;;  %v6889_v2 = vpop.f32.mrb[11].mxu1 }
 0x266   : > { %v7807_v3 = vpack.c.bf16 %v1015_v1, %v1012_v0 }
 0x268   : > { %1038 = vrot.lane.b32.xlu1 %v7803_v60, %s7466_s6  ;;  %1028 = vrot.lane.b32.xlu0 %v7807_v3, %s7467_s25  ;;  %v1084_v56 = vshrl.u32 %v7807_v3, 16 }
 0x26c   : > { %1852 = vrot.lane.b32.xlu1 %v7798_v53, %s7469_s15  ;;  %1034 = vrot.lane.b32.xlu0 %v7807_v3, %s7468_s7 }
 0x270   : > { %1854 = vrot.lane.b32.xlu1 %v7803_v60, %s7469_s15  ;;  %1040 = vrot.lane.b32.xlu0 %v7807_v3, %s7466_s6  ;;  %s9586_s6 = scalar_lea.vmem %s9496_s12, %s7693_s2  ;;  %s9589_s2 = sld [smem:[#allocation13_spill]] }
 0x274   : > { %1856 = vrot.lane.b32.xlu0 %v7807_v3, %s7469_s15 }
 0x276   : > { %s9590_s4 = sadd.s32 4294967295, %s9589_s2  }
 0x277   : > { %p9446_p6 = scmp.eq.s32.totalorder %s9590_s4, 1 }
 0x2ca   : > { %v7824_v13 = vpop.permute.xlu0 %1024  ;;  %v7832_v17 = vpop.permute.xlu1 %1036 }
 0x2cb   : > { %v1044_v14 = vpack.i.b16 %v7824_v13, %v7798_v53  ;;  %v1047_v16 = vshrl.u32 %v7824_v13, 16  ;;  %1858 = vrot.lane.b32.xlu0 %v7824_v13, %s7469_s15  ;;  %v1055_v25 = vshrl.u32 %v7832_v17, 16 }
 0x2cd   : > { %v1048_v19 = vpack.i.b16 %v1047_v16, %v1046_v15  ;;  %v1096_v21 = vcombine.high %v1044_v14, %v7822_v12  ;;  %v1103_v27 = vrot.slane %v1044_v14, %v7834_v18 }
 0x2ce   : > { %v7837_v22 = vpop.permute.xlu0 %1030 }
 0x2cf   : > { %v1162_v23 = vcombine.high %v1048_v19, %v7822_v12  ;;  %v1052_v24 = vpack.i.b16 %v7832_v17, %v7837_v22  ;;  %1864 = vrot.lane.b32.xlu1 %v7837_v22, %s7469_s15  ;;  %v1054_v26 = vshrl.u32 %v7837_v22, 16  ;;  %1870 = vrot.lane.b32.xlu0 %v7832_v17, %s7469_s15  ;;  %v1110_v31 = vrot.slane %v1096_v21, %v7834_v18 }
 0x2d0   : > { %v1169_v32 = vrot.slane %v1048_v19, %v7834_v18 }
 0x2d1   : > { %v1111_v29 = vcombine.high %v1052_v24, %v7822_v12  ;;  %v1118_v30 = vrot.slane %v1052_v24, %v7834_v18  ;;  %v1056_v33 = vpack.i.b16 %v1055_v25, %v1054_v26  ;;  %v1176_v37 = vrot.slane %v1162_v23, %v7834_v18 }
 0x2d2   : > { %v7855_v34 = vpop.permute.xlu1 %1026 }
 0x2d3   : > { %v1125_v38 = vrot.slane %v1111_v29, %v7834_v18  ;;  %v1126_v39 = vcombine.low %v1103_v27, %v1118_v30  ;;  %v1127_v40 = vcombine.high %v1103_v27, %v1118_v30  ;;  %1860 = vrot.lane.b32.xlu1 %v7855_v34, %s7469_s15  ;;  %v1177_v41 = vcombine.high %v1056_v33, %v7822_v12 }
 0x2d4   : > { %v1184_v42 = vrot.slane %v1056_v33, %v7834_v18  ;;  %v1066_v43 = vpack.i.b16 %v7855_v34, %v7803_v60  ;;  %v1069_v44 = vshrl.u32 %v7855_v34, 16 }
 0x2d5   : > { %v1134_v45 = vrot.slane %v1126_v39, %v7849_v28  ;;  %v1141_v46 = vrot.slane %v1127_v40, %v7849_v28  ;;  %v1142_v47 = vcombine.low %v1110_v31, %v1125_v38  ;;  %v1143_v48 = vcombine.high %v1110_v31, %v1125_v38 }
 0x2d6   : > { %v1191_v49 = vrot.slane %v1177_v41, %v7834_v18  ;;  %v1192_v50 = vcombine.low %v1169_v32, %v1184_v42  ;;  %v1193_v51 = vcombine.high %v1169_v32, %v1184_v42  ;;  %v1070_v52 = vpack.i.b16 %v1069_v44, %v1068_v36  ;;  %v7870_v54 = vpop.permute.xlu1 %1032 }
 0x2d7   : > { %v7873_v55 = vrot.slane %v1142_v47, %v7849_v28  ;;  %1866 = vrot.lane.b32.xlu1 %v7870_v54, %s7469_s15  ;;  %v7879_v57 = vrot.slane %v1143_v48, %v7849_v28  ;;  %v1492_v61 = vcombine.low %v1134_v45, %v1141_v46  ;;  %v6577_v0 = vcombine.high %v1134_v45, %v1141_v46 }
 0x2d8   : > { %v1208_v58 = vcombine.low %v1176_v37, %v1191_v49  ;;  %v1209_v59 = vcombine.high %v1176_v37, %v1191_v49  ;;  %v7882_v62 = vrot.slane %v1192_v50, %v7849_v28  ;;  %v7885_v63 = vrot.slane %v1193_v51, %v7849_v28 }
 0x2d9   : > { %v1228_v1 = vcombine.high %v1066_v43, %v7822_v12  ;;  %v1235_v4 = vrot.slane %v1066_v43, %v7834_v18  ;;  %v1294_v5 = vcombine.high %v1070_v52, %v7822_v12  ;;  %v1301_v7 = vrot.slane %v1070_v52, %v7834_v18 }
 0x2da   : > { %v7889_v2 = vrot.slane %v1208_v58, %v7849_v28  ;;  %v7894_v8 = vpop.permute.xlu1 %1038  ;;  %v7896_v9 = vpop.permute.xlu0 %1028  ;;  %v7899_v10 = vrot.slane %v1209_v59, %v7849_v28  ;;  %v1076_v14 = vshrl.u32 %v7870_v54, 16  ;;  %v1499_v23 = vrot.slane %v1492_v61, %v7834_v18 }
 0x2db   : > { %9559 = vst [vmem:[#allocation16_spill] sm:$0xff] %v7896_v9  ;;  %v1074_v15 = vpack.i.b16 %v7894_v8, %v7870_v54  ;;  %v1077_v16 = vshrl.u32 %v7894_v8, 16  ;;  %1872 = vrot.lane.b32.xlu1 %v7894_v8, %s7469_s15  ;;  %1862 = vrot.lane.b32.xlu0 %v7896_v9, %s7469_s15  ;;  %v1242_v19 = vrot.slane %v1228_v1, %v7834_v18  ;;  %v1085_v21 = vshrl.u32 %v7896_v9, 16 }
 0x2dc   : > { %v1082_v20 = vpack.i.b16 %v7896_v9, %v7807_v3  ;;  %v1508_v27 = vcombine.low %v7873_v55, %v7879_v57  ;;  %v7919_v29 = vrot.slane %v1294_v5, %v7834_v18  ;;  %v1507_v33 = vrot.slane %v6577_v0, %v7834_v18 }
 0x2dd   : > { %v1078_v24 = vpack.i.b16 %v1077_v16, %v1076_v14  ;;  %v1243_v25 = vcombine.high %v1074_v15, %v7822_v12  ;;  %v1250_v26 = vrot.slane %v1074_v15, %v7834_v18  ;;  %v1086_v30 = vpack.i.b16 %v1085_v21, %v1084_v56 }
 0x2de   : > { %v1360_v31 = vcombine.high %v1082_v20, %v7822_v12  ;;  %v7922_v32 = vpop.permute.xlu0 %1034  ;;  %v1367_v41 = vrot.slane %v1082_v20, %v7834_v18  ;;  %v6578_v43 = vcombine.high %v7873_v55, %v7879_v57  ;;  %v1515_v47 = vrot.slane %v1508_v27, %v7834_v18 }
 0x2df   : > { %9560 = vst [vmem:[#allocation17_spill] sm:$0xff] %v7922_v32  ;;  %v1257_v36 = vrot.slane %v1243_v25, %v7834_v18  ;;  %v1258_v37 = vcombine.low %v1235_v4, %v1250_v26  ;;  %v1259_v38 = vcombine.high %v1235_v4, %v1250_v26  ;;  %v1309_v39 = vcombine.high %v1078_v24, %v7822_v12 }
 0x2e0   : > { %2686 = vrot.lane.b32.xlu1 %v7824_v13, %s7473_s8  ;;  %v1316_v40 = vrot.slane %v1078_v24, %v7834_v18  ;;  %v1426_v42 = vcombine.high %v1086_v30, %v7822_v12  ;;  %1868 = vrot.lane.b32.xlu0 %v7922_v32, %s7469_s15  ;;  %v1374_v46 = vrot.slane %v1360_v31, %v7834_v18  ;;  %v1092_v0 = vshrl.u32 %v7922_v32, 16 }
 0x2e1   : > { %v1274_v44 = vcombine.low %v1242_v19, %v1257_v36  ;;  %v1275_v45 = vcombine.high %v1242_v19, %v1257_v36  ;;  %v7939_v13 = vrot.slane %v1309_v39, %v7834_v18  ;;  %v1433_v50 = vrot.slane %v1086_v30, %v7834_v18 }
 0x2e2   : > { %v1324_v48 = vcombine.low %v1301_v7, %v1316_v40  ;;  %v1325_v49 = vcombine.high %v1301_v7, %v1316_v40  ;;  %v7942_v51 = vpop.permute.xlu0 %1040  ;;  %v7945_v52 = vrot.slane %v1258_v37, %v7849_v28  ;;  %v7948_v55 = vrot.slane %v1259_v38, %v7849_v28 }
 0x2e3   : > { %9561 = vst [vmem:[#allocation18_spill] sm:$0xff] %v7942_v51  ;;  %v7951_v56 = vrot.slane %v1274_v44, %v7849_v28  ;;  %v1440_v57 = vrot.slane %v1426_v42, %v7834_v18  ;;  %v7957_v58 = vrot.slane %v1275_v45, %v7849_v28  ;;  %v1340_v1 = vcombine.low %v7919_v29, %v7939_v13 }
 0x2e4   : > { %2692 = vrot.lane.b32.xlu1 %v7837_v22, %s7473_s8  ;;  %v7960_v59 = vrot.slane %v1324_v48, %v7849_v28  ;;  %v7963_v61 = vrot.slane %v1325_v49, %v7849_v28  ;;  %1874 = vrot.lane.b32.xlu0 %v7942_v51, %s7469_s15  ;;  %v1090_v22 = vpack.i.b16 %v7942_v51, %v7922_v32  ;;  %v1093_v4 = vshrl.u32 %v7942_v51, 16 }
 0x2e5   : > { %v1523_v5 = vrot.slane %v6578_v43, %v7834_v18  ;;  %v1524_v7 = vcombine.low %v1499_v23, %v1507_v33  ;;  %v1542_v14 = vcombine.low %v7882_v62, %v7885_v63  ;;  %v6579_v15 = vcombine.high %v7882_v62, %v7885_v63 }
 0x2e6   : > { %v1558_v16 = vcombine.low %v7889_v2, %v7899_v10  ;;  %v1341_v19 = vcombine.high %v7919_v29, %v7939_v13  ;;  %v1094_v20 = vpack.i.b16 %v1093_v4, %v1092_v0  ;;  %v1375_v21 = vcombine.high %v1090_v22, %v7822_v12 }
 0x2e7   : > { %v1382_v24 = vrot.slane %v1090_v22, %v7834_v18  ;;  %v7987_v23 = vrot.slane %v1524_v7, %v7849_v28  ;;  %v1532_v25 = vcombine.low %v1515_v47, %v1523_v5  ;;  %v1549_v62 = vrot.slane %v1542_v14, %v7834_v18 }
 0x2e8   : > { %2682 = vrot.lane.b32.xlu1 %v7803_v60, %s7473_s8  ;;  %v1557_v63 = vrot.slane %v6579_v15, %v7834_v18  ;;  %2680 = vrot.lane.b32.xlu0 %v7798_v53, %s7473_s8  ;;  %v1389_v26 = vrot.slane %v1375_v21, %v7834_v18  ;;  %v1441_v30 = vcombine.high %v1094_v20, %v7822_v12 }
 0x2e9   : > { %v1390_v27 = vcombine.low %v1367_v41, %v1382_v24  ;;  %v1391_v29 = vcombine.high %v1367_v41, %v1382_v24  ;;  %v1448_v31 = vrot.slane %v1094_v20, %v7834_v18  ;;  %v7997_v60 = vrot.slane %v1532_v25, %v7849_v28 }
 0x2ea   : > { %v1565_v33 = vrot.slane %v1558_v16, %v7834_v18  ;;  %v6580_v36 = vcombine.high %v7889_v2, %v7899_v10  ;;  %v1406_v38 = vcombine.low %v1374_v46, %v1389_v26  ;;  %v1407_v39 = vcombine.high %v1374_v46, %v1389_v26 }
 0x2eb   : > { %v1398_v37 = vrot.slane %v1390_v27, %v7849_v28  ;;  %v1405_v53 = vrot.slane %v1391_v29, %v7849_v28  ;;  %v1455_v40 = vrot.slane %v1441_v30, %v7834_v18  ;;  %v1456_v41 = vcombine.low %v1433_v50, %v1448_v31 }
 0x2ec   : > { %2694 = vrot.lane.b32.xlu1 %v7870_v54, %s7473_s8  ;;  %v1457_v42 = vcombine.high %v1433_v50, %v1448_v31  ;;  %v8009_v43 = vcombine.low %v7987_v23, %v7997_v60  ;;  %2698 = vrot.lane.b32.xlu0 %v7832_v17, %s7473_s8  ;;  %v1414_v2 = vrot.slane %v1406_v38, %v7849_v28 }
 0x2ed   : > { %v1421_v10 = vrot.slane %v1407_v39, %v7849_v28  ;;  %v1573_v44 = vrot.slane %v6580_v36, %v7834_v18  ;;  %v1574_v45 = vcombine.low %v1549_v62, %v1557_v63  ;;  %v1464_v54 = vrot.slane %v1456_v41, %v7849_v28 }
 0x2ee   : > { %v1471_v46 = vrot.slane %v1457_v42, %v7849_v28  ;;  %v1472_v47 = vcombine.low %v1440_v57, %v1455_v40  ;;  %v1473_v13 = vcombine.high %v1440_v57, %v1455_v40  ;;  %v1348_v17 = vrot.slane %v1340_v1, %v7849_v28 }
 0x2ef   : > { %v8019_v48 = vrot.slane %v1574_v45, %v7849_v28  ;;  %v1582_v49 = vcombine.low %v1565_v33, %v1573_v44  ;;  %v1355_v50 = vrot.slane %v1341_v19, %v7849_v28  ;;  %v1592_v57 = vcombine.low %v7945_v52, %v7948_v55 }
 0x2f0   : > { %2684 = vrot.lane.b32.xlu1 %v7807_v3, %s7473_s8  ;;  %2688 = vrot.lane.b32.xlu0 %v7855_v34, %s7473_s8  ;;  %v1480_v0 = vrot.slane %v1472_v47, %v7849_v28  ;;  %v1487_v22 = vrot.slane %v1473_v13, %v7849_v28  ;;  %v6581_v4 = vcombine.high %v7945_v52, %v7948_v55 }
 0x2f1   : > { %v8034_v5 = vrot.slane %v1582_v49, %v7849_v28  ;;  %v1608_v3 = vcombine.low %v7951_v56, %v7957_v58  ;;  %v6582_v1 = vcombine.high %v7951_v56, %v7957_v58  ;;  %v1642_v34 = vcombine.low %v7960_v59, %v7963_v61 }
 0x2f2   : > { %v1599_v7 = vrot.slane %v1592_v57, %v7834_v18  ;;  %v1607_v14 = vrot.slane %v6581_v4, %v7834_v18  ;;  %v6583_v15 = vcombine.high %v7960_v59, %v7963_v61  ;;  %v1658_v52 = vcombine.low %v1348_v17, %v1355_v50 }
 0x2f3   : > { %v8048_v55 = vcombine.low %v8019_v48, %v8034_v5  ;;  %v1615_v16 = vrot.slane %v1608_v3, %v7834_v18  ;;  %v1623_v19 = vrot.slane %v6582_v1, %v7834_v18  ;;  %v1649_v56 = vrot.slane %v1642_v34, %v7834_v18 }
 0x2f4   : > { %2700 = vrot.lane.b32.xlu0 %v7894_v8, %s7473_s8  ;;  %v1624_v58 = vcombine.low %v1599_v7, %v1607_v14  ;;  %v1657_v20 = vrot.slane %v6583_v15, %v7834_v18  ;;  %v1665_v21 = vrot.slane %v1658_v52, %v7834_v18  ;;  %v6584_v59 = vcombine.high %v1348_v17, %v1355_v50 }
 0x2f5   : > { %v1794_v61 = vpack.i.b16 %v8048_v55, %v8009_v43  ;;  %v1632_v24 = vcombine.low %v1615_v16, %v1623_v19  ;;  %v1692_v25 = vcombine.low %v1398_v37, %v1405_v53  ;;  %v6585_v62 = vcombine.high %v1398_v37, %v1405_v53 }
 0x2f6   : > { %v1631_v63 = vrot.slane %v1624_v58, %v7849_v28  ;;  %v1673_v26 = vrot.slane %v6584_v59, %v7834_v18  ;;  %v1674_v27 = vcombine.low %v1649_v56, %v1657_v20  ;;  %v1708_v29 = vcombine.low %v1414_v2, %v1421_v10 }
 0x2f7   : > { %6894 = vmatprep.mubr.msk.bf16.mxu1 %vm3512_vm5, %v1794_v61  ;;  %v1639_v8 = vrot.slane %v1632_v24, %v7849_v28  ;;  %v1699_v30 = vrot.slane %v1692_v25, %v7834_v18  ;;  %v1707_v31 = vrot.slane %v6585_v62, %v7834_v18  ;;  %v6586_v33 = vcombine.high %v1414_v2, %v1421_v10 }
 0x2f8   : > { %v1681_v36 = vrot.slane %v1674_v27, %v7849_v28  ;;  %v1682_v38 = vcombine.low %v1665_v21, %v1673_v26  ;;  %v1715_v37 = vrot.slane %v1708_v29, %v7834_v18  ;;  %v1742_v53 = vcombine.low %v1464_v54, %v1471_v46 }
 0x2f9   : > { %v1640_v39 = vcombine.low %v1631_v63, %v1639_v8  ;;  %v1641_v40 = vcombine.high %v1631_v63, %v1639_v8  ;;  %v1723_v41 = vrot.slane %v6586_v33, %v7834_v18  ;;  %v1724_v42 = vcombine.low %v1699_v30, %v1707_v31 }
 0x2fa   : > { %v1689_v44 = vrot.slane %v1682_v38, %v7849_v28  ;;  %v1749_v45 = vrot.slane %v1742_v53, %v7834_v18  ;;  %v6587_v47 = vcombine.high %v1464_v54, %v1471_v46  ;;  %v1758_v13 = vcombine.low %v1480_v0, %v1487_v22 }
 0x2fb   : > { %v1732_v49 = vcombine.low %v1715_v37, %v1723_v41  ;;  %v6588_v17 = vcombine.high %v1480_v0, %v1487_v22  ;;  %v1731_v4 = vrot.slane %v1724_v42, %v7849_v28  ;;  %v1807_v7 = vshrl.u32 %v1640_v39, 16 }
 0x2fc   : > { %v1690_v2 = vcombine.low %v1681_v36, %v1689_v44  ;;  %v1691_v10 = vcombine.high %v1681_v36, %v1689_v44  ;;  %v1757_v50 = vrot.slane %v6587_v47, %v7834_v18  ;;  %v1765_v57 = vrot.slane %v1758_v13, %v7834_v18  ;;  %v1853_v13 = vpop.permute.xlu1 %1852 }
 0x2fd   : > { %v1739_v3 = vrot.slane %v1732_v49, %v7849_v28  ;;  %v1773_v1 = vrot.slane %v6588_v17, %v7834_v18  ;;  %v1795_v16 = vshrl.u32 %v8009_v43, 16  ;;  %v1796_v58 = vshrl.u32 %v8048_v55, 16  ;;  %v8126_v49 = vpop.permute.xlu0 %1856 }
 0x2fe   : > { %v1774_v34 = vcombine.low %v1749_v45, %v1757_v50  ;;  %v1808_v14 = vshrl.u32 %v1690_v2, 16  ;;  %v8075_v15 = vpack.i.b16 %v1691_v10, %v1641_v40  ;;  %v1814_v52 = vshrl.u32 %v1691_v10, 16 }
 0x2ff   : > { %v1741_v54 = vcombine.high %v1731_v4, %v1739_v3  ;;  %v1782_v46 = vcombine.low %v1765_v57, %v1773_v1  ;;  %v1740_v0 = vcombine.low %v1731_v4, %v1739_v3  ;;  %v8085_v20 = vcombine.high %v7987_v23, %v7997_v60 }
 0x300   : > { %v8077_v22 = vpack.i.b16 %v1808_v14, %v1807_v7  ;;  %v1781_v19 = vrot.slane %v1774_v34, %v7849_v28  ;;  %v8087_v21 = vpack.i.b16 %v1690_v2, %v1640_v39  ;;  %v1813_v59 = vshrl.u32 %v1641_v40, 16  ;;  %v1855_v17 = vpop.permute.xlu1 %1854 }
 0x301   : > { %v1789_v56 = vrot.slane %v1782_v46, %v7849_v28  ;;  %v8091_v61 = vcombine.high %v8019_v48, %v8034_v5  ;;  %v8093_v43 = vpack.i.b16 %v1796_v58, %v1795_v16  ;;  %v1801_v55 = vshrl.u32 %v8085_v20, 16 }
 0x302   : > { %v8099_v23 = vpack.i.b16 %v1814_v52, %v1813_v59  ;;  %v1819_v26 = vshrl.u32 %v1740_v0, 16  ;;  %v1831_v48 = vunpack.c.h.b16 %v8087_v21  ;;  %v1825_v8 = vshrl.u32 %v1741_v54, 16 }
 0x303   : > { %v1790_v24 = vcombine.low %v1781_v19, %v1789_v56  ;;  %v1791_v25 = vcombine.high %v1781_v19, %v1789_v56  ;;  %v1802_v63 = vshrl.u32 %v8091_v61, 16  ;;  %v1843_v36 = vunpack.c.h.b16 %v8075_v15 }
 0x304   : > { %v1837_v39 = vunpack.c.h.b16 %v8077_v22  ;;  %v1849_v42 = vunpack.c.h.b16 %v8099_v23  ;;  %v1880_v14 = vshrl.u32 %v1853_v13, 16 }
 0x305   : > { %v8101_v60 = vpack.i.b16 %v1790_v24, %v1740_v0  ;;  %v1820_v27 = vshrl.u32 %v1790_v24, 16  ;;  %v8103_v29 = vpack.i.b16 %v1791_v25, %v1741_v54  ;;  %v8106_v5 = vpack.i.b16 %v1802_v63, %v1801_v55 }
 0x306   : > { %v1826_v30 = vshrl.u32 %v1791_v25, 16  ;;  %v1896_v24 = vshrl.u32 %v1855_v17, 16  ;;  %v1912_v25 = vshrl.u32 %v8126_v49, 16 }
 0x307   : > { %v1832_v31 = vunpack.c.l.b16 %v8101_v60  ;;  %v8109_v33 = vpack.i.b16 %v1820_v27, %v1819_v26  ;;  %v1844_v38 = vunpack.c.l.b16 %v8103_v29 }
 0x308   : > { %v8113_v37 = vpack.i.b16 %v1826_v30, %v1825_v8 }
 0x309   : > { %v3573_v53 = vpack.c.b16 %v1832_v31, %v1831_v48  ;;  %v1838_v40 = vunpack.c.l.b16 %v8109_v33  ;;  %v8117_v41 = vpack.c.b16 %v1844_v38, %v1843_v36 }
 0x30a   : > { %9562 = vst [vmem:[#allocation19_spill] sm:$0xff] %v8113_v37  ;;  %v1850_v44 = vunpack.c.l.b16 %v8113_v37 }
 0x30b   : > { %6902 = vmatprep.mubr.msk.bf16.mxu0 %vm3512_vm5, %v3573_v53  ;;  %v8122_v45 = vpack.c.b16 %v1838_v40, %v1837_v39 }
 0x30c   : > { %v8124_v47 = vpack.c.b16 %v1850_v44, %v1849_v42 }
 0x30e   : > { %9563 = vst [vmem:[#allocation20_spill] sm:$0xff] %v8124_v47 }
 0x33d   : > { %v1859_v2 = vpop.permute.xlu0 %1858 }
 0x33e   : > { %v1878_v3 = vpack.i.b16 %v1859_v2, %v1853_v13  ;;  %v1881_v1 = vshrl.u32 %v1859_v2, 16 }
 0x340   : > { %v1882_v0 = vpack.i.b16 %v1881_v1, %v1880_v14  ;;  %v1924_v52 = vcombine.high %v1878_v3, %v7822_v12  ;;  %v1931_v56 = vrot.slane %v1878_v3, %v7834_v18 }
 0x341   : > { %v1865_v10 = vpop.permute.xlu1 %1864  ;;  %v1871_v50 = vpop.permute.xlu0 %1870 }
 0x342   : > { %v1886_v57 = vpack.i.b16 %v1871_v50, %v1865_v10  ;;  %v1888_v34 = vshrl.u32 %v1865_v10, 16  ;;  %v1889_v7 = vshrl.u32 %v1871_v50, 16  ;;  %v1938_v27 = vrot.slane %v1924_v52, %v7834_v18 }
 0x343   : > { %v1990_v48 = vcombine.high %v1882_v0, %v7822_v12  ;;  %v1997_v31 = vrot.slane %v1882_v0, %v7834_v18 }
 0x344   : > { %v1946_v54 = vrot.slane %v1886_v57, %v7834_v18  ;;  %v1890_v16 = vpack.i.b16 %v1889_v7, %v1888_v34  ;;  %v1939_v19 = vcombine.high %v1886_v57, %v7822_v12 }
 0x345   : > { %v1861_v4 = vpop.permute.xlu1 %1860  ;;  %v2004_v7 = vrot.slane %v1990_v48, %v7834_v18 }
 0x346   : > { %v1897_v58 = vshrl.u32 %v1861_v4, 16  ;;  %v1894_v59 = vpack.i.b16 %v1861_v4, %v1855_v17  ;;  %v1954_v55 = vcombine.low %v1931_v56, %v1946_v54  ;;  %v1955_v63 = vcombine.high %v1931_v56, %v1946_v54 }
 0x347   : > { %v1953_v8 = vrot.slane %v1939_v19, %v7834_v18  ;;  %v2012_v30 = vrot.slane %v1890_v16, %v7834_v18  ;;  %v2005_v36 = vcombine.high %v1890_v16, %v7822_v12 }
 0x348   : > { %v1898_v38 = vpack.i.b16 %v1897_v58, %v1896_v24  ;;  %v2056_v40 = vcombine.high %v1894_v59, %v7822_v12  ;;  %v2063_v42 = vrot.slane %v1894_v59, %v7834_v18  ;;  %v1962_v17 = vrot.slane %v1954_v55, %v7849_v28 }
 0x349   : > { %v1867_v46 = vpop.permute.xlu1 %1866  ;;  %v1969_v2 = vrot.slane %v1955_v63, %v7849_v28  ;;  %v1970_v57 = vcombine.low %v1938_v27, %v1953_v8  ;;  %v1971_v4 = vcombine.high %v1938_v27, %v1953_v8  ;;  %v2020_v3 = vcombine.low %v1997_v31, %v2012_v30 }
 0x34a   : > { %v1904_v44 = vshrl.u32 %v1867_v46, 16  ;;  %v2019_v14 = vrot.slane %v2005_v36, %v7834_v18  ;;  %v2070_v58 = vrot.slane %v2056_v40, %v7834_v18  ;;  %v2122_v59 = vcombine.high %v1898_v38, %v7822_v12 }
 0x34b   : > { %v2320_v19 = vcombine.low %v1962_v17, %v1969_v2  ;;  %v6589_v56 = vcombine.high %v1962_v17, %v1969_v2  ;;  %v8158_v55 = vrot.slane %v1970_v57, %v7849_v28  ;;  %v8161_v63 = vrot.slane %v1971_v4, %v7849_v28 }
 0x34c   : > { %v2036_v48 = vcombine.low %v2004_v7, %v2019_v14  ;;  %v2037_v36 = vcombine.high %v2004_v7, %v2019_v14  ;;  %v2136_v2 = vrot.slane %v2122_v59, %v7834_v18 }
 0x34d   : > { %v1873_v26 = vpop.permute.xlu1 %1872  ;;  %v8139_v39 = vpop.permute.xlu0 %1862  ;;  %v8178_v17 = vrot.slane %v6589_v56, %v7834_v18 }
 0x34e   : > { %v1902_v53 = vpack.i.b16 %v1873_v26, %v1867_v46  ;;  %v1905_v13 = vshrl.u32 %v1873_v26, 16  ;;  %v2021_v46 = vcombine.high %v1997_v31, %v2012_v30  ;;  %v8164_v26 = vrot.slane %v2020_v3, %v7849_v28 }
 0x34f   : > { %v1913_v4 = vshrl.u32 %v8139_v39, 16 }
 0x350   : > { %v2071_v10 = vcombine.high %v1902_v53, %v7822_v12  ;;  %v2078_v50 = vrot.slane %v1902_v53, %v7834_v18  ;;  %v1906_v1 = vpack.i.b16 %v1905_v13, %v1904_v44  ;;  %v2129_v53 = vrot.slane %v1898_v38, %v7834_v18 }
 0x351   : > { %v8172_v44 = vrot.slane %v2021_v46, %v7849_v28  ;;  %v8175_v13 = vrot.slane %v2320_v19, %v7834_v18  ;;  %v1910_v38 = vpack.i.b16 %v8139_v39, %v8126_v49  ;;  %v8189_v46 = vrot.slane %v2036_v48, %v7849_v28 }
 0x352   : > { %v2085_v54 = vrot.slane %v2071_v10, %v7834_v18  ;;  %v2086_v0 = vcombine.low %v2063_v42, %v2078_v50  ;;  %v2087_v52 = vcombine.high %v2063_v42, %v2078_v50  ;;  %v2137_v16 = vcombine.high %v1906_v1, %v7822_v12  ;;  %v8155_v24 = vpop.permute.xlu0 %1868  ;;  %v8181_v10 = vpop.permute.xlu1 %2686 }
 0x353   : > { %v2144_v27 = vrot.slane %v1906_v1, %v7834_v18  ;;  %v2336_v19 = vcombine.low %v8158_v55, %v8161_v63  ;;  %v6590_v39 = vcombine.high %v8158_v55, %v8161_v63  ;;  %v2370_v56 = vcombine.low %v8164_v26, %v8172_v44 }
 0x354   : > { %v2102_v8 = vcombine.low %v2070_v58, %v2085_v54  ;;  %v2103_v30 = vcombine.high %v2070_v58, %v2085_v54  ;;  %v2151_v31 = vrot.slane %v2137_v16, %v7834_v18  ;;  %v2094_v40 = vrot.slane %v2086_v0, %v7849_v28 }
 0x355   : > { %v2101_v42 = vrot.slane %v2087_v52, %v7849_v28  ;;  %v2152_v50 = vcombine.low %v2129_v53, %v2144_v27  ;;  %v2153_v57 = vcombine.high %v2129_v53, %v2144_v27  ;;  %v8192_v0 = vrot.slane %v2037_v36, %v7849_v28 }
 0x356   : > { %v2110_v3 = vrot.slane %v2102_v8, %v7849_v28  ;;  %v2117_v1 = vrot.slane %v2103_v30, %v7849_v28  ;;  %v2168_v7 = vcombine.low %v2136_v2, %v2151_v31  ;;  %v2169_v14 = vcombine.high %v2136_v2, %v2151_v31  ;;  %v1875_v54 = vpop.permute.xlu0 %1874  ;;  %v8210_v63 = vpop.permute.xlu1 %2692 }
 0x357   : > { %v2420_v52 = vcombine.low %v2094_v40, %v2101_v42  ;;  %v6593_v16 = vcombine.high %v2094_v40, %v2101_v42  ;;  %v6591_v58 = vcombine.high %v8164_v26, %v8172_v44  ;;  %v2160_v59 = vrot.slane %v2152_v50, %v7849_v28 }
 0x358   : > { %v2167_v27 = vrot.slane %v2153_v57, %v7849_v28  ;;  %v2188_v48 = vcombine.high %v1910_v38, %v7822_v12  ;;  %v1918_v8 = vpack.i.b16 %v1875_v54, %v8155_v24  ;;  %v2176_v30 = vrot.slane %v2168_v7, %v7849_v28 }
 0x359   : > { %v2183_v31 = vrot.slane %v2169_v14, %v7849_v28  ;;  %v2436_v36 = vcombine.low %v2110_v3, %v2117_v1  ;;  %v1914_v55 = vpack.i.b16 %v1913_v4, %v1912_v25  ;;  %v2386_v26 = vcombine.low %v8189_v46, %v8192_v0 }
 0x35a   : > { %v8215_v53 = vrot.slane %v2420_v52, %v7834_v18  ;;  %v8218_v40 = vrot.slane %v6593_v16, %v7834_v18  ;;  %v6594_v42 = vcombine.high %v2110_v3, %v2117_v1  ;;  %v6592_v44 = vcombine.high %v8189_v46, %v8192_v0  ;;  %v2681_v14 = vpop.permute.xlu0 %2680 }
 0x35b   : > { %v2195_v2 = vrot.slane %v1910_v38, %v7834_v18  ;;  %v2709_v49 = vshrl.u32 %v8181_v10, 16  ;;  %v1921_v25 = vshrl.u32 %v1875_v54, 16  ;;  %v2470_v50 = vcombine.low %v2160_v59, %v2167_v27 }
 0x35c   : > { %v2202_v57 = vrot.slane %v2188_v48, %v7834_v18  ;;  %v1920_v4 = vshrl.u32 %v8155_v24, 16  ;;  %v2210_v7 = vrot.slane %v1918_v8, %v7834_v18  ;;  %v8228_v52 = vrot.slane %v2436_v36, %v7834_v18  ;;  %v8237_v48 = vpop.permute.xlu1 %2682 }
 0x35d   : > { %v6595_v3 = vcombine.high %v2160_v59, %v2167_v27  ;;  %v2486_v1 = vcombine.low %v2176_v30, %v2183_v31  ;;  %v2254_v46 = vcombine.high %v1914_v55, %v7822_v12  ;;  %v8232_v38 = vrot.slane %v6594_v42, %v7834_v18 }
 0x35e   : > { %v6596_v0 = vcombine.high %v2176_v30, %v2183_v31  ;;  %v2203_v16 = vcombine.high %v1918_v8, %v7822_v12  ;;  %v1922_v24 = vpack.i.b16 %v1921_v25, %v1920_v4  ;;  %v2706_v11 = vpack.i.b16 %v8181_v10, %v2681_v14 }
 0x35f   : > { %v2343_v36 = vrot.slane %v2336_v19, %v7834_v18  ;;  %v2351_v59 = vrot.slane %v6590_v39, %v7834_v18  ;;  %v8243_v27 = vrot.slane %v2470_v50, %v7834_v18  ;;  %v2261_v42 = vrot.slane %v1914_v55, %v7834_v18 }
 0x360   : > { %v2218_v35 = vcombine.low %v2195_v2, %v2210_v7  ;;  %v2219_v6 = vcombine.high %v2195_v2, %v2210_v7  ;;  %v8247_v30 = vrot.slane %v6595_v3, %v7834_v18  ;;  %v8250_v8 = vrot.slane %v2486_v1, %v7834_v18  ;;  %v2699_v3 = vpop.permute.xlu0 %2698 }
 0x361   : > { %v2268_v31 = vrot.slane %v2254_v46, %v7834_v18  ;;  %v2716_v10 = vshrl.u32 %v8210_v63, 16  ;;  %v8255_v19 = vrot.slane %v6596_v0, %v7834_v18  ;;  %v2217_v39 = vrot.slane %v2203_v16, %v7834_v18 }
 0x362   : > { %v2708_v55 = vshrl.u32 %v2681_v14, 16  ;;  %v2269_v2 = vcombine.high %v1922_v24, %v7822_v12  ;;  %v2276_v50 = vrot.slane %v1922_v24, %v7834_v18  ;;  %v2752_v4 = vcombine.high %v2706_v11, %v7822_v12 }
 0x363   : > { %v2360_v7 = vcombine.low %v2343_v36, %v2351_v59  ;;  %v2226_v1 = vrot.slane %v2218_v35, %v7849_v28  ;;  %v2233_v46 = vrot.slane %v2219_v6, %v7849_v28  ;;  %v2377_v0 = vrot.slane %v2370_v56, %v7834_v18 }
 0x364   : > { %v2385_v62 = vrot.slane %v6591_v58, %v7834_v18  ;;  %v2759_v16 = vrot.slane %v2706_v11, %v7834_v18  ;;  %v2352_v14 = vcombine.low %v8175_v13, %v8178_v17  ;;  %v2393_v34 = vrot.slane %v2386_v26, %v7834_v18 }
 0x365   : > { %v2401_v24 = vrot.slane %v6592_v44, %v7834_v18  ;;  %v2234_v54 = vcombine.low %v2202_v57, %v2217_v39  ;;  %v2235_v36 = vcombine.high %v2202_v57, %v2217_v39  ;;  %v2714_v35 = vpack.i.b16 %v2699_v3, %v8210_v63 }
 0x366   : > { %v2402_v59 = vcombine.low %v2377_v0, %v2385_v62  ;;  %v2283_v6 = vrot.slane %v2269_v2, %v7834_v18  ;;  %v2710_v25 = vpack.i.b16 %v2709_v49, %v2708_v55  ;;  %v8274_v56 = vrot.slane %v2360_v7, %v7849_v28 }
 0x367   : > { %v2410_v58 = vcombine.low %v2393_v34, %v2401_v24  ;;  %v2284_v11 = vcombine.low %v2261_v42, %v2276_v50  ;;  %v2285_v9 = vcombine.high %v2261_v42, %v2276_v50  ;;  %v2520_v51 = vcombine.low %v2226_v1, %v2233_v46  ;;  %v2689_v42 = vpop.permute.xlu0 %2688 }
 0x368   : > { %v2717_v13 = vshrl.u32 %v2699_v3, 16  ;;  %v6597_v17 = vcombine.high %v2226_v1, %v2233_v46  ;;  %v8277_v26 = vrot.slane %v2352_v14, %v7849_v28  ;;  %v8280_v44 = vrot.slane %v2402_v59, %v7849_v28 }
 0x369   : > { %v8283_v62 = vrot.slane %v2410_v58, %v7849_v28  ;;  %v8286_v63 = vrot.slane %v2234_v54, %v7849_v28  ;;  %v8289_v49 = vrot.slane %v2235_v36, %v7849_v28  ;;  %v2767_v34 = vcombine.high %v2714_v35, %v7822_v12 }
 0x36a   : > { %v2774_v57 = vrot.slane %v2714_v35, %v7834_v18  ;;  %v2300_v39 = vcombine.low %v2268_v31, %v2283_v6  ;;  %v2301_v55 = vcombine.high %v2268_v31, %v2283_v6  ;;  %v8295_v2 = vcombine.low %v8277_v26, %v8274_v56 }
 0x36b   : > { %v8299_v50 = vcombine.low %v8280_v44, %v8283_v62  ;;  %v8302_v54 = vrot.slane %v2284_v11, %v7849_v28  ;;  %v8305_v7 = vrot.slane %v2285_v9, %v7849_v28  ;;  %v2766_v3 = vrot.slane %v2752_v4, %v7834_v18 }
 0x36c   : > { %v2718_v1 = vpack.i.b16 %v2717_v13, %v2716_v10  ;;  %v8309_v46 = vrot.slane %v2520_v51, %v7834_v18  ;;  %v8312_v31 = vrot.slane %v6597_v17, %v7834_v18  ;;  %v2818_v0 = vcombine.high %v2710_v25, %v7822_v12  ;;  %v2701_v13 = vpop.permute.xlu0 %2700 }
 0x36d   : > { %v2622_v14 = vpack.i.b16 %v8299_v50, %v8295_v2  ;;  %v2781_v9 = vrot.slane %v2767_v34, %v7834_v18  ;;  %v2782_v36 = vcombine.low %v2759_v16, %v2774_v57  ;;  %v2783_v59 = vcombine.high %v2759_v16, %v2774_v57  ;;  %v2695_v34 = vpop.permute.xlu1 %2694 }
 0x36e   : > { %v8321_v10 = vrot.slane %v2300_v39, %v7849_v28  ;;  %v8324_v51 = vrot.slane %v2301_v55, %v7849_v28  ;;  %v2825_v16 = vrot.slane %v2710_v25, %v7834_v18  ;;  %v2833_v11 = vcombine.high %v2718_v1, %v7822_v12 }
 0x36f   : > { %7070 = vmatprep.subr.msk.bf16.mxu1 %vm3512_vm5, %v2622_v14  ;;  %v3520_v35 = vsel %vm3512_vm5, %v2622_v14, 0  ;;  %v2832_v17 = vrot.slane %v2818_v0, %v7834_v18  ;;  %v2840_v57 = vrot.slane %v2718_v1, %v7834_v18  ;;  %v2722_v39 = vpack.i.b16 %v2689_v42, %v8237_v48 }
 0x370   : > { %6891 = vmatpush3.bf16.xpose.msra.mxu1 %v3520_v35  ;;  %v2725_v55 = vshrl.u32 %v2689_v42, 16  ;;  %v2790_v14 = vrot.slane %v2782_v36, %v7849_v28  ;;  %v2797_v6 = vrot.slane %v2783_v59, %v7849_v28  ;;  %v2798_v4 = vcombine.low %v2766_v3, %v2781_v9 }
 0x371   : > { %v2799_v58 = vcombine.high %v2766_v3, %v2781_v9  ;;  %v2730_v24 = vpack.i.b16 %v2701_v13, %v2695_v34  ;;  %v2733_v0 = vshrl.u32 %v2701_v13, 16  ;;  %v2732_v32 = vshrl.u32 %v2695_v34, 16 }
 0x372   : > { %v2847_v1 = vrot.slane %v2833_v11, %v7834_v18  ;;  %v2460_v42 = vcombine.low %v8228_v52, %v8232_v38  ;;  %v2502_v36 = vcombine.low %v8243_v27, %v8247_v30  ;;  %v2848_v59 = vcombine.low %v2825_v16, %v2840_v57 }
 0x373   : > { %v9564_v3 = vshrl.u32 %v8237_v48, 16  ;;  %v2884_v25 = vcombine.high %v2722_v39, %v7822_v12  ;;  %v2510_v35 = vcombine.low %v8250_v8, %v8255_v19  ;;  %v8356_v13 = vrot.slane %v2798_v4, %v7849_v28 }
 0x374   : > { %v8359_v11 = vrot.slane %v2799_v58, %v7849_v28  ;;  %v2849_v34 = vcombine.high %v2825_v16, %v2840_v57  ;;  %v3148_v52 = vcombine.low %v2790_v14, %v2797_v6  ;;  %v2734_v38 = vpack.i.b16 %v2733_v0, %v2732_v32 }
 0x375   : > { %v2726_v9 = vpack.i.b16 %v2725_v55, %v9564_v3  ;;  %v2899_v27 = vcombine.high %v2730_v24, %v7822_v12  ;;  %v2906_v30 = vrot.slane %v2730_v24, %v7834_v18  ;;  %v8364_v48 = vrot.slane %v2510_v35, %v7849_v28 }
 0x376   : > { %v2864_v55 = vcombine.low %v2832_v17, %v2847_v1  ;;  %v6601_v3 = vcombine.high %v2790_v14, %v2797_v6  ;;  %v8367_v8 = vrot.slane %v2460_v42, %v7849_v28  ;;  %v8370_v19 = vrot.slane %v2502_v36, %v7849_v28 }
 0x377   : > { %v2865_v4 = vcombine.high %v2832_v17, %v2847_v1  ;;  %v2891_v58 = vrot.slane %v2722_v39, %v7834_v18  ;;  %v2898_v32 = vrot.slane %v2884_v25, %v7834_v18  ;;  %v2950_v16 = vcombine.high %v2726_v9, %v7822_v12 }
 0x378   : > { %v8376_v24 = vrot.slane %v2848_v59, %v7849_v28  ;;  %v8379_v57 = vrot.slane %v2849_v34, %v7849_v28  ;;  %v9565_v6 = vcombine.low %v8215_v53, %v8218_v40  ;;  %v2518_v17 = vcombine.low %v8370_v19, %v8364_v48 }
 0x379   : > { %v8390_v39 = vrot.slane %v3148_v52, %v7834_v18  ;;  %v2913_v25 = vrot.slane %v2899_v27, %v7834_v18  ;;  %v2914_v35 = vcombine.low %v2891_v58, %v2906_v30  ;;  %v2965_v0 = vcombine.high %v2734_v38, %v7822_v12 }
 0x37a   : > { %v8385_v14 = vrot.slane %v9565_v6, %v7849_v28  ;;  %v8395_v1 = vrot.slane %v2864_v55, %v7849_v28  ;;  %v8398_v42 = vrot.slane %v6601_v3, %v7834_v18  ;;  %v8405_v36 = vrot.slane %v2865_v4, %v7849_v28 }
 0x37b   : > { %v2915_v34 = vcombine.high %v2891_v58, %v2906_v30  ;;  %v2972_v52 = vrot.slane %v2734_v38, %v7834_v18  ;;  %v2957_v27 = vrot.slane %v2726_v9, %v7834_v18  ;;  %v2964_v55 = vrot.slane %v2950_v16, %v7834_v18 }
 0x37c   : > { %v2468_v40 = vcombine.low %v8385_v14, %v8367_v8  ;;  %v2623_v6 = vshrl.u32 %v8295_v2, 16  ;;  %v2922_v53 = vrot.slane %v2914_v35, %v7849_v28  ;;  %v2930_v12 = vcombine.low %v2898_v32, %v2913_v25 }
 0x37d   : > { %v2931_v37 = vcombine.high %v2898_v32, %v2913_v25  ;;  %v2979_v4 = vrot.slane %v2965_v0, %v7834_v18  ;;  %v2624_v30 = vshrl.u32 %v8299_v50, 16  ;;  %v9566_v9 = vcombine.low %v8286_v63, %v8289_v49 }
 0x37e   : > { %v8412_v3 = vpack.i.b16 %v2518_v17, %v2468_v40  ;;  %v9567_v2 = vcombine.high %v8286_v63, %v8289_v49  ;;  %v2929_v16 = vrot.slane %v2915_v34, %v7849_v28  ;;  %v2980_v32 = vcombine.low %v2957_v27, %v2972_v52 }
 0x37f   : > { %v2543_v38 = vrot.slane %v9566_v9, %v7834_v18  ;;  %v2981_v25 = vcombine.high %v2957_v27, %v2972_v52  ;;  %v9568_v35 = vcombine.low %v8302_v54, %v8305_v7  ;;  %v2625_v47 = vpack.i.b16 %v2624_v30, %v2623_v6 }
 0x380   : > { %v6614_v59 = vcombine.low %v8412_v3, %v8412_v3  ;;  %v2551_v58 = vrot.slane %v9567_v2, %v7834_v18  ;;  %v9569_v63 = vcombine.high %v8302_v54, %v8305_v7  ;;  %v2938_v34 = vrot.slane %v2930_v12, %v7849_v28 }
 0x381   : > { %v2577_v0 = vrot.slane %v9568_v35, %v7834_v18  ;;  %v2552_v52 = vcombine.low %v8309_v46, %v8312_v31  ;;  %v9570_v27 = vcombine.low %v8321_v10, %v8324_v51  ;;  %v2945_v30 = vrot.slane %v2931_v37, %v7849_v28 }
 0x382   : > { %7071 = vmatprep.subr.msk.bf16.mxu1 %vm3512_vm5, %v6614_v59  ;;  %v3523_v50 = vsel %vm3512_vm5, %v6614_v59, 0  ;;  %v2560_v9 = vcombine.low %v2543_v38, %v2551_v58  ;;  %v2585_v49 = vrot.slane %v9569_v63, %v7834_v18  ;;  %v9571_v59 = vcombine.high %v8321_v10, %v8324_v51 }
 0x383   : > { %6893 = vmatpush3.bf16.xpose.msra.mxu1 %v3523_v50  ;;  %v2593_v2 = vrot.slane %v9570_v27, %v7834_v18  ;;  %v2996_v54 = vcombine.low %v2964_v55, %v2979_v4  ;;  %v2997_v7 = vcombine.high %v2964_v55, %v2979_v4  ;;  %v2635_v31 = vshrl.u32 %v2468_v40, 16 }
 0x384   : > { %v2601_v6 = vrot.slane %v9571_v59, %v7834_v18  ;;  %7074 = vmatprep.subr.msk.bf16.mxu1 %vm3512_vm5, %v2625_v47  ;;  %v2602_v12 = vcombine.low %v2577_v0, %v2585_v49  ;;  %v8453_v38 = vrot.slane %v2560_v9, %v7849_v28  ;;  %v2636_v58 = vshrl.u32 %v2518_v17, 16 }
 0x385   : > { %v3198_v35 = vcombine.low %v8376_v24, %v8379_v57  ;;  %v6603_v10 = vcombine.high %v8376_v24, %v8379_v57  ;;  %v2988_v51 = vrot.slane %v2980_v32, %v7849_v28  ;;  %v2995_v37 = vrot.slane %v2981_v25, %v7849_v28 }
 0x386   : > { %v2610_v46 = vcombine.low %v2593_v2, %v2601_v6  ;;  %v8462_v55 = vrot.slane %v2552_v52, %v7849_v28  ;;  %v8465_v4 = vrot.slane %v2602_v12, %v7849_v28  ;;  %v8470_v17 = vpack.i.b16 %v2636_v58, %v2635_v31 }
 0x387   : > { %v3004_v40 = vrot.slane %v2996_v54, %v7849_v28  ;;  %v3011_v50 = vrot.slane %v2997_v7, %v7849_v28  ;;  %v3248_v24 = vcombine.low %v2922_v53, %v2929_v16  ;;  %v6605_v57 = vcombine.high %v2922_v53, %v2929_v16 }
 0x388   : > { %v8468_v0 = vrot.slane %v2610_v46, %v7849_v28  ;;  %v3214_v32 = vcombine.low %v8395_v1, %v8405_v36  ;;  %v3264_v25 = vcombine.low %v2938_v34, %v2945_v30  ;;  %v2568_v9 = vcombine.low %v8462_v55, %v8453_v38 }
 0x389   : > { %v6606_v49 = vcombine.high %v2938_v34, %v2945_v30  ;;  %v3298_v52 = vcombine.low %v2988_v51, %v2995_v37  ;;  %v9572_v27 = vcombine.low %v8087_v21, %v8087_v21  ;;  %v3648_v2 = vsel %vm3512_vm5, %v2625_v47, 0 }
 0x38a   : > { %v2618_v63 = vcombine.low %v8465_v4, %v8468_v0  ;;  %v6622_v53 = vcombine.low %v8470_v17, %v8470_v17  ;;  %v6604_v16 = vcombine.high %v8395_v1, %v8405_v36  ;;  %v6607_v59 = vcombine.high %v2988_v51, %v2995_v37 }
 0x38b   : > { %6895 = vmatmul.mubr.msk.bf16.vlgmr.msra.gmra.mrb[12].mxu1 %vm3512_vm5, %v9572_v27  ;;  %v3255_v6 = vrot.slane %v3248_v24, %v7834_v18  ;;  %v3263_v21 = vrot.slane %v6605_v57, %v7834_v18  ;;  %v3314_v30 = vcombine.low %v3004_v40, %v3011_v50  ;;  %v8496_v47 = vcombine.high %v8280_v44, %v8283_v62 }
 0x38c   : > { %6907 = vmatpush3.bf16.xpose.msra.mxu1 %v3648_v2  ;;  %6910 = vmatprep.mubr.msk.bf16.mxu1 %vm3512_vm5, %v8093_v43  ;;  %v2646_v34 = vpack.i.b16 %v2618_v63, %v2568_v9  ;;  %v3271_v54 = vrot.slane %v3264_v25, %v7834_v18  ;;  %v2648_v1 = vshrl.u32 %v2618_v63, 16  ;;  %v2659_v36 = vunpack.c.h.b16 %v8412_v3 }
 0x38d   : > { %7075 = vmatprep.subr.msk.bf16.mxu1 %vm3512_vm5, %v6622_v53  ;;  %v3279_v43 = vrot.slane %v6606_v49, %v7834_v18  ;;  %v3305_v12 = vrot.slane %v3298_v52, %v7834_v18  ;;  %v8504_v46 = vcombine.high %v8277_v26, %v8274_v56  ;;  %v9573_v31 = vcombine.low %v8356_v13, %v8359_v11 }
 0x38e   : > { %v2660_v7 = vunpack.c.l.b16 %v2646_v34  ;;  %v3313_v62 = vrot.slane %v6607_v59, %v7834_v18  ;;  %v6608_v58 = vcombine.high %v3004_v40, %v3011_v50  ;;  %v2647_v51 = vshrl.u32 %v2568_v9, 16 }
 0x38f   : > { %v3171_v44 = vrot.slane %v9573_v31, %v7834_v18  ;;  %v3321_v3 = vrot.slane %v3314_v30, %v7834_v18  ;;  %v2628_v24 = vpack.i.b16 %v8496_v47, %v8504_v46  ;;  %v8516_v57 = vcombine.high %v8370_v19, %v8364_v48 }
 0x390   : > { %v3575_v37 = vpack.c.b16 %v2660_v7, %v2659_v36  ;;  %v9574_v56 = vcombine.high %v8356_v13, %v8359_v11  ;;  %v6618_v50 = vcombine.high %v2646_v34, %v2646_v34  ;;  %v2649_v25 = vpack.i.b16 %v2648_v1, %v2647_v51 }
 0x391   : > { %v3205_v9 = vrot.slane %v3198_v35, %v7834_v18  ;;  %v3651_v63 = vsel %vm3512_vm5, %v6622_v53, 0  ;;  %v3180_v48 = vcombine.low %v8390_v39, %v8398_v42  ;;  %v3213_v49 = vrot.slane %v6603_v10, %v7834_v18 }
 0x392   : > { %v3179_v26 = vrot.slane %v9574_v56, %v7834_v18  ;;  %7072 = vmatprep.subr.msk.bf16.mxu0 %vm3512_vm5, %v3575_v37  ;;  %v3584_v40 = vsel %vm3512_vm5, %v3575_v37, 0  ;;  %v3329_v13 = vrot.slane %v6608_v58, %v7834_v18  ;;  %v3221_v11 = vrot.slane %v3214_v32, %v7834_v18 }
 0x393   : > { %6899 = vmatpush3.bf16.xpose.msra.mxu0 %v3584_v40  ;;  %v3229_v52 = vrot.slane %v6604_v16, %v7834_v18  ;;  %v3280_v27 = vcombine.low %v3255_v6, %v3263_v21  ;;  %v2469_v35 = vcombine.high %v8385_v14, %v8367_v8  ;;  %v3230_v42 = vcombine.low %v3205_v9, %v3213_v49 }
 0x394   : > { %v3188_v19 = vcombine.low %v3171_v44, %v3179_v26  ;;  %7073 = vmatprep.subr.msk.bf16.mxu0 %vm3512_vm5, %v6618_v50  ;;  %6909 = vmatpush3.bf16.xpose.msra.mxu1 %v3651_v63  ;;  %v2666_v10 = vunpack.c.l.b16 %v2649_v25  ;;  %v3288_v53 = vcombine.low %v3271_v54, %v3279_v43  ;;  %v2665_v59 = vunpack.c.h.b16 %v8470_v17 }
 0x395   : > { %7078 = vmatprep.subr.msk.bf16.mxu1 %vm3512_vm5, %v2628_v24  ;;  %v3238_v2 = vcombine.low %v3221_v11, %v3229_v52  ;;  %v2640_v34 = vpack.i.b16 %v8516_v57, %v2469_v35  ;;  %v8542_v32 = vrot.slane %v3180_v48, %v7849_v28  ;;  %v3330_v16 = vcombine.low %v3305_v12, %v3313_v62 }
 0x396   : > { %v8537_v39 = vrot.slane %v3188_v19, %v7849_v28  ;;  %v3237_v6 = vrot.slane %v3230_v42, %v7849_v28  ;;  %v8547_v8 = vrot.slane %v3288_v53, %v7849_v28  ;;  %v3338_v14 = vcombine.low %v3321_v3, %v3329_v13 }
 0x397   : > { %v3245_v21 = vrot.slane %v3238_v2, %v7849_v28  ;;  %v6621_v30 = vcombine.low %v8077_v22, %v8077_v22  ;;  %v8552_v54 = vrot.slane %v3280_v27, %v7849_v28  ;;  %v3587_v1 = vsel %vm3512_vm5, %v6618_v50, 0 }
 0x398   : > { %v8556_v17 = vcombine.high %v8542_v32, %v8537_v39  ;;  %v3703_v36 = vpack.c.b16 %v2666_v10, %v2665_v59  ;;  %v8560_v7 = vrot.slane %v3338_v14, %v7849_v28  ;;  %v3776_v22 = vsel %vm3512_vm5, %v2628_v24, 0 }
 0x399   : > { %v8562_v43 = vcombine.high %v3237_v6, %v3245_v21  ;;  %v6630_v12 = vcombine.low %v2640_v34, %v2640_v34  ;;  %v3337_v31 = vrot.slane %v3330_v16, %v7849_v28  ;;  %v3297_v44 = vcombine.high %v8552_v54, %v8547_v8 }
 0x39a   : > { %v9575_v62 = vpack.i.b16 %v8091_v61, %v8085_v20  ;;  %v3457_v51 = vshrl.u32 %v8556_v17, 16  ;;  %v2619_v3 = vcombine.high %v8465_v4, %v8468_v0  ;;  %v2630_v24 = vshrl.u32 %v8496_v47, 16 }
 0x39b   : > { %6901 = vmatpush3.bf16.xpose.msra.mxu0 %v3587_v1  ;;  %6911 = vmatmul.mubr.msk.bf16.vlgmr.msra.gmra.mrb[16].mxu1 %vm3512_vm5, %v6621_v30  ;;  %v3347_v58 = vcombine.high %v3337_v31, %v8560_v7  ;;  %v3458_v37 = vshrl.u32 %v8562_v43, 16  ;;  %v3469_v20 = vshrl.u32 %v3297_v44, 16  ;;  %v2569_v40 = vcombine.high %v8462_v55, %v8453_v38  ;;  %v9576_v1 = vld [vmem:[#allocation20_spill] sm:$0xff] }
 0x39c   : > { %7076 = vmatprep.subr.msk.bf16.mxu0 %vm3512_vm5, %v3703_v36  ;;  %6923 = vmatpush3.bf16.xpose.msra.mxu1 %v3776_v22  ;;  %v6617_v50 = vcombine.high %v8101_v60, %v8101_v60  ;;  %v2629_v9 = vshrl.u32 %v8504_v46, 16  ;;  %v3712_v4 = vsel %vm3512_vm5, %v3703_v36, 0  ;;  %v6626_v0 = vcombine.high %v2649_v25, %v2649_v25 }
 0x39d   : > { %6926 = vmatprep.mubr.msk.bf16.mxu1 %vm3512_vm5, %v9575_v62  ;;  %7079 = vmatprep.subr.msk.bf16.mxu1 %vm3512_vm5, %v6630_v12  ;;  %v8581_v56 = vpack.i.b16 %v3347_v58, %v3297_v44  ;;  %v8583_v26 = vpack.i.b16 %v3458_v37, %v3457_v51  ;;  %v3470_v61 = vshrl.u32 %v3347_v58, 16  ;;  %v2652_v47 = vpack.i.b16 %v2619_v3, %v2569_v40  ;;  %v9577_v62 = vld [vmem:[#allocation19_spill] sm:$0xff] }
 0x39e   : > { %v3779_v48 = vsel %vm3512_vm5, %v6630_v12, 0  ;;  %v2631_v38 = vpack.i.b16 %v2630_v24, %v2629_v9  ;;  %v2642_v55 = vshrl.u32 %v8516_v57, 16  ;;  %v2641_v60 = vshrl.u32 %v2469_v35, 16 }
 0x39f   : > { %v8590_v63 = vpack.i.b16 %v3470_v61, %v3469_v20  ;;  %v2672_v46 = vunpack.c.l.b16 %v2652_v47  ;;  %v2671_v49 = vunpack.c.h.b16 %v2640_v34  ;;  %v6629_v25 = vcombine.low %v8075_v15, %v8075_v15 }
 0x3a0   : > { %v2643_v19 = vpack.i.b16 %v2642_v55, %v2641_v60  ;;  %v3715_v13 = vsel %vm3512_vm5, %v6626_v0, 0  ;;  %v3904_v57 = vsel %vm3512_vm5, %v2631_v38, 0  ;;  %v2654_v52 = vshrl.u32 %v2619_v3, 16 }
 0x3a1   : > { %v3246_v27 = vcombine.low %v3237_v6, %v3245_v21  ;;  %v6625_v15 = vcombine.high %v8109_v33, %v8109_v33  ;;  %v2653_v35 = vshrl.u32 %v2569_v40, 16  ;;  %v3196_v42 = vcombine.low %v8542_v32, %v8537_v39 }
 0x3a2   : > { %6903 = vmatmul.mubr.msk.bf16.vlgmr.msra.gmra.mrb[0].mxu0 %vm3512_vm5, %v6617_v50  ;;  %v6638_v11 = vcombine.low %v2643_v19, %v2643_v19  ;;  %v6634_v2 = vcombine.high %v2652_v47, %v2652_v47  ;;  %v3346_v34 = vcombine.low %v3337_v31, %v8560_v7  ;;  %v3296_v33 = vcombine.low %v8552_v54, %v8547_v8 }
 0x3a3   : > { %6915 = vmatpush3.bf16.xpose.msra.mxu0 %v3712_v4  ;;  %6918 = vmatprep.mubr.msk.bf16.mxu0 %vm3512_vm5, %v8122_v45  ;;  %v3831_v45 = vpack.c.b16 %v2672_v46, %v2671_v49  ;;  %v2655_v53 = vpack.i.b16 %v2654_v52, %v2653_v35  ;;  %v3450_v59 = vpack.i.b16 %v3246_v27, %v3196_v42  ;;  %v2677_v16 = vunpack.c.h.b16 %v2643_v19 }
 0x3a4   : > { %7077 = vmatprep.subr.msk.bf16.mxu0 %vm3512_vm5, %v6626_v0  ;;  %6925 = vmatpush3.bf16.xpose.msra.mxu1 %v3779_v48  ;;  %v8622_v32 = vpack.i.b16 %v3346_v34, %v3296_v33  ;;  %v6637_v6 = vcombine.low %v8099_v23, %v8099_v23  ;;  %v6633_v23 = vcombine.high %v8103_v29, %v8103_v29  ;;  %v3452_v36 = vshrl.u32 %v3246_v27, 16 }
 0x3a5   : > { %7082 = vmatprep.subr.msk.bf16.mxu1 %vm3512_vm5, %v2631_v38  ;;  %v3840_v10 = vsel %vm3512_vm5, %v3831_v45, 0  ;;  %v2678_v39 = vunpack.c.l.b16 %v2655_v53  ;;  %v6642_v54 = vcombine.high %v2655_v53, %v2655_v53  ;;  %v3451_v7 = vshrl.u32 %v3196_v42, 16 }
 0x3a6   : > { %v6645_v14 = vcombine.low %v8622_v32, %v8622_v32  ;;  %v3464_v31 = vshrl.u32 %v3346_v34, 16  ;;  %v3463_v29 = vshrl.u32 %v3296_v33, 16  ;;  %v6641_v58 = vcombine.high %v9577_v62, %v9577_v62 }
 0x3a7   : > { %v3959_v21 = vpack.c.b16 %v2678_v39, %v2677_v16  ;;  %v3971_v22 = vsel %vm3512_vm5, %v6642_v54, 0  ;;  %v3453_v12 = vpack.i.b16 %v3452_v36, %v3451_v7  ;;  %v8652_v3 = vpack.i.b16 %v8562_v43, %v8556_v17 }
 0x3a8   : > { %v4342_v8 = vsel %vm4340_vm6, %v6645_v14, 0  ;;  %v8641_v44 = vpack.i.b16 %v3464_v31, %v3463_v29  ;;  %v9578_v24 = vlaneseq }
 0x3a9   : > { %v3968_v30 = vsel %vm3512_vm5, %v3959_v21, 0 }
 0x3aa   : > { %v6651_v51 = vcombine.low %v8641_v44, %v8641_v44  ;;  %v8656_v20 = vand.u32 127, %v9578_v24 }
 0x3ab   : > { %6917 = vmatpush3.bf16.xpose.msra.mxu0 %v3715_v13  ;;  %6927 = vmatmul.mubr.msk.bf16.vlgmr.msra.gmra.mrb[20].mxu1 %vm3512_vm5, %v6629_v25 }
 0x3ac   : > { %7080 = vmatprep.subr.msk.bf16.mxu0 %vm3512_vm5, %v3831_v45  ;;  %6939 = vmatpush3.bf16.xpose.msra.mxu1 %v3904_v57  ;;  %v4462_v37 = vsel %vm4340_vm6, %v6651_v51, 0  ;;  %vm4023_vm7 = vcmp.lt.s32.totalorder %v8656_v20, 17  ;;  %v8809_v20 = vpop.permute.xlu1 %2684 }
 0x3ad   : > { %6942 = vmatprep.mubr.msk.bf16.mxu1 %vm3512_vm5, %v8106_v5  ;;  %7083 = vmatprep.subr.msk.bf16.mxu1 %vm3512_vm5, %v6638_v11  ;;  %v3907_v5 = vsel %vm3512_vm5, %v6638_v11, 0 }
 0x3b2   : > { %6919 = vmatmul.mubr.msk.bf16.vlgmr.msra.gmra.mrb[4].mxu0 %vm3512_vm5, %v6625_v15 }
 0x3b3   : > { %6931 = vmatpush3.bf16.xpose.msra.mxu0 %v3840_v10  ;;  %6934 = vmatprep.mubr.msk.bf16.mxu0 %vm3512_vm5, %v8117_v41  ;;  %v3843_v41 = vsel %vm3512_vm5, %v6634_v2, 0 }
 0x3b4   : > { %7081 = vmatprep.subr.msk.bf16.mxu0 %vm3512_vm5, %v6634_v2  ;;  %6941 = vmatpush3.bf16.xpose.msra.mxu1 %v3907_v5 }
 0x3b5   : > { %6954 = vmatprep.subr.bf16.mxu1 %v3450_v59 }
 0x3bb   : > { %6933 = vmatpush3.bf16.xpose.msra.mxu0 %v3843_v41  ;;  %6943 = vmatmul.mubr.msk.bf16.vlgmr.msra.gmra.mrb[24].mxu1 %vm3512_vm5, %v6637_v6 }
 0x3bc   : > { %7084 = vmatprep.subr.msk.bf16.mxu0 %vm3512_vm5, %v3959_v21  ;;  %6955 = vmatpush3.bf16.msra.mxu1 %v3450_v59 }
 0x3bd   : > { %7086 = vmatprep.subr.msk.bf16.mxu1 %vm4340_vm6, %v6645_v14 }
 0x3c0   : > { %6957 = vmatpush3.bf16.msra.mxu1 %v4342_v8 }
 0x3c2   : > { %6935 = vmatmul.mubr.msk.bf16.vlgmr.msra.gmra.mrb[8].mxu0 %vm3512_vm5, %v6633_v23 }
 0x3c3   : > { %6947 = vmatpush3.bf16.xpose.msra.mxu0 %v3968_v30  ;;  %6950 = vmatprep.mubr.msk.bf16.mxu0 %vm3512_vm5, %v9576_v1 }
 0x3c4   : > { %7085 = vmatprep.subr.msk.bf16.mxu0 %vm3512_vm5, %v6642_v54 }
 0x3cb   : > { %6949 = vmatpush3.bf16.xpose.msra.mxu0 %v3971_v22 }
 0x3cc   : > { %6970 = vmatprep.subr.bf16.mxu0 %v3453_v12 }
 0x3d2   : > { %6951 = vmatmul.mubr.msk.bf16.vlgmr.msra.gmra.mrb[12].mxu0 %vm3512_vm5, %v6641_v58 }
 0x3d3   : > { %6971 = vmatpush3.bf16.msra.mxu0 %v3453_v12 }
 0x3d4   : > { %7088 = vmatprep.subr.msk.bf16.mxu0 %vm4340_vm6, %v6651_v51 }
 0x3d7   : > { %6973 = vmatpush3.bf16.msra.mxu0 %v4462_v37 }
 0x3d8   : > { %6986 = vmatprep.subr.bf16.mxu0 %v8652_v3 }
 0x45e   : > { %v6896_v61 = vpop.f32.mrb[12].mxu1 }
 0x45f   : > { %v8661_v40 = vsel %vm4023_vm7, %v6896_v61, -1e+30  ;;  %v3559_v50 = vpop.f32.mrb[13].mxu1 }
 0x460   : > { %v8665_v9 = vsel %vm4023_vm7, %v3559_v50, -1e+30  ;;  %v6897_v17 = vpop.f32.mrb[14].mxu1  ;;  %v4057_v43 = vsel %vm4050_vm8, %v8661_v40, -inf }
 0x461   : > { %4058 = vmax.xlane.f32.xlu0 %v4057_v43  ;;  %v3562_v4 = vpop.f32.mrb[15].mxu1  ;;  %v4051_v0 = vsel %vm4050_vm8, %v8665_v9, -inf }
 0x462   : > { %v8673_v47 = vsel %vm4023_vm7, %v3562_v4, -1e+30  ;;  %4052 = vmax.xlane.f32.xlu1 %v4051_v0 }
 0x463   : > { %v4054_v48 = vsel %vm4050_vm8, %v8673_v47, -inf }
 0x465   : > { %4055 = vmax.xlane.f32.xlu0 %v4054_v48 }
 0x46e   : > { %v6912_v38 = vpop.f32.mrb[16].mxu1 }
 0x46f   : > { %v8679_v55 = vsel %vm4023_vm7, %v6912_v38, -1e+30  ;;  %v3687_v60 = vpop.f32.mrb[17].mxu1 }
 0x470   : > { %v6913_v46 = vpop.f32.mrb[18].mxu1  ;;  %v4075_v19 = vsel %vm4050_vm8, %v8679_v55, -inf  ;;  %v8685_v49 = vsel %vm4023_vm7, %v3687_v60, -1e+30 }
 0x471   : > { %4076 = vmax.xlane.f32.xlu1 %v4075_v19  ;;  %v3690_v25 = vpop.f32.mrb[19].mxu1  ;;  %v4069_v13 = vsel %vm4050_vm8, %v8685_v49, -inf }
 0x472   : > { %v8697_v15 = vsel %vm4023_vm7, %v3690_v25, -1e+30 }
 0x473   : > { %v4072_v2 = vsel %vm4050_vm8, %v8697_v15, -inf }
 0x475   : > { %v6904_v45 = vpop.f32.mrb[0].mxu0  ;;  %4070 = vmax.xlane.f32.xlu1 %v4069_v13 }
 0x476   : > { %v8691_v57 = vsel %vm4023_vm7, %v6904_v45, -1e+30  ;;  %v3623_v11 = vpop.f32.mrb[1].mxu0 }
 0x477   : > { %v6905_v52 = vpop.f32.mrb[2].mxu0  ;;  %v4066_v27 = vsel %vm4050_vm8, %v8691_v57, -inf  ;;  %v8709_v53 = vsel %vm4023_vm7, %v3623_v11, -1e+30 }
 0x478   : > { %v3626_v35 = vpop.f32.mrb[3].mxu0  ;;  %4067 = vmax.xlane.f32.xlu0 %v4066_v27  ;;  %v4060_v59 = vsel %vm4050_vm8, %v8709_v53, -inf }
 0x479   : > { %v8701_v42 = vsel %vm4023_vm7, %v3626_v35, -1e+30 }
 0x47a   : > { %v4063_v10 = vsel %vm4050_vm8, %v8701_v42, -inf }
 0x47b   : > { %4064 = vmax.xlane.f32.xlu1 %v4063_v10 }
 0x47c   : > { %4073 = vmax.xlane.f32.xlu0 %v4072_v2 }
 0x47e   : > { %v6928_v5 = vpop.f32.mrb[20].mxu1 }
 0x47f   : > { %v8715_v34 = vsel %vm4023_vm7, %v6928_v5, -1e+30  ;;  %v3815_v33 = vpop.f32.mrb[21].mxu1 }
 0x480   : > { %4061 = vmax.xlane.f32.xlu0 %v4060_v59  ;;  %v6929_v39 = vpop.f32.mrb[22].mxu1  ;;  %v4093_v16 = vsel %vm4050_vm8, %v8715_v34, -inf  ;;  %v8721_v6 = vsel %vm4023_vm7, %v3815_v33, -1e+30 }
 0x481   : > { %4094 = vmax.xlane.f32.xlu1 %v4093_v16  ;;  %v3818_v41 = vpop.f32.mrb[23].mxu1  ;;  %v4087_v21 = vsel %vm4050_vm8, %v8721_v6, -inf }
 0x482   : > { %v8733_v1 = vsel %vm4023_vm7, %v3818_v41, -1e+30  ;;  %v9579_v41 = vld [vmem:[#allocation17_spill] sm:$0xff] }
 0x483   : > { %v4090_v12 = vsel %vm4050_vm8, %v8733_v1, -inf }
 0x485   : > { %v6920_v14 = vpop.f32.mrb[4].mxu0  ;;  %4088 = vmax.xlane.f32.xlu1 %v4087_v21  ;;  %v9580_v21 = vld [vmem:[#allocation18_spill] sm:$0xff] }
 0x486   : > { %v8727_v8 = vsel %vm4023_vm7, %v6920_v14, -1e+30  ;;  %v3751_v23 = vpop.f32.mrb[5].mxu0  ;;  %v9581_v14 = vld [vmem:[#allocation16_spill] sm:$0xff] }
 0x487   : > { %v6921_v30 = vpop.f32.mrb[6].mxu0  ;;  %v4084_v54 = vsel %vm4050_vm8, %v8727_v8, -inf  ;;  %v8745_v31 = vsel %vm4023_vm7, %v3751_v23, -1e+30 }
 0x488   : > { %v3754_v36 = vpop.f32.mrb[7].mxu0  ;;  %4085 = vmax.xlane.f32.xlu0 %v4084_v54  ;;  %v4078_v62 = vsel %vm4050_vm8, %v8745_v31, -inf }
 0x489   : > { %v8737_v7 = vsel %vm4023_vm7, %v3754_v36, -1e+30 }
 0x48a   : > { %v4081_v22 = vsel %vm4050_vm8, %v8737_v7, -inf }
 0x48b   : > { %4082 = vmax.xlane.f32.xlu1 %v4081_v22 }
 0x48c   : > { %4091 = vmax.xlane.f32.xlu0 %v4090_v12 }
 0x48e   : > { %v6944_v29 = vpop.f32.mrb[24].mxu1 }
 0x48f   : > { %v8751_v58 = vsel %vm4023_vm7, %v6944_v29, -1e+30  ;;  %v3943_v51 = vpop.f32.mrb[25].mxu1 }
 0x490   : > { %4079 = vmax.xlane.f32.xlu0 %v4078_v62  ;;  %v6945_v37 = vpop.f32.mrb[26].mxu1  ;;  %v4111_v24 = vsel %vm4050_vm8, %v8751_v58, -inf  ;;  %v8757_v61 = vsel %vm4023_vm7, %v3943_v51, -1e+30 }
 0x491   : > { %4112 = vmax.xlane.f32.xlu1 %v4111_v24  ;;  %v3946_v50 = vpop.f32.mrb[27].mxu1  ;;  %v4105_v17 = vsel %vm4050_vm8, %v8757_v61, -inf }
 0x492   : > { %v8769_v60 = vsel %vm4023_vm7, %v3946_v50, -1e+30 }
 0x493   : > { %v4108_v13 = vsel %vm4050_vm8, %v8769_v60, -inf }
 0x495   : > { %v6936_v43 = vpop.f32.mrb[8].mxu0  ;;  %4106 = vmax.xlane.f32.xlu1 %v4105_v17 }
 0x496   : > { %v8763_v4 = vsel %vm4023_vm7, %v6936_v43, -1e+30  ;;  %v3879_v0 = vpop.f32.mrb[9].mxu0 }
 0x497   : > { %v6937_v48 = vpop.f32.mrb[10].mxu0  ;;  %v4102_v38 = vsel %vm4050_vm8, %v8763_v4, -inf  ;;  %v8781_v45 = vsel %vm4023_vm7, %v3879_v0, -1e+30 }
 0x498   : > { %v3882_v46 = vpop.f32.mrb[11].mxu0  ;;  %4103 = vmax.xlane.f32.xlu0 %v4102_v38  ;;  %v4096_v11 = vsel %vm4050_vm8, %v8781_v45, -inf }
 0x499   : > { %v8773_v19 = vsel %vm4023_vm7, %v3882_v46, -1e+30 }
 0x49a   : > { %v4099_v25 = vsel %vm4050_vm8, %v8773_v19, -inf }
 0x49b   : > { %4100 = vmax.xlane.f32.xlu1 %v4099_v25 }
 0x49c   : > { %4109 = vmax.xlane.f32.xlu0 %v4108_v13 }
 0x4a0   : > { %4097 = vmax.xlane.f32.xlu0 %v4096_v11 }
 0x4a5   : > { %v6952_v52 = vpop.f32.mrb[12].mxu0 }
 0x4a6   : > { %v8787_v27 = vsel %vm4023_vm7, %v6952_v52, -1e+30  ;;  %v4007_v35 = vpop.f32.mrb[13].mxu0 }
 0x4a7   : > { %v6953_v10 = vpop.f32.mrb[14].mxu0  ;;  %v4120_v2 = vsel %vm4050_vm8, %v8787_v27, -inf  ;;  %v8793_v5 = vsel %vm4023_vm7, %v4007_v35, -1e+30 }
 0x4a8   : > { %v4010_v59 = vpop.f32.mrb[15].mxu0  ;;  %4121 = vmax.xlane.f32.xlu1 %v4120_v2  ;;  %v4114_v16 = vsel %vm4050_vm8, %v8793_v5, -inf }
 0x4a9   : > { %v8797_v33 = vsel %vm4023_vm7, %v4010_v59, -1e+30 }
 0x4aa   : > { %v4117_v39 = vsel %vm4050_vm8, %v8797_v33, -inf }
 0x4ab   : > { %4118 = vmax.xlane.f32.xlu0 %v4117_v39 }
 0x4ac   : > { %4115 = vmax.xlane.f32.xlu1 %v4114_v16 }
 0x4bd   : > { %2696 = vrot.lane.b32.xlu1 %v9579_v41, %s7473_s8 }
 0x4c1   : > { %2702 = vrot.lane.b32.xlu1 %v9580_v21, %s7473_s8  ;;  %2690 = vrot.lane.b32.xlu0 %v9581_v14, %s7473_s8 }
 0x4ee   : > { %v4059_v23 = vpop.xlane.xlu0 %4058 }
 0x4ef   : > { %v4125_v30 = vsub.f32 %v8661_v40, %v4059_v23  ;;  %v4053_v54 = vpop.xlane.xlu1 %4052 }
 0x4f0   : > { %v4123_v36 = vsub.f32 %v8665_v9, %v4053_v54 }
 0x4f1   : > { %v4151_v22 = vmul.f32 1.442695, %v4125_v30 }
 0x4f2   : > { %v4147_v12 = vmul.f32 1.442695, %v4123_v36  ;;  %v4056_v29 = vpop.xlane.xlu0 %4055 }
 0x4f3   : > { %7187 = vpow2.f32 %v4151_v22  ;;  %v4124_v62 = vsub.f32 %v8673_v47, %v4056_v29 }
 0x4f4   : > { %7189 = vpow2.f32 %v4147_v12 }
 0x4f5   : > { %v4149_v51 = vmul.f32 1.442695, %v4124_v62 }
 0x4f7   : > { %7191 = vpow2.f32 %v4149_v51 }
 0x4fd   : > { %v8814_v37 = vpop.eup %7187 }
 0x4fe   : > { %v8816_v24 = vpop.eup %7189  ;;  %v4077_v50 = vpop.xlane.xlu1 %4076  ;;  %v4201_v40 = vsel %vm4050_vm8, %v8814_v37, 0.0 }
 0x4ff   : > { %v4131_v17 = vsub.f32 %v8679_v55, %v4077_v50  ;;  %4202 = vadd.xlane.f32.xlu0 %v4201_v40  ;;  %v4195_v9 = vsel %vm4050_vm8, %v8816_v24, 0.0 }
 0x500   : > { %4196 = vadd.xlane.f32.xlu1 %v4195_v9 }
 0x501   : > { %v8823_v43 = vpop.eup %7191  ;;  %v4163_v47 = vmul.f32 1.442695, %v4131_v17 }
 0x502   : > { %v4071_v0 = vpop.xlane.xlu1 %4070  ;;  %v4198_v48 = vsel %vm4050_vm8, %v8823_v43, 0.0 }
 0x503   : > { %7193 = vpow2.f32 %v4163_v47  ;;  %v4129_v38 = vsub.f32 %v8685_v49, %v4071_v0  ;;  %4199 = vadd.xlane.f32.xlu0 %v4198_v48 }
 0x505   : > { %v4068_v46 = vpop.xlane.xlu0 %4067  ;;  %v4159_v25 = vmul.f32 1.442695, %v4129_v38 }
 0x506   : > { %v4128_v55 = vsub.f32 %v8691_v57, %v4068_v46 }
 0x507   : > { %7195 = vpow2.f32 %v4159_v25 }
 0x508   : > { %v4157_v13 = vmul.f32 1.442695, %v4128_v55  ;;  %v4065_v11 = vpop.xlane.xlu1 %4064 }
 0x509   : > { %v4074_v52 = vpop.xlane.xlu0 %4073  ;;  %v4127_v35 = vsub.f32 %v8701_v42, %v4065_v11 }
 0x50a   : > { %7197 = vpow2.f32 %v4157_v13  ;;  %v4130_v10 = vsub.f32 %v8697_v15, %v4074_v52 }
 0x50b   : > { %v4155_v59 = vmul.f32 1.442695, %v4127_v35 }
 0x50c   : > { %v4161_v2 = vmul.f32 1.442695, %v4130_v10 }
 0x50d   : > { %v8831_v39 = vpop.eup %7193  ;;  %v4062_v16 = vpop.xlane.xlu0 %4061 }
 0x50e   : > { %7199 = vpow2.f32 %v4161_v2  ;;  %v4126_v49 = vsub.f32 %v8709_v53, %v4062_v16  ;;  %v4095_v41 = vpop.xlane.xlu1 %4094  ;;  %v4219_v57 = vsel %vm4050_vm8, %v8831_v39, 0.0 }
 0x50f   : > { %v4137_v21 = vsub.f32 %v8715_v34, %v4095_v41  ;;  %4220 = vadd.xlane.f32.xlu0 %v4219_v57  ;;  %7201 = vpow2.f32 %v4155_v59 }
 0x510   : > { %v4153_v42 = vmul.f32 1.442695, %v4126_v49 }
 0x511   : > { %v8837_v14 = vpop.eup %7195  ;;  %v4175_v15 = vmul.f32 1.442695, %v4137_v21 }
 0x512   : > { %7203 = vpow2.f32 %v4153_v42  ;;  %v4089_v23 = vpop.xlane.xlu1 %4088  ;;  %v4213_v30 = vsel %vm4050_vm8, %v8837_v14, 0.0 }
 0x513   : > { %7205 = vpow2.f32 %v4175_v15  ;;  %v4135_v53 = vsub.f32 %v8721_v6, %v4089_v23  ;;  %4214 = vadd.xlane.f32.xlu0 %v4213_v30 }
 0x514   : > { %v8842_v54 = vpop.eup %7197 }
 0x515   : > { %v4086_v36 = vpop.xlane.xlu0 %4085  ;;  %v4171_v22 = vmul.f32 1.442695, %v4135_v53  ;;  %v4210_v12 = vsel %vm4050_vm8, %v8842_v54, 0.0 }
 0x516   : > { %v4134_v34 = vsub.f32 %v8727_v8, %v4086_v36 }
 0x517   : > { %7207 = vpow2.f32 %v4171_v22  ;;  %4211 = vadd.xlane.f32.xlu0 %v4210_v12 }
 0x518   : > { %v8847_v29 = vpop.eup %7199  ;;  %v4169_v62 = vmul.f32 1.442695, %v4134_v34  ;;  %v4083_v51 = vpop.xlane.xlu1 %4082 }
 0x519   : > { %v4092_v50 = vpop.xlane.xlu0 %4091  ;;  %v4216_v6 = vsel %vm4050_vm8, %v8847_v29, 0.0  ;;  %v4133_v40 = vsub.f32 %v8737_v7, %v4083_v51  ;;  %v8852_v17 = vpop.eup %7201 }
 0x51a   : > { %7209 = vpow2.f32 %v4169_v62  ;;  %v4136_v8 = vsub.f32 %v8733_v1, %v4092_v50  ;;  %4217 = vadd.xlane.f32.xlu1 %v4216_v6  ;;  %v4207_v46 = vsel %vm4050_vm8, %v8852_v17, 0.0 }
 0x51b   : > { %v4167_v9 = vmul.f32 1.442695, %v4133_v40 }
 0x51c   : > { %v8855_v47 = vpop.eup %7203  ;;  %v4173_v0 = vmul.f32 1.442695, %v4136_v8 }
 0x51d   : > { %v8857_v48 = vpop.eup %7205  ;;  %7211 = vpow2.f32 %v4167_v9  ;;  %v4080_v38 = vpop.xlane.xlu0 %4079  ;;  %v4204_v7 = vsel %vm4050_vm8, %v8855_v47, 0.0 }
 0x51e   : > { %7213 = vpow2.f32 %v4173_v0  ;;  %v4132_v25 = vsub.f32 %v8745_v31, %v4080_v38  ;;  %4208 = vadd.xlane.f32.xlu1 %v4207_v46  ;;  %4205 = vadd.xlane.f32.xlu0 %v4204_v7  ;;  %v4113_v1 = vpop.xlane.xlu1 %4112  ;;  %v4237_v13 = vsel %vm4050_vm8, %v8857_v48, 0.0 }
 0x51f   : > { %v4143_v55 = vsub.f32 %v8751_v58, %v4113_v1 }
 0x520   : > { %v4165_v11 = vmul.f32 1.442695, %v4132_v25 }
 0x521   : > { %v8867_v52 = vpop.eup %7207  ;;  %v4187_v35 = vmul.f32 1.442695, %v4143_v55 }
 0x522   : > { %7215 = vpow2.f32 %v4165_v11  ;;  %4238 = vadd.xlane.f32.xlu1 %v4237_v13  ;;  %v4107_v10 = vpop.xlane.xlu1 %4106  ;;  %v4231_v31 = vsel %vm4050_vm8, %v8867_v52, 0.0  ;;  %v2740_v11 = vshrl.u32 %v8809_v20, 16 }
 0x523   : > { %7217 = vpow2.f32 %v4187_v35  ;;  %v4141_v2 = vsub.f32 %v8757_v61, %v4107_v10 }
 0x524   : > { %v8872_v59 = vpop.eup %7209 }
 0x525   : > { %v4104_v16 = vpop.xlane.xlu0 %4103  ;;  %v4228_v58 = vsel %vm4050_vm8, %v8872_v59, 0.0  ;;  %v4183_v49 = vmul.f32 1.442695, %v4141_v2 }
 0x526   : > { %4229 = vadd.xlane.f32.xlu0 %v4228_v58  ;;  %4232 = vadd.xlane.f32.xlu1 %v4231_v31  ;;  %v4140_v22 = vsub.f32 %v8763_v4, %v4104_v16 }
 0x527   : > { %v8876_v41 = vpop.eup %7211  ;;  %7219 = vpow2.f32 %v4183_v49 }
 0x528   : > { %v8878_v57 = vpop.eup %7213  ;;  %v4101_v21 = vpop.xlane.xlu1 %4100  ;;  %v4225_v61 = vsel %vm4050_vm8, %v8876_v41, 0.0  ;;  %v4181_v50 = vmul.f32 1.442695, %v4140_v22 }
 0x529   : > { %v4110_v42 = vpop.xlane.xlu0 %4109  ;;  %v4234_v15 = vsel %vm4050_vm8, %v8878_v57, 0.0  ;;  %v4139_v23 = vsub.f32 %v8773_v19, %v4101_v21 }
 0x52a   : > { %v4142_v30 = vsub.f32 %v8769_v60, %v4110_v42  ;;  %4235 = vadd.xlane.f32.xlu0 %v4234_v15  ;;  %4226 = vadd.xlane.f32.xlu1 %v4225_v61  ;;  %v9582_v61 = vld [vmem:[#allocation15_spill] sm:$0xff] }
 0x52b   : > { %v4179_v53 = vmul.f32 1.442695, %v4139_v23 }
 0x52c   : > { %v8886_v36 = vpop.eup %7215  ;;  %v4185_v34 = vmul.f32 1.442695, %v4142_v30 }
 0x52d   : > { %v8889_v12 = vpop.eup %7217  ;;  %7221 = vpow2.f32 %v4179_v53  ;;  %v4098_v62 = vpop.xlane.xlu0 %4097  ;;  %v4222_v51 = vsel %vm4050_vm8, %v8886_v36, 0.0 }
 0x52e   : > { %7223 = vpow2.f32 %v4185_v34  ;;  %v4138_v19 = vsub.f32 %v8781_v45, %v4098_v62  ;;  %4223 = vadd.xlane.f32.xlu0 %v4222_v51  ;;  %v4255_v60 = vsel %vm4050_vm8, %v8889_v12, 0.0 }
 0x52f   : > { %4256 = vadd.xlane.f32.xlu1 %v4255_v60 }
 0x530   : > { %v4177_v6 = vmul.f32 1.442695, %v4138_v19 }
 0x531   : > { %v8896_v40 = vpop.eup %7219 }
 0x532   : > { %7225 = vpow2.f32 %v4177_v6  ;;  %v4249_v4 = vsel %vm4050_vm8, %v8896_v40, 0.0 }
 0x533   : > { %4250 = vadd.xlane.f32.xlu1 %v4249_v4  ;;  %7227 = vpow2.f32 %v4181_v50 }
 0x535   : > { %v4122_v8 = vpop.xlane.xlu1 %4121 }
 0x536   : > { %v4146_v35 = vsub.f32 %v8787_v27, %v4122_v8 }
 0x537   : > { %v8900_v9 = vpop.eup %7221 }
 0x538   : > { %v8902_v0 = vpop.eup %7223  ;;  %v4119_v45 = vpop.xlane.xlu0 %4118  ;;  %v4243_v38 = vsel %vm4050_vm8, %v8900_v9, 0.0  ;;  %v4193_v21 = vmul.f32 1.442695, %v4146_v35 }
 0x539   : > { %v4145_v46 = vsub.f32 %v8797_v33, %v4119_v45  ;;  %v4116_v7 = vpop.xlane.xlu1 %4115  ;;  %v4252_v25 = vsel %vm4050_vm8, %v8902_v0, 0.0  ;;  %4244 = vadd.xlane.f32.xlu1 %v4243_v38 }
 0x53a   : > { %v4144_v1 = vsub.f32 %v8793_v5, %v4116_v7  ;;  %4253 = vadd.xlane.f32.xlu0 %v4252_v25 }
 0x53b   : > { %v4191_v55 = vmul.f32 1.442695, %v4145_v46 }
 0x53c   : > { %v8910_v13 = vpop.eup %7225  ;;  %v4189_v10 = vmul.f32 1.442695, %v4144_v1  ;;  %v2691_v2 = vpop.permute.xlu0 %2690 }
 0x53d   : > { %7229 = vpow2.f32 %v4191_v55  ;;  %v2738_v33 = vpack.i.b16 %v2691_v2, %v8809_v20  ;;  %v2741_v31 = vshrl.u32 %v2691_v2, 16  ;;  %v2697_v16 = vpop.permute.xlu1 %2696  ;;  %v4240_v58 = vsel %vm4050_vm8, %v8910_v13, 0.0  ;;  %v8917_v49 = vpop.eup %7227 }
 0x53e   : > { %4241 = vadd.xlane.f32.xlu0 %v4240_v58  ;;  %7231 = vpow2.f32 %v4189_v10  ;;  %v4246_v27 = vsel %vm4050_vm8, %v8917_v49, 0.0  ;;  %v2748_v23 = vshrl.u32 %v2697_v16, 16 }
 0x53f   : > { %v2742_v5 = vpack.i.b16 %v2741_v31, %v2740_v11  ;;  %v3016_v42 = vcombine.high %v2738_v33, %v9582_v61  ;;  %v3023_v22 = vrot.slane %v2738_v33, %v7834_v18  ;;  %7233 = vpow2.f32 %v4193_v21 }
 0x541   : > { %v2703_v15 = vpop.permute.xlu1 %2702  ;;  %v3082_v53 = vcombine.high %v2742_v5, %v9582_v61  ;;  %v3030_v19 = vrot.slane %v3016_v42, %v7834_v18  ;;  %v3089_v45 = vrot.slane %v2742_v5, %v7834_v18 }
 0x542   : > { %v2746_v30 = vpack.i.b16 %v2703_v15, %v2697_v16  ;;  %v2749_v20 = vshrl.u32 %v2703_v15, 16  ;;  %4247 = vadd.xlane.f32.xlu0 %v4246_v27 }
 0x543   : > { %v3096_v38 = vrot.slane %v3082_v53, %v7834_v18 }
 0x544   : > { %v2750_v34 = vpack.i.b16 %v2749_v20, %v2748_v23  ;;  %v3031_v62 = vcombine.high %v2746_v30, %v9582_v61  ;;  %v3038_v51 = vrot.slane %v2746_v30, %v7834_v18 }
 0x546   : > { %v3045_v60 = vrot.slane %v3031_v62, %v7834_v18  ;;  %v3046_v50 = vcombine.low %v3023_v22, %v3038_v51  ;;  %v3047_v6 = vcombine.high %v3023_v22, %v3038_v51  ;;  %v3097_v4 = vcombine.high %v2750_v34, %v9582_v61 }
 0x547   : > { %v8929_v8 = vpop.eup %7229  ;;  %v3104_v46 = vrot.slane %v2750_v34, %v7834_v18 }
 0x548   : > { %v3054_v7 = vrot.slane %v3046_v50, %v7849_v28  ;;  %v3061_v25 = vrot.slane %v3047_v6, %v7849_v28  ;;  %v3062_v1 = vcombine.low %v3030_v19, %v3045_v60  ;;  %v3063_v55 = vcombine.high %v3030_v19, %v3045_v60  ;;  %v8941_v5 = vpop.eup %7231 }
 0x549   : > { %v3111_v11 = vrot.slane %v3097_v4, %v7834_v18  ;;  %v3112_v35 = vcombine.low %v3089_v45, %v3104_v46  ;;  %v3113_v10 = vcombine.high %v3089_v45, %v3104_v46  ;;  %v4261_v2 = vsel %vm4050_vm8, %v8929_v8, 0.0  ;;  %v8953_v6 = vpop.eup %7233 }
 0x54a   : > { %v3070_v33 = vrot.slane %v3062_v1, %v7849_v28  ;;  %v3077_v31 = vrot.slane %v3063_v55, %v7849_v28  ;;  %v3348_v16 = vcombine.low %v3054_v7, %v3061_v25  ;;  %v6609_v58 = vcombine.high %v3054_v7, %v3061_v25  ;;  %4262 = vadd.xlane.f32.xlu0 %v4261_v2 }
 0x54b   : > { %v3120_v21 = vrot.slane %v3112_v35, %v7849_v28  ;;  %v3127_v61 = vrot.slane %v3113_v10, %v7849_v28  ;;  %v3128_v42 = vcombine.low %v3096_v38, %v3111_v11  ;;  %v3129_v15 = vcombine.high %v3096_v38, %v3111_v11 }
 0x54c   : > { %v3355_v27 = vrot.slane %v3348_v16, %v7834_v18  ;;  %v3363_v23 = vrot.slane %v6609_v58, %v7834_v18  ;;  %v3364_v30 = vcombine.low %v3070_v33, %v3077_v31  ;;  %v6610_v20 = vcombine.high %v3070_v33, %v3077_v31 }
 0x54d   : > { %v3136_v53 = vrot.slane %v3128_v42, %v7849_v28  ;;  %v3143_v22 = vrot.slane %v3129_v15, %v7849_v28  ;;  %v3398_v34 = vcombine.low %v3120_v21, %v3127_v61  ;;  %v6611_v62 = vcombine.high %v3120_v21, %v3127_v61 }
 0x54e   : > { %v3371_v51 = vrot.slane %v3364_v30, %v7834_v18  ;;  %v3379_v19 = vrot.slane %v6610_v20, %v7834_v18  ;;  %v3380_v60 = vcombine.low %v3355_v27, %v3363_v23  ;;  %v4258_v50 = vsel %vm4050_vm8, %v8941_v5, 0.0 }
 0x54f   : > { %v3405_v4 = vrot.slane %v3398_v34, %v7834_v18  ;;  %v3413_v45 = vrot.slane %v6611_v62, %v7834_v18  ;;  %v3414_v38 = vcombine.low %v3136_v53, %v3143_v22  ;;  %v6612_v46 = vcombine.high %v3136_v53, %v3143_v22  ;;  %4259 = vadd.xlane.f32.xlu1 %v4258_v50 }
 0x550   : > { %v3388_v7 = vcombine.low %v3371_v51, %v3379_v19  ;;  %v4264_v11 = vsel %vm4050_vm8, %v8953_v6, 0.0  ;;  %v3387_v35 = vrot.slane %v3380_v60, %v7849_v28  ;;  %v3487_v53 = vunpack.c.h.b16 %v8622_v32 }
 0x551   : > { %v3421_v25 = vrot.slane %v3414_v38, %v7834_v18  ;;  %v3429_v1 = vrot.slane %v6612_v46, %v7834_v18  ;;  %v3430_v55 = vcombine.low %v3405_v4, %v3413_v45  ;;  %v3499_v51 = vunpack.c.h.b16 %v8581_v56 }
 0x552   : > { %v3395_v10 = vrot.slane %v3388_v7, %v7849_v28  ;;  %v3493_v50 = vunpack.c.h.b16 %v8641_v44  ;;  %v3505_v38 = vunpack.c.h.b16 %v8590_v63 }
 0x553   : > { %4265 = vadd.xlane.f32.xlu1 %v4264_v11  ;;  %v3438_v2 = vcombine.low %v3421_v25, %v3429_v1  ;;  %v3437_v16 = vrot.slane %v3430_v55, %v7849_v28 }
 0x554   : > { %v3396_v33 = vcombine.low %v3387_v35, %v3395_v10  ;;  %v3397_v31 = vcombine.high %v3387_v35, %v3395_v10 }
 0x555   : > { %v3445_v58 = vrot.slane %v3438_v2, %v7849_v28 }
 0x556   : > { %v3475_v42 = vshrl.u32 %v3396_v33, 16  ;;  %v3481_v20 = vshrl.u32 %v3397_v31, 16 }
 0x557   : > { %v3446_v21 = vcombine.low %v3437_v16, %v3445_v58  ;;  %v3447_v61 = vcombine.high %v3437_v16, %v3445_v58 }
 0x559   : > { %v3474_v15 = vpack.i.b16 %v3446_v21, %v3396_v33  ;;  %v3476_v27 = vshrl.u32 %v3446_v21, 16  ;;  %v8965_v23 = vpack.i.b16 %v3447_v61, %v3397_v31  ;;  %v3482_v30 = vshrl.u32 %v3447_v61, 16 }
 0x55b   : > { %v3488_v22 = vunpack.c.l.b16 %v3474_v15  ;;  %v8968_v34 = vpack.i.b16 %v3476_v27, %v3475_v42  ;;  %v3500_v62 = vunpack.c.l.b16 %v8965_v23  ;;  %v8972_v19 = vpack.i.b16 %v3482_v30, %v3481_v20 }
 0x55c   : > { %v6648_v61 = vcombine.high %v3474_v15, %v3474_v15 }
 0x55d   : > { %v4392_v60 = vpack.c.b16 %v3488_v22, %v3487_v53  ;;  %v3494_v4 = vunpack.c.l.b16 %v8968_v34  ;;  %v8976_v45 = vpack.c.b16 %v3500_v62, %v3499_v51  ;;  %v3506_v32 = vunpack.c.l.b16 %v8972_v19 }
 0x55f   : > { %6962 = vmatprep.subr.bf16.mxu1 %v4392_v60  ;;  %v8980_v46 = vpack.c.b16 %v3494_v4, %v3493_v50  ;;  %v8982_v7 = vpack.c.b16 %v3506_v32, %v3505_v38 }
 0x58c   : > { %v4203_v25 = vpop.xlane.xlu0 %4202 }
 0x58d   : > { %v4197_v1 = vpop.xlane.xlu1 %4196  ;;  %7235 = vrcp.f32 %v4203_v25 }
 0x58e   : > { %7237 = vrcp.f32 %v4197_v1 }
 0x590   : > { %v4200_v55 = vpop.xlane.xlu0 %4199 }
 0x591   : > { %7239 = vrcp.f32 %v4200_v55 }
 0x597   : > { %v7236_v44 = vpop.eup %7235 }
 0x598   : > { %v7238_v11 = vpop.eup %7237  ;;  %v4293_v10 = vmul.f32 %v7236_v44, %v8814_v37  ;;  %v4402_v37 = vsel %vm4340_vm6, %v6648_v61, 0 }
 0x599   : > { %v4291_v33 = vmul.f32 %v7238_v11, %v8816_v24 }
 0x59a   : > { %v4316_v58 = vpack.c.bf16 %v4293_v10, %v4293_v10 }
 0x59b   : > { %v7240_v35 = vpop.eup %7239 }
 0x59c   : > { %v4221_v2 = vpop.xlane.xlu0 %4220  ;;  %v4292_v31 = vmul.f32 %v7240_v35, %v8823_v43 }
 0x59d   : > { %7241 = vrcp.f32 %v4221_v2 }
 0x59e   : > { %v4315_v16 = vpack.c.bf16 %v4292_v31, %v4291_v33 }
 0x5a0   : > { %6958 = vmatprep.mubr.msk.bf16.mxu1 %vm4050_vm8, %v4315_v16  ;;  %v4215_v21 = vpop.xlane.xlu0 %4214 }
 0x5a1   : > { %6959 = vmatmul.mubr.msk.bf16.vlgmr.msra.gmra.mrb[28].mxu1 %vm4050_vm8, %v4316_v58  ;;  %7243 = vrcp.f32 %v4215_v21 }
 0x5a2   : > { %6963 = vmatpush3.bf16.msra.mxu1 %v4392_v60 }
 0x5a3   : > { %7087 = vmatprep.subr.msk.bf16.mxu1 %vm4340_vm6, %v6648_v61 }
 0x5a4   : > { %v4212_v42 = vpop.xlane.xlu0 %4211 }
 0x5a6   : > { %6965 = vmatpush3.bf16.msra.mxu1 %v4402_v37 }
 0x5a7   : > { %v4218_v24 = vpop.xlane.xlu1 %4217  ;;  %6978 = vmatprep.subr.bf16.mxu1 %v8980_v46  ;;  %v7242_v30 = vpop.eup %7241 }
 0x5a8   : > { %7245 = vrcp.f32 %v4218_v24  ;;  %v4299_v22 = vmul.f32 %v7242_v30, %v8831_v39  ;;  %v6657_v39 = vcombine.low %v8581_v56, %v8581_v56  ;;  %v6654_v56 = vcombine.high %v8968_v34, %v8968_v34 }
 0x5a9   : > { %7247 = vrcp.f32 %v4212_v42 }
 0x5aa   : > { %v4320_v25 = vpack.c.bf16 %v4299_v22, %v4299_v22  ;;  %v4582_v2 = vsel %vm4340_vm6, %v6657_v39, 0 }
 0x5ab   : > { %v4209_v43 = vpop.xlane.xlu1 %4208  ;;  %v4206_v27 = vpop.xlane.xlu0 %4205 }
 0x5ac   : > { %7249 = vrcp.f32 %v4209_v43  ;;  %v7244_v20 = vpop.eup %7243 }
 0x5ad   : > { %7251 = vrcp.f32 %v4206_v27  ;;  %v4297_v60 = vmul.f32 %v7244_v20, %v8837_v14 }
 0x5af   : > { %v4239_v15 = vpop.xlane.xlu1 %4238 }
 0x5b0   : > { %7253 = vrcp.f32 %v4239_v15 }
 0x5b2   : > { %v7246_v53 = vpop.eup %7245 }
 0x5b3   : > { %v4230_v62 = vpop.xlane.xlu0 %4229  ;;  %v4233_v51 = vpop.xlane.xlu1 %4232  ;;  %v4298_v50 = vmul.f32 %v7246_v53, %v8847_v29 }
 0x5b4   : > { %v7248_v4 = vpop.eup %7247  ;;  %7255 = vrcp.f32 %v4233_v51 }
 0x5b5   : > { %v4319_v38 = vpack.c.bf16 %v4298_v50, %v4297_v60  ;;  %v4296_v55 = vmul.f32 %v7248_v4, %v8842_v54 }
 0x5b6   : > { %v7250_v32 = vpop.eup %7249 }
 0x5b7   : > { %v7252_v1 = vpop.eup %7251  ;;  %6974 = vmatprep.mubr.msk.bf16.mxu0 %vm4050_vm8, %v4319_v38  ;;  %v4236_v44 = vpop.xlane.xlu0 %4235  ;;  %v4295_v29 = vmul.f32 %v7250_v32, %v8852_v17  ;;  %v4318_v10 = vpack.c.bf16 %v4296_v55, %v4296_v55 }
 0x5b8   : > { %v4227_v11 = vpop.xlane.xlu1 %4226  ;;  %7257 = vrcp.f32 %v4236_v44  ;;  %6975 = vmatmul.mubr.msk.bf16.vlgmr.msra.gmra.mrb[16].mxu0 %vm4050_vm8, %v4320_v25  ;;  %v4294_v14 = vmul.f32 %v7252_v1, %v8855_v47  ;;  %v4522_v47 = vsel %vm4340_vm6, %v6654_v56, 0 }
 0x5b9   : > { %7259 = vrcp.f32 %v4230_v62  ;;  %6987 = vmatpush3.bf16.msra.mxu0 %v8652_v3 }
 0x5ba   : > { %7261 = vrcp.f32 %v4227_v11  ;;  %7090 = vmatprep.subr.msk.bf16.mxu0 %vm4340_vm6, %v6657_v39  ;;  %v4317_v54 = vpack.c.bf16 %v4295_v29, %v4294_v14  ;;  %v7254_v3 = vpop.eup %7253 }
 0x5bb   : > { %v4224_v35 = vpop.xlane.xlu0 %4223  ;;  %v4305_v58 = vmul.f32 %v7254_v3, %v8857_v48 }
 0x5bc   : > { %7263 = vrcp.f32 %v4224_v35  ;;  %6966 = vmatprep.mubr.msk.bf16.mxu1 %vm4050_vm8, %v4317_v54  ;;  %v4257_v33 = vpop.xlane.xlu1 %4256 }
 0x5bd   : > { %6989 = vmatpush3.bf16.msra.mxu0 %v4582_v2  ;;  %6967 = vmatmul.mubr.msk.bf16.vlgmr.msra.gmra.mrb[32].mxu1 %vm4050_vm8, %v4318_v10  ;;  %7265 = vrcp.f32 %v4257_v33  ;;  %v4324_v43 = vpack.c.bf16 %v4305_v58, %v4305_v58  ;;  %v7179_v2 = vld [vmem:[%s7705_s23] sm:$0xff]  }
 0x5be   : > { %7002 = vmatprep.subr.bf16.mxu0 %v8583_v26  ;;  %6979 = vmatpush3.bf16.msra.mxu1 %v8980_v46  ;;  %v7256_v17 = vpop.eup %7255 }
 0x5bf   : > { %7089 = vmatprep.subr.msk.bf16.mxu1 %vm4340_vm6, %v6654_v56  ;;  %v4303_v34 = vmul.f32 %v7256_v17, %v8867_v52  ;;  %v6663_v52 = vcombine.low %v8590_v63, %v8590_v63 }
 0x5c0   : > { %v4251_v31 = vpop.xlane.xlu1 %4250 }
 0x5c1   : > { %7267 = vrcp.f32 %v4251_v31 }
 0x5c2   : > { %v7258_v16 = vpop.eup %7257  ;;  %6981 = vmatpush3.bf16.msra.mxu1 %v4522_v47 }
 0x5c3   : > { %v7260_v21 = vpop.eup %7259  ;;  %6994 = vmatprep.subr.bf16.mxu1 %v8976_v45  ;;  %v4304_v61 = vmul.f32 %v7258_v16, %v8878_v57 }
 0x5c4   : > { %v7262_v42 = vpop.eup %7261  ;;  %v4302_v24 = vmul.f32 %v7260_v21, %v8872_v59 }
 0x5c5   : > { %v4323_v46 = vpack.c.bf16 %v4304_v61, %v4303_v34  ;;  %v4301_v15 = vmul.f32 %v7262_v42, %v8876_v41  ;;  %v4702_v41 = vsel %vm4340_vm6, %v6663_v52, 0 }
 0x5c6   : > { %v7264_v37 = vpop.eup %7263  ;;  %v4245_v48 = vpop.xlane.xlu1 %4244  ;;  %v4322_v59 = vpack.c.bf16 %v4302_v24, %v4302_v24 }
 0x5c7   : > { %6990 = vmatprep.mubr.msk.bf16.mxu0 %vm4050_vm8, %v4323_v46  ;;  %v4254_v27 = vpop.xlane.xlu0 %4253  ;;  %v4300_v30 = vmul.f32 %v7264_v37, %v8886_v36  ;;  %v6660_v36 = vcombine.high %v8965_v23, %v8965_v23  ;;  %v7266_v63 = vpop.eup %7265 }
 0x5c8   : > { %7269 = vrcp.f32 %v4254_v27  ;;  %6991 = vmatmul.mubr.msk.bf16.vlgmr.msra.gmra.mrb[20].mxu0 %vm4050_vm8, %v4324_v43  ;;  %v4311_v60 = vmul.f32 %v7266_v63, %v8889_v12 }
 0x5c9   : > { %7003 = vmatpush3.bf16.msra.mxu0 %v8583_v26  ;;  %v4321_v57 = vpack.c.bf16 %v4301_v15, %v4300_v30  ;;  %7271 = vrcp.f32 %v4245_v48  ;;  %v9583_v26 = vmov 0.0   ;;  %v4642_v62 = vsel %vm4340_vm6, %v6660_v36, 0 }
 0x5ca   : > { %7092 = vmatprep.subr.msk.bf16.mxu0 %vm4340_vm6, %v6663_v52  ;;  %v4328_v32 = vpack.c.bf16 %v4311_v60, %v4311_v60 }
 0x5cb   : > { %6982 = vmatprep.mubr.msk.bf16.mxu1 %vm4050_vm8, %v4321_v57  ;;  %v4242_v20 = vpop.xlane.xlu0 %4241  ;;  %v7268_v22 = vpop.eup %7267 }
 0x5cc   : > { %7273 = vrcp.f32 %v4242_v20  ;;  %6983 = vmatmul.mubr.msk.bf16.vlgmr.msra.gmra.mrb[36].mxu1 %vm4050_vm8, %v4322_v59  ;;  %v4309_v23 = vmul.f32 %v7268_v22, %v8896_v40 }
 0x5cd   : > { %6995 = vmatpush3.bf16.msra.mxu1 %v8976_v45  ;;  %7005 = vmatpush3.bf16.msra.mxu0 %v4702_v41 }
 0x5ce   : > { %7091 = vmatprep.subr.msk.bf16.mxu1 %vm4340_vm6, %v6660_v36  ;;  %7018 = vmatprep.subr.bf16.mxu0 %v9583_v26 }
 0x5cf   : > { %v4248_v53 = vpop.xlane.xlu0 %4247 }
 0x5d0   : > { %7275 = vrcp.f32 %v4248_v53 }
 0x5d1   : > { %6997 = vmatpush3.bf16.msra.mxu1 %v4642_v62 }
 0x5d2   : > { %v7270_v51 = vpop.eup %7269  ;;  %7010 = vmatprep.subr.bf16.mxu1 %v8982_v7 }
 0x5d3   : > { %v4310_v45 = vmul.f32 %v7270_v51, %v8902_v0  ;;  %v7272_v50 = vpop.eup %7271 }
 0x5d4   : > { %v4307_v55 = vmul.f32 %v7272_v50, %v8900_v9  ;;  %v6666_v9 = vcombine.high %v8972_v19, %v8972_v19 }
 0x5d5   : > { %v4327_v4 = vpack.c.bf16 %v4310_v45, %v4309_v23 }
 0x5d6   : > { %v7274_v38 = vpop.eup %7273 }
 0x5d7   : > { %v4263_v25 = vpop.xlane.xlu0 %4262  ;;  %7006 = vmatprep.mubr.msk.bf16.mxu0 %vm4050_vm8, %v4327_v4  ;;  %v4306_v1 = vmul.f32 %v7274_v38, %v8910_v13 }
 0x5d8   : > { %7007 = vmatmul.mubr.msk.bf16.vlgmr.msra.gmra.mrb[24].mxu0 %vm4050_vm8, %v4328_v32  ;;  %7277 = vrcp.f32 %v4263_v25 }
 0x5d9   : > { %v4325_v12 = vpack.c.bf16 %v4307_v55, %v4306_v1  ;;  %7022 = vmatprep.mubr.msk.bf16.mxu0 %vm7465_vm3, %v9583_v26  ;;  %7019 = vmatpush3.bf16.msra.mxu0 %v7179_v2 }
 0x5da   : > { %v7276_v40 = vpop.eup %7275  ;;  %7020 = vmatprep.subr.bf16.mxu0 %v9583_v26 }
 0x5db   : > { %v4308_v0 = vmul.f32 %v7276_v40, %v8917_v49  ;;  %6998 = vmatprep.mubr.msk.bf16.mxu1 %vm4050_vm8, %v4325_v12  ;;  %v4762_v49 = vsel %vm4340_vm6, %v6666_v9, 0 }
 0x5dc   : > { %v4260_v44 = vpop.xlane.xlu1 %4259 }
 0x5dd   : > { %7279 = vrcp.f32 %v4260_v44  ;;  %v4326_v11 = vpack.c.bf16 %v4308_v0, %v4308_v0 }
 0x5df   : > { %6999 = vmatmul.mubr.msk.bf16.vlgmr.msra.gmra.mrb[40].mxu1 %vm4050_vm8, %v4326_v11 }
 0x5e0   : > { %v4266_v13 = vpop.xlane.xlu1 %4265  ;;  %7011 = vmatpush3.bf16.msra.mxu1 %v8982_v7 }
 0x5e1   : > { %7281 = vrcp.f32 %v4266_v13  ;;  %7093 = vmatprep.subr.msk.bf16.mxu1 %vm4340_vm6, %v6666_v9 }
 0x5e2   : > { %v7278_v39 = vpop.eup %7277 }
 0x5e3   : > { %v4313_v14 = vmul.f32 %v7278_v39, %v8929_v8 }
 0x5e4   : > { %7013 = vmatpush3.bf16.msra.mxu1 %v4762_v49 }
 0x5e5   : > { %7034 = vmatprep.subr.bf16.mxu1 %v9583_v26 }
 0x5e7   : > { %v7280_v29 = vpop.eup %7279 }
 0x5e8   : > { %v4312_v54 = vmul.f32 %v7280_v29, %v8941_v5 }
 0x5ea   : > { %v4329_v35 = vpack.c.bf16 %v4313_v14, %v4312_v54 }
 0x5eb   : > { %v7282_v19 = vpop.eup %7281 }
 0x5ec   : > { %v4314_v10 = vmul.f32 %v7282_v19, %v8953_v6  ;;  %7014 = vmatprep.mubr.msk.bf16.mxu1 %vm4050_vm8, %v4329_v35 }
 0x5ee   : > { %v4330_v7 = vpack.c.bf16 %v4314_v10, %v4314_v10 }
 0x5f0   : > { %7015 = vmatmul.mubr.msk.bf16.vlgmr.msra.gmra.mrb[44].mxu1 %vm4050_vm8, %v4330_v7 }
 0x5f1   : > { %7038 = vmatprep.mubr.msk.bf16.mxu1 %vm7465_vm3, %v9583_v26 }
 0x674   : > { %v6960_v8 = vpop.f32.mrb[28].mxu1 }
 0x675   : > { %v4378_v33 = vpop.f32.mrb[29].mxu1  ;;  %v6751_v3 = vpack.c.bf16 %v6960_v8, %v6960_v8 }
 0x676   : > { %v6961_v56 = vpop.f32.mrb[30].mxu1  ;;  %v6749_v17 = vpack.c.bf16 %v4378_v33, %v4378_v33 }
 0x677   : > { %v4381_v5 = vpop.f32.mrb[31].mxu1  ;;  %v4919_v34 = vshrl.u32 %v6751_v3, 16 }
 0x678   : > { %v6750_v16 = vpack.c.bf16 %v4381_v5, %v4381_v5  ;;  %v4895_v37 = vshrl.u32 %v6749_v17, 16 }
 0x67a   : > { %v4907_v15 = vshrl.u32 %v6750_v16, 16 }
 0x68b   : > { %v6976_v47 = vpop.f32.mrb[16].mxu0 }
 0x68c   : > { %v6757_v6 = vpack.c.bf16 %v6976_v47, %v6976_v47  ;;  %v4498_v31 = vpop.f32.mrb[17].mxu0 }
 0x68d   : > { %v6755_v58 = vpack.c.bf16 %v4498_v31, %v4498_v31  ;;  %v6977_v21 = vpop.f32.mrb[18].mxu0 }
 0x68e   : > { %v4918_v61 = vpack.i.b16 %v6757_v6, %v6751_v3  ;;  %v4920_v42 = vshrl.u32 %v6757_v6, 16  ;;  %v4501_v46 = vpop.f32.mrb[19].mxu0 }
 0x68f   : > { %v4894_v24 = vpack.i.b16 %v6755_v58, %v6749_v17  ;;  %v4896_v43 = vshrl.u32 %v6755_v58, 16  ;;  %v6756_v27 = vpack.c.bf16 %v4501_v46, %v4501_v46 }
 0x690   : > { %v4921_v48 = vpack.i.b16 %v4920_v42, %v4919_v34  ;;  %v6968_v30 = vpop.f32.mrb[32].mxu1  ;;  %v5107_v7 = vrot.slane %v4918_v61, %v7834_v18 }
 0x691   : > { %v4897_v52 = vpack.i.b16 %v4896_v43, %v4895_v37  ;;  %v4906_v57 = vpack.i.b16 %v6756_v27, %v6750_v16  ;;  %v4908_v59 = vshrl.u32 %v6756_v27, 16  ;;  %v4438_v20 = vpop.f32.mrb[33].mxu1  ;;  %v6754_v51 = vpack.c.bf16 %v6968_v30, %v6968_v30 }
 0x692   : > { %v6969_v41 = vpop.f32.mrb[34].mxu1  ;;  %v6752_v23 = vpack.c.bf16 %v4438_v20, %v4438_v20  ;;  %v5141_v2 = vrot.slane %v4921_v48, %v7834_v18  ;;  %v4971_v8 = vrot.slane %v4894_v24, %v7834_v18 }
 0x693   : > { %v4909_v36 = vpack.i.b16 %v4908_v59, %v4907_v15  ;;  %v4441_v63 = vpop.f32.mrb[35].mxu1  ;;  %v4955_v1 = vshrl.u32 %v6754_v51, 16  ;;  %v5005_v56 = vrot.slane %v4897_v52, %v7834_v18  ;;  %v9070_v5 = vrot.slane %v4906_v57, %v7834_v18 }
 0x694   : > { %v6753_v38 = vpack.c.bf16 %v4441_v63, %v4441_v63  ;;  %v4931_v0 = vshrl.u32 %v6752_v23, 16 }
 0x695   : > { %v9073_v3 = vrot.slane %v4909_v36, %v7834_v18 }
 0x696   : > { %v4943_v39 = vshrl.u32 %v6753_v38, 16 }
 0x69b   : > { %v6992_v53 = vpop.f32.mrb[20].mxu0 }
 0x69c   : > { %v4618_v22 = vpop.f32.mrb[21].mxu0  ;;  %v6763_v35 = vpack.c.bf16 %v6992_v53, %v6992_v53 }
 0x69d   : > { %v6993_v62 = vpop.f32.mrb[22].mxu0  ;;  %v6761_v19 = vpack.c.bf16 %v4618_v22, %v4618_v22 }
 0x69e   : > { %v4621_v60 = vpop.f32.mrb[23].mxu0  ;;  %v4925_v6 = vshrl.u32 %v6763_v35, 16 }
 0x69f   : > { %v6984_v45 = vpop.f32.mrb[36].mxu1  ;;  %v9063_v10 = vpack.c.bf16 %v4621_v60, %v4621_v60  ;;  %v4901_v31 = vshrl.u32 %v6761_v19, 16 }
 0x6a0   : > { %v6760_v50 = vpack.c.bf16 %v6984_v45, %v6984_v45  ;;  %v4558_v4 = vpop.f32.mrb[37].mxu1 }
 0x6a1   : > { %v6758_v32 = vpack.c.bf16 %v4558_v4, %v4558_v4  ;;  %v6985_v25 = vpop.f32.mrb[38].mxu1  ;;  %v4913_v16 = vshrl.u32 %v9063_v10, 16 }
 0x6a2   : > { %v4954_v55 = vpack.i.b16 %v6760_v50, %v6754_v51  ;;  %v4956_v12 = vshrl.u32 %v6760_v50, 16  ;;  %v4561_v40 = vpop.f32.mrb[39].mxu1 }
 0x6a3   : > { %v4930_v44 = vpack.i.b16 %v6758_v32, %v6752_v23  ;;  %v4932_v11 = vshrl.u32 %v6758_v32, 16  ;;  %v6759_v9 = vpack.c.bf16 %v4561_v40, %v4561_v40 }
 0x6a4   : > { %v4957_v13 = vpack.i.b16 %v4956_v12, %v4955_v1  ;;  %v9077_v34 = vrot.slane %v4954_v55, %v7834_v18 }
 0x6a5   : > { %v4933_v49 = vpack.i.b16 %v4932_v11, %v4931_v0  ;;  %v4942_v14 = vpack.i.b16 %v6759_v9, %v6753_v38  ;;  %v4944_v29 = vshrl.u32 %v6759_v9, 16  ;;  %v9080_v61 = vrot.slane %v4930_v44, %v7834_v18 }
 0x6a6   : > { %v9083_v24 = vrot.slane %v4957_v13, %v7834_v18 }
 0x6a7   : > { %v4945_v54 = vpack.i.b16 %v4944_v29, %v4943_v39  ;;  %v9086_v30 = vrot.slane %v4933_v49, %v7834_v18  ;;  %v9089_v15 = vrot.slane %v4942_v14, %v7834_v18 }
 0x6a9   : > { %v9095_v63 = vrot.slane %v4945_v54, %v7834_v18 }
 0x6ab   : > { %v7008_v33 = vpop.f32.mrb[24].mxu0 }
 0x6ac   : > { %v6769_v17 = vpack.c.bf16 %v7008_v33, %v7008_v33  ;;  %v4738_v47 = vpop.f32.mrb[25].mxu0 }
 0x6ad   : > { %v6767_v58 = vpack.c.bf16 %v4738_v47, %v4738_v47  ;;  %v7009_v21 = vpop.f32.mrb[26].mxu0 }
 0x6ae   : > { %v4924_v42 = vpack.i.b16 %v6769_v17, %v6763_v35  ;;  %v4926_v46 = vshrl.u32 %v6769_v17, 16  ;;  %v4741_v37 = vpop.f32.mrb[27].mxu0 }
 0x6af   : > { %v4900_v43 = vpack.i.b16 %v6767_v58, %v6761_v19  ;;  %v4902_v27 = vshrl.u32 %v6767_v58, 16  ;;  %v6768_v48 = vpack.c.bf16 %v4741_v37, %v4741_v37 }
 0x6b0   : > { %v4927_v52 = vpack.i.b16 %v4926_v46, %v4925_v6  ;;  %v5115_v57 = vrot.slane %v4924_v42, %v7834_v18 }
 0x6b1   : > { %v4903_v59 = vpack.i.b16 %v4902_v27, %v4901_v31  ;;  %v4979_v20 = vrot.slane %v4900_v43, %v7834_v18  ;;  %v4912_v41 = vpack.i.b16 %v6768_v48, %v9063_v10  ;;  %v4914_v36 = vshrl.u32 %v6768_v48, 16 }
 0x6b2   : > { %v5116_v53 = vcombine.low %v5107_v7, %v5115_v57  ;;  %v5117_v22 = vcombine.high %v5107_v7, %v5115_v57  ;;  %v5149_v62 = vrot.slane %v4927_v52, %v7834_v18  ;;  %v7000_v51 = vpop.f32.mrb[40].mxu1 }
 0x6b3   : > { %v4980_v60 = vcombine.low %v4971_v8, %v4979_v20  ;;  %v4981_v23 = vcombine.high %v4971_v8, %v4979_v20  ;;  %v5013_v45 = vrot.slane %v4903_v59, %v7834_v18  ;;  %v4915_v50 = vpack.i.b16 %v4914_v36, %v4913_v16  ;;  %v4678_v4 = vpop.f32.mrb[41].mxu1 }
 0x6b4   : > { %v5124_v38 = vrot.slane %v5116_v53, %v7849_v28  ;;  %v5131_v32 = vrot.slane %v5117_v22, %v7849_v28  ;;  %v5150_v25 = vcombine.low %v5141_v2, %v5149_v62  ;;  %v5151_v1 = vcombine.high %v5141_v2, %v5149_v62  ;;  %v7001_v55 = vpop.f32.mrb[42].mxu1 }
 0x6b5   : > { %v4988_v12 = vrot.slane %v4980_v60, %v7849_v28  ;;  %v4995_v40 = vrot.slane %v4981_v23, %v7849_v28  ;;  %v5014_v0 = vcombine.low %v5005_v56, %v5013_v45  ;;  %v5015_v44 = vcombine.high %v5005_v56, %v5013_v45  ;;  %v4681_v11 = vpop.f32.mrb[43].mxu1 }
 0x6b6   : > { %v5158_v9 = vrot.slane %v5150_v25, %v7849_v28  ;;  %v5165_v13 = vrot.slane %v5151_v1, %v7849_v28  ;;  %v5472_v39 = vcombine.low %v5124_v38, %v5131_v32  ;;  %v6697_v49 = vcombine.high %v5124_v38, %v5131_v32 }
 0x6b7   : > { %v5022_v14 = vrot.slane %v5014_v0, %v7849_v28  ;;  %v5029_v29 = vrot.slane %v5015_v44, %v7849_v28  ;;  %v5372_v54 = vcombine.low %v4988_v12, %v4995_v40  ;;  %v6693_v35 = vcombine.high %v4988_v12, %v4995_v40 }
 0x6b8   : > { %v5479_v19 = vrot.slane %v5472_v39, %v7834_v18  ;;  %v5487_v10 = vrot.slane %v6697_v49, %v7834_v18  ;;  %v5497_v7 = vcombine.low %v5158_v9, %v5165_v13  ;;  %v6698_v2 = vcombine.high %v5158_v9, %v5165_v13 }
 0x6b9   : > { %v5379_v8 = vrot.slane %v5372_v54, %v7834_v18  ;;  %v5387_v33 = vrot.slane %v6693_v35, %v7834_v18  ;;  %v5397_v56 = vcombine.low %v5022_v14, %v5029_v29  ;;  %v6694_v17 = vcombine.high %v5022_v14, %v5029_v29 }
 0x6ba   : > { %v9112_v47 = vrot.slane %v5497_v7, %v7834_v18  ;;  %v9115_v6 = vrot.slane %v6698_v2, %v7834_v18  ;;  %v5047_v31 = vrot.slane %v4912_v41, %v7834_v18  ;;  %v5081_v16 = vrot.slane %v4915_v50, %v7834_v18 }
 0x6bb   : > { %v5404_v58 = vrot.slane %v5397_v56, %v7834_v18  ;;  %v5412_v21 = vrot.slane %v6694_v17, %v7834_v18  ;;  %v6766_v42 = vpack.c.bf16 %v7000_v51, %v7000_v51  ;;  %v6764_v46 = vpack.c.bf16 %v4678_v4, %v4678_v4 }
 0x6bc   : > { %v5048_v37 = vcombine.low %v9070_v5, %v5047_v31  ;;  %v5049_v43 = vcombine.high %v9070_v5, %v5047_v31  ;;  %v5082_v27 = vcombine.low %v9073_v3, %v5081_v16  ;;  %v5083_v48 = vcombine.high %v9073_v3, %v5081_v16 }
 0x6bd   : > { %v4961_v52 = vshrl.u32 %v6766_v42, 16  ;;  %v4937_v57 = vshrl.u32 %v6764_v46, 16  ;;  %v9125_v59 = vpack.c.bf16 %v4681_v11, %v4681_v11  ;;  %v5388_v20 = vcombine.low %v5379_v8, %v5387_v33 }
 0x6be   : > { %v5056_v41 = vrot.slane %v5048_v37, %v7849_v28  ;;  %v5063_v36 = vrot.slane %v5049_v43, %v7849_v28  ;;  %v5090_v53 = vrot.slane %v5082_v27, %v7849_v28  ;;  %v5097_v22 = vrot.slane %v5083_v48, %v7849_v28 }
 0x6bf   : > { %v4949_v62 = vshrl.u32 %v9125_v59, 16  ;;  %v9133_v5 = vrot.slane %v5388_v20, %v7849_v28  ;;  %v5413_v51 = vcombine.low %v5404_v58, %v5412_v21  ;;  %v5488_v3 = vcombine.low %v5479_v19, %v5487_v10 }
 0x6c0   : > { %v5422_v60 = vcombine.low %v5056_v41, %v5063_v36  ;;  %v6695_v23 = vcombine.high %v5056_v41, %v5063_v36  ;;  %v5447_v45 = vcombine.low %v5090_v53, %v5097_v22  ;;  %v6696_v50 = vcombine.high %v5090_v53, %v5097_v22 }
 0x6c1   : > { %v9136_v4 = vrot.slane %v5413_v51, %v7849_v28  ;;  %v5675_v38 = vshrl.u32 %v9133_v5, 16  ;;  %v9584_v32 = vmov 0   ;;  %v9144_v1 = vrot.slane %v5488_v3, %v7849_v28 }
 0x6c2   : > { %v9141_v25 = vcombine.high %v9133_v5, %v9584_v32  ;;  %v5429_v55 = vrot.slane %v5422_v60, %v7834_v18  ;;  %v5437_v12 = vrot.slane %v6695_v23, %v7834_v18  ;;  %v5454_v40 = vrot.slane %v5447_v45, %v7834_v18 }
 0x6c3   : > { %v5462_v0 = vrot.slane %v6696_v50, %v7834_v18  ;;  %v7016_v44 = vpop.f32.mrb[44].mxu1  ;;  %v5676_v11 = vshrl.u32 %v9136_v4, 16  ;;  %v9153_v9 = vcombine.high %v9136_v4, %v9584_v32  ;;  %v5513_v39 = vcombine.low %v9112_v47, %v9115_v6 }
 0x6c4   : > { %v5681_v13 = vshrl.u32 %v9141_v25, 16  ;;  %v6772_v49 = vpack.c.bf16 %v7016_v44, %v7016_v44  ;;  %v4798_v14 = vpop.f32.mrb[45].mxu1  ;;  %v5438_v29 = vcombine.low %v5429_v55, %v5437_v12  ;;  %v5699_v35 = vshrl.u32 %v9144_v1, 16 }
 0x6c5   : > { %v5463_v54 = vcombine.low %v5454_v40, %v5462_v0  ;;  %v6770_v19 = vpack.c.bf16 %v4798_v14, %v4798_v14  ;;  %v7017_v10 = vpop.f32.mrb[46].mxu1  ;;  %v9159_v7 = vpack.i.b16 %v5676_v11, %v5675_v38  ;;  %v5680_v2 = vpack.i.b16 %v9153_v9, %v9141_v25 }
 0x6c6   : > { %v5682_v8 = vshrl.u32 %v9153_v9, 16  ;;  %v4960_v33 = vpack.i.b16 %v6772_v49, %v6766_v42  ;;  %v4962_v56 = vshrl.u32 %v6772_v49, 16  ;;  %v4801_v17 = vpop.f32.mrb[47].mxu1  ;;  %v9165_v31 = vrot.slane %v5438_v29, %v7849_v28 }
 0x6c7   : > { %v9168_v16 = vrot.slane %v5463_v54, %v7849_v28  ;;  %v4936_v58 = vpack.i.b16 %v6770_v19, %v6764_v46  ;;  %v4938_v21 = vshrl.u32 %v6770_v19, 16  ;;  %v6771_v37 = vpack.c.bf16 %v4801_v17, %v4801_v17 }
 0x6c8   : > { %v9170_v43 = vpack.i.b16 %v5682_v8, %v5681_v13  ;;  %v4963_v27 = vpack.i.b16 %v4962_v56, %v4961_v52  ;;  %v5319_v48 = vrot.slane %v4960_v33, %v7834_v18  ;;  %v5687_v20 = vshrl.u32 %v9165_v31, 16 }
 0x6c9   : > { %v5688_v42 = vshrl.u32 %v9168_v16, 16  ;;  %v4939_v41 = vpack.i.b16 %v4938_v21, %v4937_v57  ;;  %v5183_v36 = vrot.slane %v4936_v58, %v7834_v18  ;;  %v4948_v53 = vpack.i.b16 %v6771_v37, %v9125_v59 }
 0x6ca   : > { %v4950_v22 = vshrl.u32 %v6771_v37, 16  ;;  %v5320_v51 = vcombine.low %v9077_v34, %v5319_v48  ;;  %v5321_v46 = vcombine.high %v9077_v34, %v5319_v48  ;;  %v5353_v3 = vrot.slane %v4963_v27, %v7834_v18 }
 0x6cb   : > { %v5689_v52 = vpack.i.b16 %v5688_v42, %v5687_v20  ;;  %v5184_v60 = vcombine.low %v9080_v61, %v5183_v36  ;;  %v5185_v23 = vcombine.high %v9080_v61, %v5183_v36  ;;  %v5217_v45 = vrot.slane %v4939_v41, %v7834_v18  ;;  %v7180_v61 = vld [vmem:[%s7705_s23 + $0x8] sm:$0xff]   ;;  %s7474_s23 = smov 8  }
 0x6cc   : > { %v4951_v57 = vpack.i.b16 %v4950_v22, %v4949_v62  ;;  %v5328_v50 = vrot.slane %v5320_v51, %v7849_v28  ;;  %v5335_v59 = vrot.slane %v5321_v46, %v7849_v28  ;;  %v5354_v38 = vcombine.low %v9083_v24, %v5353_v3  ;;  %7021 = vmatpush3.bf16.msra.mxu0 %v7180_v61 }
 0x6cd   : > { %v5355_v55 = vcombine.high %v9083_v24, %v5353_v3  ;;  %v5192_v34 = vrot.slane %v5184_v60, %v7849_v28  ;;  %v5199_v12 = vrot.slane %v5185_v23, %v7849_v28  ;;  %v5218_v40 = vcombine.low %v9086_v30, %v5217_v45  ;;  %7050 = vmatprep.subr.bf16.mxu0 %v9583_v26 }
 0x6ce   : > { %v5219_v0 = vcombine.high %v9086_v30, %v5217_v45  ;;  %v5362_v44 = vrot.slane %v5354_v38, %v7849_v28  ;;  %v5622_v11 = vcombine.low %v5328_v50, %v5335_v59  ;;  %v6703_v13 = vcombine.high %v5328_v50, %v5335_v59 }
 0x6cf   : > { %v5369_v62 = vrot.slane %v5355_v55, %v7849_v28  ;;  %v5226_v49 = vrot.slane %v5218_v40, %v7849_v28  ;;  %v5522_v24 = vcombine.low %v5192_v34, %v5199_v12  ;;  %v6699_v29 = vcombine.high %v5192_v34, %v5199_v12 }
 0x6d0   : > { %v5233_v14 = vrot.slane %v5219_v0, %v7849_v28  ;;  %v9197_v54 = vrot.slane %v5622_v11, %v7834_v18  ;;  %v9200_v19 = vrot.slane %v6703_v13, %v7834_v18  ;;  %v5251_v37 = vrot.slane %v4948_v53, %v7834_v18 }
 0x6d1   : > { %v5647_v30 = vcombine.low %v5362_v44, %v5369_v62  ;;  %v6704_v10 = vcombine.high %v5362_v44, %v5369_v62  ;;  %v5529_v8 = vrot.slane %v5522_v24, %v7834_v18  ;;  %v5537_v33 = vrot.slane %v6699_v29, %v7834_v18 }
 0x6d2   : > { %v5547_v56 = vcombine.low %v5226_v49, %v5233_v14  ;;  %v6700_v17 = vcombine.high %v5226_v49, %v5233_v14  ;;  %v5285_v27 = vrot.slane %v4951_v57, %v7834_v18  ;;  %v6708_v42 = vcombine.low %v9159_v7, %v5689_v52 }
 0x6d3   : > { %v9206_v58 = vrot.slane %v5647_v30, %v7834_v18  ;;  %v9209_v21 = vrot.slane %v6704_v10, %v7834_v18  ;;  %v5446_v41 = vcombine.high %v9165_v31, %v9584_v32  ;;  %v5252_v36 = vcombine.low %v9089_v15, %v5251_v37 }
 0x6d4   : > { %v5554_v48 = vrot.slane %v5547_v56, %v7834_v18  ;;  %v5562_v20 = vrot.slane %v6700_v17, %v7834_v18  ;;  %v5253_v22 = vcombine.high %v9089_v15, %v5251_v37  ;;  %v5286_v51 = vcombine.low %v9095_v63, %v5285_v27  ;;  %5762 = vrot.lane.b32.xlu0 %v6708_v42, %s7474_s23 }
 0x6d5   : > { %v5287_v46 = vcombine.high %v9095_v63, %v5285_v27  ;;  %v5471_v53 = vcombine.high %v9168_v16, %v9584_v32  ;;  %v5693_v3 = vshrl.u32 %v5446_v41, 16  ;;  %v9229_v7 = vrot.slane %v5513_v39, %v7849_v28 }
 0x6d6   : > { %v5538_v52 = vcombine.low %v5529_v8, %v5537_v33  ;;  %v5260_v15 = vrot.slane %v5252_v36, %v7849_v28  ;;  %v5267_v60 = vrot.slane %v5253_v22, %v7849_v28  ;;  %v5294_v63 = vrot.slane %v5286_v51, %v7849_v28 }
 0x6d7   : > { %v5301_v23 = vrot.slane %v5287_v46, %v7849_v28  ;;  %v5692_v45 = vpack.i.b16 %v5471_v53, %v5446_v41  ;;  %v5694_v57 = vshrl.u32 %v5471_v53, 16  ;;  %v5563_v59 = vcombine.low %v5554_v48, %v5562_v20 }
 0x6d8   : > { %v9236_v50 = vrot.slane %v5538_v52, %v7849_v28  ;;  %v5572_v38 = vcombine.low %v5260_v15, %v5267_v60  ;;  %v6701_v55 = vcombine.high %v5260_v15, %v5267_v60  ;;  %v5700_v40 = vshrl.u32 %v9229_v7, 16 }
 0x6d9   : > { %v5597_v47 = vcombine.low %v5294_v63, %v5301_v23  ;;  %v6702_v6 = vcombine.high %v5294_v63, %v5301_v23  ;;  %v6711_v39 = vcombine.low %v5680_v2, %v5692_v45  ;;  %v5695_v34 = vpack.i.b16 %v5694_v57, %v5693_v3 }
 0x6da   : > { %v9242_v12 = vrot.slane %v5563_v59, %v7849_v28  ;;  %v5579_v0 = vrot.slane %v5572_v38, %v7834_v18  ;;  %v5587_v61 = vrot.slane %v6701_v55, %v7834_v18  ;;  %v5701_v9 = vpack.i.b16 %v5700_v40, %v5699_v35 }
 0x6db   : > { %v5604_v44 = vrot.slane %v5597_v47, %v7834_v18  ;;  %v5612_v62 = vrot.slane %v6702_v6, %v7834_v18  ;;  %5777 = vrot.lane.b32.xlu1 %v6711_v39, %s7475_s24  ;;  %v6714_v25 = vcombine.low %v9170_v43, %v5695_v34  ;;  %v5711_v2 = vshrl.u32 %v9236_v50, 16 }
 0x6dc   : > { %v5712_v11 = vshrl.u32 %v9242_v12, 16  ;;  %v5496_v13 = vcombine.high %v9144_v1, %v9584_v32  ;;  %v5521_v49 = vcombine.high %v9229_v7, %v9584_v32  ;;  %v5546_v18 = vcombine.high %v9236_v50, %v9584_v32 }
 0x6dd   : > { %v5571_v14 = vcombine.high %v9242_v12, %v9584_v32  ;;  %v5588_v24 = vcombine.low %v5579_v0, %v5587_v61  ;;  %v5613_v29 = vcombine.low %v5604_v44, %v5612_v62  ;;  %v5638_v35 = vcombine.low %v9197_v54, %v9200_v19 }
 0x6de   : > { %v5713_v43 = vpack.i.b16 %v5712_v11, %v5711_v2  ;;  %v5704_v30 = vpack.i.b16 %v5521_v49, %v5496_v13  ;;  %v5705_v8 = vshrl.u32 %v5496_v13, 16  ;;  %v5706_v33 = vshrl.u32 %v5521_v49, 16 }
 0x6df   : > { %v5716_v10 = vpack.i.b16 %v5571_v14, %v5546_v18  ;;  %5792 = vrot.lane.b32.xlu1 %v6714_v25, %s7476_s28  ;;  %v5717_v17 = vshrl.u32 %v5546_v18, 16  ;;  %v5718_v37 = vshrl.u32 %v5571_v14, 16  ;;  %v5595_v27 = vrot.slane %v5588_v24, %v7849_v28 }
 0x6e0   : > { %v6709_v56 = vcombine.low %v5701_v9, %v5713_v43  ;;  %v5707_v20 = vpack.i.b16 %v5706_v33, %v5705_v8  ;;  %v5620_v42 = vrot.slane %v5613_v29, %v7849_v28  ;;  %v5645_v41 = vrot.slane %v5638_v35, %v7849_v28 }
 0x6e1   : > { %v6712_v48 = vcombine.low %v5704_v30, %v5716_v10  ;;  %v5719_v54 = vpack.i.b16 %v5718_v37, %v5717_v17  ;;  %v5663_v19 = vcombine.low %v9206_v58, %v9209_v21  ;;  %v5596_v36 = vcombine.high %v5595_v27, %v9584_v32  ;;  %v6717_v10 = vld [vmem:[%s9585_s3] ss:$0 sm:$0xff] }
 0x6e2   : > { %5764 = vrot.lane.b32.xlu0 %v6709_v56, %s7474_s23  ;;  %v5723_v22 = vshrl.u32 %v5595_v27, 16  ;;  %v5724_v51 = vshrl.u32 %v5620_v42, 16  ;;  %v5621_v46 = vcombine.high %v5620_v42, %v9584_v32  ;;  %v5646_v53 = vcombine.high %v5645_v41, %v9584_v32 }
 0x6e3   : > { %5779 = vrot.lane.b32.xlu1 %v6712_v48, %s7475_s24  ;;  %v6715_v3 = vcombine.low %v5707_v20, %v5719_v54  ;;  %v5670_v52 = vrot.slane %v5663_v19, %v7849_v28  ;;  %v5735_v15 = vshrl.u32 %v5645_v41, 16  ;;  %v5674_v60 = vpack.i.b16 %v9136_v4, %v9133_v5  ;;  %v7307_v48 = vld [vmem:[#allocation8] sm:$0xff] }
 0x6e4   : > { %v5725_v63 = vpack.i.b16 %v5724_v51, %v5723_v22  ;;  %v5729_v23 = vshrl.u32 %v5596_v36, 16  ;;  %v5730_v58 = vshrl.u32 %v5621_v46, 16  ;;  %v5728_v21 = vpack.i.b16 %v5621_v46, %v5596_v36 }
 0x6e5   : > { %v5736_v45 = vshrl.u32 %v5670_v52, 16  ;;  %v5671_v57 = vcombine.high %v5670_v52, %v9584_v32  ;;  %v5741_v59 = vshrl.u32 %v5646_v53, 16  ;;  %v5686_v38 = vpack.i.b16 %v9168_v16, %v9165_v31 }
 0x6e6   : > { %5794 = vrot.lane.b32.xlu0 %v6715_v3, %s7476_s28  ;;  %v5731_v55 = vpack.i.b16 %v5730_v58, %v5729_v23  ;;  %v5698_v28 = vpack.i.b16 %v9229_v7, %v9144_v1  ;;  %v5710_v5 = vpack.i.b16 %v9242_v12, %v9236_v50  ;;  %v5734_v4 = vpack.i.b16 %v5670_v52, %v5645_v41  ;;  %v7308_v41 = vld [vmem:[#allocation8 + $0x8] sm:$0xff]  ;;  %v7309_v52 = vld [vmem:[#allocation8 + $0x10] sm:$0xff] }
 0x6e7   : > { %v5737_v47 = vpack.i.b16 %v5736_v45, %v5735_v15  ;;  %v5742_v6 = vshrl.u32 %v5671_v57, 16  ;;  %v5740_v39 = vpack.i.b16 %v5671_v57, %v5646_v53  ;;  %v6705_v34 = vcombine.low %v5674_v60, %v5686_v38 }
 0x6e8   : > { %v6706_v40 = vcombine.low %v5698_v28, %v5710_v5  ;;  %v5722_v0 = vpack.i.b16 %v5620_v42, %v5595_v27  ;;  %v7311_v28 = vld [vmem:[#allocation8 + $0x20] sm:$0xff] }
 0x6e9   : > { %v6710_v61 = vcombine.low %v5725_v63, %v5737_v47  ;;  %v5743_v32 = vpack.i.b16 %v5742_v6, %v5741_v59  ;;  %v6713_v44 = vcombine.low %v5728_v21, %v5740_v39  ;;  %v7310_v63 = vld [vmem:[#allocation8 + $0x18] sm:$0xff]  ;;  %v7312_v47 = vld [vmem:[#allocation8 + $0x28] sm:$0xff] }
 0x6ea   : > { %v6707_v62 = vcombine.low %v5722_v0, %v5734_v4 }
 0x6eb   : > { %5766 = vrot.lane.b32.xlu1 %v6710_v61, %s7474_s23  ;;  %v6716_v31 = vcombine.low %v5731_v55, %v5743_v32  ;;  %5781 = vrot.lane.b32.xlu0 %v6713_v44, %s7475_s24 }
 0x6ef   : > { %5796 = vrot.lane.b32.xlu1 %v6716_v31, %s7476_s28 }
 0x746   : > { %v5763_v1 = vpop.permute.xlu0 %5762 }
 0x747   : > { %v5800_v7 = vsel %vm3512_vm5, %v6705_v34, %v5763_v1 }
 0x74d   : > { %v5778_v16 = vpop.permute.xlu1 %5777 }
 0x74e   : > { %v5809_v12 = vsel %vm5807_vm9, %v5800_v7, %v5778_v16 }
 0x751   : > { %v5793_v50 = vpop.permute.xlu1 %5792 }
 0x752   : > { %v5815_v25 = vsel %vm4050_vm8, %v5809_v12, %v5793_v50 }
 0x753   : > { %7023 = vmatmul.mubr.msk.bf16.vlgmr.msra.gmra.mrb[28].mxu0 %vm951_vm4, %v5815_v25 }
 0x754   : > { %v5765_v9 = vpop.permute.xlu0 %5764  ;;  %7026 = vmatprep.mubr.msk.bf16.mxu0 %vm7465_vm3, %v9583_v26 }
 0x755   : > { %v5803_v2 = vsel %vm3512_vm5, %v6706_v40, %v5765_v9  ;;  %v5780_v11 = vpop.permute.xlu1 %5779 }
 0x756   : > { %v5811_v13 = vsel %vm5807_vm9, %v5803_v2, %v5780_v11 }
 0x758   : > { %v5795_v49 = vpop.permute.xlu0 %5794 }
 0x759   : > { %v5817_v18 = vsel %vm4050_vm8, %v5811_v13, %v5795_v49 }
 0x75b   : > { %7027 = vmatmul.mubr.msk.bf16.gmra.mrb[32].mxu0 %vm951_vm4, %v5817_v18 }
 0x75c   : > { %7030 = vmatprep.mubr.msk.bf16.mxu0 %vm7465_vm3, %v9583_v26 }
 0x75d   : > { %v5767_v14 = vpop.permute.xlu1 %5766  ;;  %v5782_v43 = vpop.permute.xlu0 %5781 }
 0x75e   : > { %v5806_v24 = vsel %vm3512_vm5, %v6707_v62, %v5767_v14 }
 0x75f   : > { %v5813_v29 = vsel %vm5807_vm9, %v5806_v24, %v5782_v43 }
 0x761   : > { %v5797_v35 = vpop.permute.xlu1 %5796 }
 0x762   : > { %v5819_v30 = vsel %vm4050_vm8, %v5813_v29, %v5797_v35 }
 0x763   : > { %7031 = vmatmul.mubr.msk.bf16.gmra.mrb[36].mxu0 %vm951_vm4, %v5819_v30 }
 0x764   : > { %7058 = vmatprep.mubr.msk.bf16.mxu0 %vm7465_vm3, %v9583_v26 }
 0x826   : > { %v5883_v8 = vpop.f32.mrb[28].mxu0 }
 0x827   : > { %v5884_v33 = vadd.f32 %v6717_v10, %v5883_v8  ;;  %v7024_v56 = vpop.f32.mrb[29].mxu0 }
 0x828   : > { %v5886_v17 = vpop.f32.mrb[30].mxu0 }
 0x829   : > { %v5887_v37 = vadd.f32 %v6717_v10, %v5886_v17  ;;  %v7025_v27 = vpop.f32.mrb[31].mxu0  ;;  %v5906_v20 = vadd.f32 %v7307_v48, %v5884_v33  ;;  %v7181_v17 = vld [vmem:[%s7710_s22] sm:$0xff]   ;;  %v7184_v48 = vld [vmem:[%s7715_s21 + $0x8] sm:$0xff]  }
 0x82a   : > { %7035 = vmatpush3.bf16.msra.mxu1 %v7181_v17  ;;  %v7183_v27 = vld [vmem:[%s7715_s21] sm:$0xff]  }
 0x82b   : > { %v5914_v42 = vsel %vm951_vm4, %v5906_v20, 0.0  ;;  %v5907_v54 = vadd.f32 %v7308_v41, %v5887_v37  ;;  %7036 = vmatprep.subr.bf16.mxu1 %v9583_v26  ;;  %v7182_v37 = vld [vmem:[%s7710_s22 + $0x8] sm:$0xff]   ;;  %7051 = vmatpush3.bf16.msra.mxu0 %v7183_v27 }
 0x82c   : > { %5915 = vadd.xlane.f32.xlu0 %v5914_v42  ;;  %7052 = vmatprep.subr.bf16.mxu0 %v9583_v26 }
 0x82d   : > { %v5917_v19 = vsel %vm951_vm4, %v5907_v54, 0.0 }
 0x82e   : > { %5918 = vadd.xlane.f32.xlu1 %v5917_v19  ;;  %v5891_v36 = vpop.f32.mrb[32].mxu0  ;;  %7037 = vmatpush3.bf16.msra.mxu1 %v7182_v37 }
 0x82f   : > { %v5892_v22 = vadd.f32 %v6717_v10, %v5891_v36  ;;  %v7028_v51 = vpop.f32.mrb[33].mxu0  ;;  %7053 = vmatpush3.bf16.msra.mxu0 %v7184_v48 }
 0x830   : > { %v5894_v46 = vpop.f32.mrb[34].mxu0  ;;  %7054 = vmatprep.subr.bf16.mxu0 %v9583_v26 }
 0x831   : > { %v5895_v53 = vadd.f32 %v6717_v10, %v5894_v46  ;;  %v7029_v3 = vpop.f32.mrb[35].mxu0  ;;  %v5908_v15 = vadd.f32 %v7309_v52, %v5892_v22 }
 0x833   : > { %v5920_v60 = vsel %vm951_vm4, %v5908_v15, 0.0  ;;  %v5909_v23 = vadd.f32 %v7310_v63, %v5895_v53 }
 0x834   : > { %5921 = vadd.xlane.f32.xlu0 %v5920_v60 }
 0x835   : > { %v5923_v57 = vsel %vm951_vm4, %v5909_v23, 0.0 }
 0x836   : > { %v5899_v58 = vpop.f32.mrb[36].mxu0 }
 0x837   : > { %v5900_v21 = vadd.f32 %v6717_v10, %v5899_v58  ;;  %v7032_v45 = vpop.f32.mrb[37].mxu0 }
 0x838   : > { %5924 = vadd.xlane.f32.xlu0 %v5923_v57  ;;  %v5902_v59 = vpop.f32.mrb[38].mxu0 }
 0x839   : > { %v5903_v38 = vadd.f32 %v6717_v10, %v5902_v59  ;;  %v7033_v55 = vpop.f32.mrb[39].mxu0  ;;  %v5910_v5 = vadd.f32 %v7311_v28, %v5900_v21 }
 0x83a   : > { %v6724_v55 = vld [vmem:[%s767_s16] ss:$0 sm:$0xff] }
 0x83b   : > { %v5926_v4 = vsel %vm951_vm4, %v5910_v5, 0.0  ;;  %v5911_v6 = vadd.f32 %v7312_v47, %v5903_v38 }
 0x83c   : > { %5927 = vadd.xlane.f32.xlu1 %v5926_v4 }
 0x83d   : > { %v5929_v39 = vsel %vm951_vm4, %v5911_v6, 0.0 }
 0x83e   : > { %5930 = vadd.xlane.f32.xlu0 %v5929_v39 }
 0x8b9   : > { %v5916_v34 = vpop.xlane.xlu0 %5915 }
 0x8ba   : > { %v5933_v40 = vmul.f32 0.03125, %v5916_v34 }
 0x8bb   : > { %v5919_v0 = vpop.xlane.xlu1 %5918 }
 0x8bc   : > { %v5939_v61 = vsub.f32 %v5906_v20, %v5933_v40  ;;  %v5934_v32 = vmul.f32 0.03125, %v5919_v0 }
 0x8be   : > { %v9319_v44 = vsub.f32 %v5907_v54, %v5934_v32  ;;  %v5945_v62 = vmul.f32 %v5939_v61, %v5939_v61 }
 0x8c0   : > { %v5951_v31 = vsel %vm951_vm4, %v5945_v62, 0.0  ;;  %v5946_v1 = vmul.f32 %v9319_v44, %v9319_v44 }
 0x8c1   : > { %5952 = vadd.xlane.f32.xlu1 %v5951_v31  ;;  %v5922_v16 = vpop.xlane.xlu0 %5921 }
 0x8c2   : > { %v5954_v7 = vsel %vm951_vm4, %v5946_v1, 0.0  ;;  %v5935_v50 = vmul.f32 0.03125, %v5922_v16 }
 0x8c3   : > { %5955 = vadd.xlane.f32.xlu0 %v5954_v7 }
 0x8c4   : > { %v9325_v12 = vsub.f32 %v5908_v15, %v5935_v50  ;;  %v6723_v15 = vld [vmem:[%s764_s30] ss:$0 sm:$0xff] }
 0x8c5   : > { %v5925_v25 = vpop.xlane.xlu0 %5924 }
 0x8c6   : > { %v5936_v9 = vmul.f32 0.03125, %v5925_v25  ;;  %v5947_v2 = vmul.f32 %v9325_v12, %v9325_v12 }
 0x8c8   : > { %v9329_v11 = vsub.f32 %v5909_v23, %v5936_v9  ;;  %v5957_v13 = vsel %vm951_vm4, %v5947_v2, 0.0 }
 0x8c9   : > { %v5928_v49 = vpop.xlane.xlu1 %5927  ;;  %5958 = vadd.xlane.f32.xlu1 %v5957_v13 }
 0x8ca   : > { %v5937_v18 = vmul.f32 0.03125, %v5928_v49  ;;  %v5948_v14 = vmul.f32 %v9329_v11, %v9329_v11  ;;  %v7185_v49 = vld [vmem:[%s7715_s21 + $0x10] sm:$0xff]  }
 0x8cb   : > { %v5931_v43 = vpop.xlane.xlu0 %5930  ;;  %7055 = vmatpush3.bf16.msra.mxu0 %v7185_v49 }
 0x8cc   : > { %v9334_v24 = vsub.f32 %v5910_v5, %v5937_v18  ;;  %v5938_v29 = vmul.f32 0.03125, %v5931_v43  ;;  %v5960_v35 = vsel %vm951_vm4, %v5948_v14, 0.0  ;;  %v7186_v18 = vld [vmem:[%s7715_s21 + $0x18] sm:$0xff]   ;;  %7056 = vmatprep.subr.bf16.mxu0 %v9583_v26  ;;  %v6725_v14 = vld [vmem:[%s758_s5] ss:$0 sm:$0xff] }
 0x8cd   : > { %5961 = vadd.xlane.f32.xlu0 %v5960_v35 }
 0x8ce   : > { %v9337_v30 = vsub.f32 %v5911_v6, %v5938_v29  ;;  %v5949_v10 = vmul.f32 %v9334_v24, %v9334_v24 }
 0x8cf   : > { %7057 = vmatpush3.bf16.msra.mxu0 %v7186_v18 }
 0x8d0   : > { %v5963_v8 = vsel %vm951_vm4, %v5949_v10, 0.0  ;;  %v5950_v33 = vmul.f32 %v9337_v30, %v9337_v30 }
 0x8d1   : > { %5964 = vadd.xlane.f32.xlu1 %v5963_v8 }
 0x8d2   : > { %v5966_v56 = vsel %vm951_vm4, %v5950_v33, 0.0 }
 0x8d3   : > { %5967 = vadd.xlane.f32.xlu0 %v5966_v56 }
 0x94e   : > { %v5953_v20 = vpop.xlane.xlu1 %5952 }
 0x94f   : > { %v5969_v42 = vmul.f32 0.03125, %v5953_v20 }
 0x950   : > { %v5956_v41 = vpop.xlane.xlu0 %5955 }
 0x951   : > { %v5975_v54 = vadd.f32 1e-05, %v5969_v42  ;;  %v5970_v19 = vmul.f32 0.03125, %v5956_v41 }
 0x953   : > { %7283 = vrsqrt.f32 %v5975_v54  ;;  %v5976_v36 = vadd.f32 1e-05, %v5970_v19 }
 0x955   : > { %7285 = vrsqrt.f32 %v5976_v36 }
 0x956   : > { %v5959_v22 = vpop.xlane.xlu1 %5958 }
 0x957   : > { %v5971_v51 = vmul.f32 0.03125, %v5959_v22 }
 0x959   : > { %v5977_v46 = vadd.f32 1e-05, %v5971_v51 }
 0x95a   : > { %v5962_v53 = vpop.xlane.xlu0 %5961 }
 0x95b   : > { %7287 = vrsqrt.f32 %v5977_v46  ;;  %v5972_v3 = vmul.f32 0.03125, %v5962_v53 }
 0x95d   : > { %v7284_v52 = vpop.eup %7283  ;;  %v5978_v60 = vadd.f32 1e-05, %v5972_v3 }
 0x95e   : > { %v5987_v63 = vmul.f32 %v7284_v52, %v5939_v61  ;;  %v5965_v23 = vpop.xlane.xlu1 %5964 }
 0x95f   : > { %v7286_v58 = vpop.eup %7285  ;;  %7289 = vrsqrt.f32 %v5978_v60  ;;  %v5973_v21 = vmul.f32 0.03125, %v5965_v23 }
 0x960   : > { %v5999_v45 = vmul.f32 %v6723_v15, %v5987_v63  ;;  %v5988_v57 = vmul.f32 %v7286_v58, %v9319_v44  ;;  %v5968_v59 = vpop.xlane.xlu0 %5967  ;;  %v6731_v63 = vld [vmem:[%s9586_s6] ss:$0 sm:$0xff] }
 0x961   : > { %v5979_v38 = vadd.f32 1e-05, %v5973_v21  ;;  %v5974_v28 = vmul.f32 0.03125, %v5968_v59 }
 0x962   : > { %v6000_v5 = vmul.f32 %v6723_v15, %v5988_v57  ;;  %v9363_v47 = vadd.f32 %v6724_v55, %v5999_v45 }
 0x963   : > { %7291 = vrsqrt.f32 %v5979_v38  ;;  %v5980_v4 = vadd.f32 1e-05, %v5974_v28 }
 0x964   : > { %v9365_v6 = vadd.f32 %v6724_v55, %v6000_v5 }
 0x965   : > { %v7288_v39 = vpop.eup %7287  ;;  %7293 = vrsqrt.f32 %v5980_v4 }
 0x966   : > { %v5989_v34 = vmul.f32 %v7288_v39, %v9325_v12  ;;  %v6017_v40 = vpack.c.bf16 %v9365_v6, %v9363_v47 }
 0x968   : > { %7039 = vmatmul.mubr.msk.bf16.vlgmr.msra.gmra.mrb[48].mxu1 %vm951_vm4, %v6017_v40  ;;  %v6001_v32 = vmul.f32 %v6723_v15, %v5989_v34 }
 0x969   : > { %v7290_v0 = vpop.eup %7289  ;;  %7042 = vmatprep.mubr.msk.bf16.mxu1 %vm7465_vm3, %v9583_v26 }
 0x96a   : > { %v5990_v61 = vmul.f32 %v7290_v0, %v9329_v11  ;;  %v9375_v1 = vadd.f32 %v6724_v55, %v6001_v32 }
 0x96c   : > { %v6002_v44 = vmul.f32 %v6723_v15, %v5990_v61 }
 0x96d   : > { %v7292_v62 = vpop.eup %7291 }
 0x96e   : > { %v5991_v31 = vmul.f32 %v7292_v62, %v9334_v24  ;;  %v9377_v16 = vadd.f32 %v6724_v55, %v6002_v44 }
 0x96f   : > { %v7294_v7 = vpop.eup %7293 }
 0x970   : > { %v5992_v50 = vmul.f32 %v7294_v7, %v9337_v30  ;;  %v6018_v12 = vpack.c.bf16 %v9377_v16, %v9375_v1  ;;  %v6003_v25 = vmul.f32 %v6723_v15, %v5991_v31 }
 0x972   : > { %7043 = vmatmul.mubr.msk.bf16.gmra.mrb[52].mxu1 %vm951_vm4, %v6018_v12  ;;  %v6004_v9 = vmul.f32 %v6723_v15, %v5992_v50  ;;  %v9387_v11 = vadd.f32 %v6724_v55, %v6003_v25 }
 0x973   : > { %7046 = vmatprep.mubr.msk.bf16.mxu1 %vm7465_vm3, %v9583_v26 }
 0x974   : > { %v9385_v2 = vadd.f32 %v6724_v55, %v6004_v9 }
 0x976   : > { %v6019_v13 = vpack.c.bf16 %v9385_v2, %v9387_v11 }
 0x97a   : > { %7047 = vmatmul.mubr.msk.bf16.gmra.mrb[56].mxu1 %vm951_vm4, %v6019_v13 }
 0xa3b   : > { %v6086_v43 = vpop.f32.mrb[48].mxu1 }
 0xa3c   : > { %v6087_v24 = vadd.f32 %v6725_v14, %v6086_v43  ;;  %v7040_v29 = vpop.f32.mrb[49].mxu1 }
 0xa3d   : > { %v6089_v35 = vpop.f32.mrb[50].mxu1 }
 0xa3e   : > { %v6090_v30 = vadd.f32 %v6725_v14, %v6089_v35  ;;  %v7041_v10 = vpop.f32.mrb[51].mxu1  ;;  %v6109_v8 = vmax.f32 %v6087_v24, 0.0 }
 0xa40   : > { %v6110_v33 = vmax.f32 %v6090_v30, 0.0 }
 0xa42   : > { %v6115_v56 = vpack.c.bf16 %v6110_v33, %v6109_v8 }
 0xa44   : > { %7059 = vmatmul.mubr.msk.bf16.vlgmr.msra.gmra.mrb[40].mxu0 %vm6157_vm10, %v6115_v56 }
 0xa45   : > { %v6094_v17 = vpop.f32.mrb[52].mxu1  ;;  %7062 = vmatprep.mubr.msk.bf16.mxu0 %vm7465_vm3, %v9583_v26 }
 0xa46   : > { %v6095_v37 = vadd.f32 %v6725_v14, %v6094_v17  ;;  %v7044_v27 = vpop.f32.mrb[53].mxu1 }
 0xa47   : > { %v6097_v48 = vpop.f32.mrb[54].mxu1 }
 0xa48   : > { %v6098_v20 = vadd.f32 %v6725_v14, %v6097_v48  ;;  %v7045_v42 = vpop.f32.mrb[55].mxu1  ;;  %v6111_v41 = vmax.f32 %v6095_v37, 0.0 }
 0xa4a   : > { %v6112_v54 = vmax.f32 %v6098_v20, 0.0 }
 0xa4c   : > { %v6116_v19 = vpack.c.bf16 %v6112_v54, %v6111_v41 }
 0xa4d   : > { %v6102_v36 = vpop.f32.mrb[56].mxu1 }
 0xa4e   : > { %v6103_v22 = vadd.f32 %v6725_v14, %v6102_v36  ;;  %v7048_v51 = vpop.f32.mrb[57].mxu1  ;;  %7063 = vmatmul.mubr.msk.bf16.gmra.mrb[44].mxu0 %vm6157_vm10, %v6116_v19 }
 0xa4f   : > { %v6105_v46 = vpop.f32.mrb[58].mxu1  ;;  %7066 = vmatprep.mubr.msk.bf16.mxu0 %vm7465_vm3, %v9583_v26 }
 0xa50   : > { %v6106_v53 = vadd.f32 %v6725_v14, %v6105_v46  ;;  %v7049_v3 = vpop.f32.mrb[59].mxu1  ;;  %v6113_v52 = vmax.f32 %v6103_v22, 0.0 }
 0xa52   : > { %v6114_v15 = vmax.f32 %v6106_v53, 0.0 }
 0xa54   : > { %v6117_v60 = vpack.c.bf16 %v6114_v15, %v6113_v52 }
 0xa56   : > { %7067 = vmatmul.mubr.msk.bf16.gmra.mrb[48].mxu0 %vm6157_vm10, %v6117_v60 }
 0xb17   : > { %v6201_v23 = vpop.f32.mrb[40].mxu0 }
 0xb18   : > { %v6202_v58 = vadd.f32 %v6731_v63, %v6201_v23  ;;  %v7060_v21 = vpop.f32.mrb[41].mxu0 }
 0xb19   : > { %v6204_v45 = vpop.f32.mrb[42].mxu0 }
 0xb1a   : > { %v6224_v57 = vadd.f32 %v6202_v58, %v9363_v47  ;;  %v6205_v59 = vadd.f32 %v6731_v63, %v6204_v45  ;;  %v7061_v26 = vpop.f32.mrb[43].mxu0 }
 0xb1c   : > { %v6225_v38 = vadd.f32 %v6205_v59, %v9365_v6  ;;  %v6232_v55 = vsel %vm951_vm4, %v6224_v57, 0.0 }
 0xb1d   : > { %6233 = vadd.xlane.f32.xlu1 %v6232_v55  ;;  %v6739_v55 = vld [vmem:[%s770_s0] ss:$0 sm:$0xff]  ;;  %s7477_s0 = smov [#allocation8]  }
 0xb1e   : > { %v6235_v28 = vsel %vm951_vm4, %v6225_v38, 0.0 }
 0xb1f   : > { %6236 = vadd.xlane.f32.xlu0 %v6235_v28 }
 0xb21   : > { %v6209_v5 = vpop.f32.mrb[44].mxu0 }
 0xb22   : > { %v6210_v4 = vadd.f32 %v6731_v63, %v6209_v5  ;;  %v7064_v39 = vpop.f32.mrb[45].mxu0 }
 0xb23   : > { %v6212_v34 = vpop.f32.mrb[46].mxu0  ;;  %v6740_v39 = vld [vmem:[%s773_s29] ss:$0 sm:$0xff]  ;;  %s6350_s29 = sshll.u32 %s7477_s0, 4  ;;  %s6351_s29 = int_to_ptr.vmem [resolvable:$true] %s6350_s29 }
 0xb24   : > { %v6226_v40 = vadd.f32 %v6210_v4, %v9375_v1  ;;  %v6213_v0 = vadd.f32 %v6731_v63, %v6212_v34  ;;  %v7065_v61 = vpop.f32.mrb[47].mxu0  ;;  %s7397_s3 = scalar_lea.vmem %s6351_s29, 768  ;;  %p7404_p12 = scmp.lt.s32.totalorder %s6351_s29, %s6351_s29 }
 0xb25   : > { %p7398_p9 = scmp.ne.s32.totalorder %s6351_s29, %s7397_s3  ;;  %p7405_p13 = scmp.lt.s32.totalorder %s7397_s3, %s7397_s3 }
 0xb26   : > { %v6227_v47 = vadd.f32 %v6213_v0, %v9377_v16  ;;  %v6238_v32 = vsel %vm951_vm4, %v6226_v40, 0.0 }
 0xb27   : > { %6239 = vadd.xlane.f32.xlu1 %v6238_v32  ;;  %p7399_p10 = pnand %p7398_p9, %p9446_p6  ;;  %p7406_p0 = por %p7405_p13, %p7404_p12 }
 0xb28   : > { %v6241_v6 = vsel %vm951_vm4, %v6227_v47, 0.0 }
 0xb29   : > { %6242 = vadd.xlane.f32.xlu0 %v6241_v6  ;;  %v6217_v44 = vpop.f32.mrb[48].mxu0  ;;  %p7400_p11 = pneg %p7399_p10 }
 0xb2a   : > { %v6218_v62 = vadd.f32 %v6731_v63, %v6217_v44  ;;  %v7068_v31 = vpop.f32.mrb[49].mxu0 }
 0xb2b   : > { %v6220_v7 = vpop.f32.mrb[50].mxu0  ;;  %p7407_p1 = pnand %p7406_p0, %p7400_p11 }
 0xb2c   : > { %v6228_v50 = vadd.f32 %v6218_v62, %v9387_v11  ;;  %v6221_v12 = vadd.f32 %v6731_v63, %v6220_v7  ;;  %v7069_v25 = vpop.f32.mrb[51].mxu0 }
 0xb2e   : > { %v6229_v1 = vadd.f32 %v6221_v12, %v9385_v2  ;;  %v6244_v9 = vsel %vm951_vm4, %v6228_v50, 0.0 }
 0xb2f   : > { %6245 = vadd.xlane.f32.xlu1 %v6244_v9 }
 0xb30   : > { %v6247_v16 = vsel %vm951_vm4, %v6229_v1, 0.0 }
 0xb31   : > { %6248 = vadd.xlane.f32.xlu0 %v6247_v16 }
 0xbaa   : > { %v6234_v13 = vpop.xlane.xlu1 %6233 }
 0xbab   : > { %v6250_v49 = vmul.f32 0.03125, %v6234_v13 }
 0xbac   : > { %v6237_v18 = vpop.xlane.xlu0 %6236 }
 0xbad   : > { %v6256_v14 = vsub.f32 %v6224_v57, %v6250_v49  ;;  %v6251_v43 = vmul.f32 0.03125, %v6237_v18 }
 0xbaf   : > { %v6257_v24 = vsub.f32 %v6225_v38, %v6251_v43  ;;  %v6262_v29 = vmul.f32 %v6256_v14, %v6256_v14 }
 0xbb1   : > { %v6268_v35 = vsel %vm951_vm4, %v6262_v29, 0.0  ;;  %v6263_v11 = vmul.f32 %v6257_v24, %v6257_v24 }
 0xbb2   : > { %6269 = vadd.xlane.f32.xlu1 %v6268_v35 }
 0xbb3   : > { %v6271_v30 = vsel %vm951_vm4, %v6263_v11, 0.0 }
 0xbb4   : > { %6272 = vadd.xlane.f32.xlu0 %v6271_v30  ;;  %v6240_v2 = vpop.xlane.xlu1 %6239 }
 0xbb5   : > { %v6252_v10 = vmul.f32 0.03125, %v6240_v2 }
 0xbb6   : > { %v6243_v8 = vpop.xlane.xlu0 %6242 }
 0xbb7   : > { %v6258_v33 = vsub.f32 %v6226_v40, %v6252_v10  ;;  %v6253_v56 = vmul.f32 0.03125, %v6243_v8 }
 0xbb9   : > { %v6259_v17 = vsub.f32 %v6227_v47, %v6253_v56  ;;  %v6264_v37 = vmul.f32 %v6258_v33, %v6258_v33 }
 0xbbb   : > { %v6274_v27 = vsel %vm951_vm4, %v6264_v37, 0.0  ;;  %v6265_v48 = vmul.f32 %v6259_v17, %v6259_v17 }
 0xbbc   : > { %6275 = vadd.xlane.f32.xlu1 %v6274_v27  ;;  %v6246_v20 = vpop.xlane.xlu1 %6245 }
 0xbbd   : > { %v6254_v42 = vmul.f32 0.03125, %v6246_v20  ;;  %v6277_v41 = vsel %vm951_vm4, %v6265_v48, 0.0 }
 0xbbe   : > { %6278 = vadd.xlane.f32.xlu0 %v6277_v41  ;;  %v6249_v54 = vpop.xlane.xlu0 %6248 }
 0xbbf   : > { %v6260_v19 = vsub.f32 %v6228_v50, %v6254_v42  ;;  %v6255_v36 = vmul.f32 0.03125, %v6249_v54 }
 0xbc1   : > { %v6261_v22 = vsub.f32 %v6229_v1, %v6255_v36  ;;  %v6266_v51 = vmul.f32 %v6260_v19, %v6260_v19 }
 0xbc3   : > { %v6280_v46 = vsel %vm951_vm4, %v6266_v51, 0.0  ;;  %v6267_v53 = vmul.f32 %v6261_v22, %v6261_v22 }
 0xbc4   : > { %6281 = vadd.xlane.f32.xlu1 %v6280_v46 }
 0xbc5   : > { %v6283_v3 = vsel %vm951_vm4, %v6267_v53, 0.0 }
 0xbc6   : > { %6284 = vadd.xlane.f32.xlu0 %v6283_v3 }
 0xc3f   : > { %v6270_v52 = vpop.xlane.xlu1 %6269 }
 0xc40   : > { %v6286_v15 = vmul.f32 0.03125, %v6270_v52 }
 0xc41   : > { %v6273_v60 = vpop.xlane.xlu0 %6272 }
 0xc42   : > { %v6292_v63 = vadd.f32 1e-05, %v6286_v15  ;;  %v6287_v23 = vmul.f32 0.03125, %v6273_v60 }
 0xc44   : > { %7295 = vrsqrt.f32 %v6292_v63  ;;  %v6293_v58 = vadd.f32 1e-05, %v6287_v23 }
 0xc46   : > { %7297 = vrsqrt.f32 %v6293_v58 }
 0xc49   : > { %v6276_v21 = vpop.xlane.xlu1 %6275 }
 0xc4a   : > { %v6288_v45 = vmul.f32 0.03125, %v6276_v21 }
 0xc4b   : > { %v6279_v57 = vpop.xlane.xlu0 %6278 }
 0xc4c   : > { %v6294_v59 = vadd.f32 1e-05, %v6288_v45  ;;  %v6289_v26 = vmul.f32 0.03125, %v6279_v57 }
 0xc4e   : > { %v7296_v38 = vpop.eup %7295  ;;  %7299 = vrsqrt.f32 %v6294_v59  ;;  %v6295_v28 = vadd.f32 1e-05, %v6289_v26 }
 0xc4f   : > { %v6304_v5 = vmul.f32 %v7296_v38, %v6256_v14 }
 0xc50   : > { %v7298_v4 = vpop.eup %7297  ;;  %7301 = vrsqrt.f32 %v6295_v28 }
 0xc51   : > { %v6316_v34 = vmul.f32 %v6739_v55, %v6304_v5  ;;  %v6305_v40 = vmul.f32 %v7298_v4, %v6257_v24  ;;  %v6282_v0 = vpop.xlane.xlu1 %6281 }
 0xc52   : > { %v6290_v61 = vmul.f32 0.03125, %v6282_v0 }
 0xc53   : > { %v6328_v47 = vadd.f32 %v6740_v39, %v6316_v34  ;;  %v6317_v32 = vmul.f32 %v6739_v55, %v6305_v40  ;;  %v6285_v6 = vpop.xlane.xlu0 %6284 }
 0xc54   : > { %v6296_v44 = vadd.f32 1e-05, %v6290_v61  ;;  %v6291_v62 = vmul.f32 0.03125, %v6285_v6 }
 0xc55   : > { %6334 = vst.msk [vmem:[#allocation8] sm:$0xff] %vm951_vm4, %v6328_v47  ;;  %v6329_v31 = vadd.f32 %v6740_v39, %v6317_v32 }
 0xc56   : > { %7303 = vrsqrt.f32 %v6296_v44  ;;  %v6297_v7 = vadd.f32 1e-05, %v6291_v62 }
 0xc57   : > { %6335 = vst.msk [vmem:[#allocation8 + $0x8] sm:$0xff] %vm951_vm4, %v6329_v31 }
 0xc58   : > { %v7300_v50 = vpop.eup %7299  ;;  %7305 = vrsqrt.f32 %v6297_v7 }
 0xc59   : > { %v6306_v12 = vmul.f32 %v7300_v50, %v6258_v33 }
 0xc5a   : > { %v7302_v25 = vpop.eup %7301 }
 0xc5b   : > { %v6318_v1 = vmul.f32 %v6739_v55, %v6306_v12  ;;  %v6307_v9 = vmul.f32 %v7302_v25, %v6259_v17 }
 0xc5d   : > { %v6330_v16 = vadd.f32 %v6740_v39, %v6318_v1  ;;  %v6319_v13 = vmul.f32 %v6739_v55, %v6307_v9 }
 0xc5f   : > { %6336 = vst.msk [vmem:[#allocation8 + $0x10] sm:$0xff] %vm951_vm4, %v6330_v16  ;;  %v6331_v49 = vadd.f32 %v6740_v39, %v6319_v13 }
 0xc60   : > { %v7304_v18 = vpop.eup %7303 }
 0xc61   : > { %6337 = vst.msk [vmem:[#allocation8 + $0x18] sm:$0xff] %vm951_vm4, %v6331_v49  ;;  %v6308_v14 = vmul.f32 %v7304_v18, %v6260_v19 }
 0xc62   : > { %v7306_v43 = vpop.eup %7305 }
 0xc63   : > { %v6320_v24 = vmul.f32 %v6739_v55, %v6308_v14  ;;  %v6309_v29 = vmul.f32 %v7306_v43, %v6261_v22 }
 0xc65   : > { %v6332_v35 = vadd.f32 %v6740_v39, %v6320_v24  ;;  %v6321_v11 = vmul.f32 %v6739_v55, %v6309_v29 }
 0xc67   : > { %6338 = vst.msk [vmem:[#allocation8 + $0x20] sm:$0xff] %vm951_vm4, %v6332_v35  ;;  %v6333_v30 = vadd.f32 %v6740_v39, %v6321_v11 }
 0xc69   : > { %6339 = vst.msk [vmem:[#allocation8 + $0x28] sm:$0xff] %vm951_vm4, %v6333_v30 }
 0xc6a   : > { %7410 = shalt.err (!%p7407_p1)
}
 0xc6b   : > { %s9592_s26 = sld [smem:[#allocation32_spill]] }
 0xc71   : > { %s9593_s17 = smov %s9592_s26  ;;  %s7411_s30 = scalar_lea.hbm %s9592_s26, 768 }
 0xc72   : > { %p7412_p4 = scmp.ne.s32.totalorder %s9593_s17, %s7411_s30  ;;  %p7417_p3 = scmp.lt.u32.totalorder %s7411_s30, %s9593_s17 }
 0xc74   : > { %p7413_p7 = pnand %p7412_p4, %p9446_p6 }
 0xc76   : > { %p7414_p2 = pneg %p7413_p7 }
 0xc78   : > { %p7419_p8 = pnand %p7417_p3, %p7414_p2 }
 0xc7a   : > { %7422 = shalt.err (!%p7419_p8)
}
 0xc7b   : > { %s7478_s25 = smov 128  }
 0xc7c   : > { %7107 = dma.vmem_to_hbm [thread:$0]  (%p9446_p6), %s6351_s29, 768, %s9593_s17, [#allocation4], %s7478_s25, %s7478_s25, %s7474_s23  }
 0xc7d   : > { %7444 = dma.done.wait (%p9446_p6), [#allocation4], 768  }
 0xc7e   : > { %7446 = vsyncadd (%p9446_p6), [#allocation4], 4294966528 }
 0xc7f PF: > { %s9594_s8 = sld [smem:[#allocation13_spill]]  ;;  %s9595_s24 = sld [smem:[#allocation12_spill]] }
 0xc80   : > { %s9596_s25 = sld [smem:[#allocation14_spill]] }
 0xc85   : > { %s30_s26 = sadd.s32 1, %s9594_s8  }
 0xc86   : > { %p27_p5 = scmp.ge.s32.totalorder %s30_s26, 4  }
 0xc88   :  { %29 = sbr.rel (!%p27_p5) target bundleno = 17 (0x11), region = 167 }
 0xc8f   :  { %6366 = vsyncpa [#allocation3], 1 }
 0xc90   :  { %6368 = vsyncpa [#allocation3 + $0x1], 1 }
 0xc91   :  { %6369 = vsyncpa [#allocation6], 1 }
 0xc92   :  { %6370 = vsyncpa [#allocation4], 1 }
 0xc93   :  { %6372 = vsyncpa [#allocation4 + $0x1], 1 }

</bundles_post_ra>
